<compile_context>
chip_gen: v5e
topology: v5e:2x2
jax: 0.10.0
libtpu: 0.0.40
codegen_flags: <defaults>
</compile_context>

<pallas_src>
import math

import jax
import jax.numpy as jnp
from jax.experimental import pallas as pl
from jax.experimental.pallas import tpu as pltpu

# ---- model dims (small synthetic stand-ins for bert_dim=768 etc.) ----
D = 32            # "bert_dim"
H = 32            # LSTM hidden size (== bert_dim in the reference)
F = 4 * D         # encoder FFN width
C = 4             # num_class
V = 64            # synthetic vocab size
EPS = 1e-12       # BERT layernorm eps

BLK = 8           # sequences packed per grid block (sublane-dense LSTM batch)
OUTW = 128        # lane-padded num_class -> full 128-lane unmasked output store


def _layernorm(x, g, b):
    mu = jnp.mean(x, axis=-1, keepdims=True)
    var = jnp.mean((x - mu) ** 2, axis=-1, keepdims=True)
    return (x - mu) * jax.lax.rsqrt(var + EPS) * g + b


def _erf(x):
    # Abramowitz & Stegun 7.1.26 (max abs err ~1.5e-7): exact-GELU numerics
    # without relying on an erf lowering; uses only exp / mul / select.
    a1, a2, a3, a4, a5 = 0.254829592, -0.284496736, 1.421413741, -1.453152027, 1.061405429
    pp = 0.3275911
    ax = jnp.abs(x)
    t = 1.0 / (1.0 + pp * ax)
    poly = ((((a5 * t + a4) * t + a3) * t + a2) * t + a1) * t
    y = 1.0 - poly * jnp.exp(-ax * ax)
    return jnp.where(x >= 0, y, -y)


def _gelu_exact(x):
    return 0.5 * x * (1.0 + _erf(x * (1.0 / math.sqrt(2.0))))


# ----------------------------------------------------------------------------
# Fused kernel: encoder layer + bidirectional LSTM + final linear.
# One grid step processes BLK sequences laid out flat, time-major:
#   row = t * BLK + b_local
# ----------------------------------------------------------------------------
def fused_kernel(emb_ref, bias_ref,
                 wq_ref, bq_ref, wk_ref, bk_ref, wv_ref, bv_ref,
                 wo_ref, bo_ref, ln1_ref,
                 w1_ref, b1_ref, w2_ref, b2_ref, ln2_ref,
                 wih_ref, blstm_ref, whh_ref,
                 lin_w_ref, lin_b_ref,
                 out_ref):
    TB, Dd = emb_ref.shape                       # flat slab, already time-major
    S = TB // BLK
    bf = jnp.bfloat16

    x = emb_ref[...]                             # (TB, D) f32
    xb = x.astype(bf)

    # ---------------- encoder: three 128-aligned projections ----------------
    q = jnp.dot(xb, wq_ref[...], preferred_element_type=jnp.float32) + bq_ref[...]
    k = jnp.dot(xb, wk_ref[...], preferred_element_type=jnp.float32) + bk_ref[...]
    v = jnp.dot(xb, wv_ref[...], preferred_element_type=jnp.float32) + bv_ref[...]

    # flat (TB, TB) scores; the block-diagonal + key-validity mask is an
    # additive bias built in the wrapper, so padded / cross-sequence pairs
    # never mix.
    scores = jax.lax.dot_general(q, k, (((1,), (1,)), ((), ())),
                                 preferred_element_type=jnp.float32)
    scores = scores * (1.0 / math.sqrt(Dd)) + bias_ref[...]
    scores = scores - jnp.max(scores, axis=-1, keepdims=True)
    p = jnp.exp(scores)
    p = p * pl.reciprocal(jnp.sum(p, axis=-1, keepdims=True), approx=True)

    attn = jnp.dot(p, v, preferred_element_type=jnp.float32)          # (TB, D)
    attn = jnp.dot(attn.astype(bf), wo_ref[...],
                   preferred_element_type=jnp.float32) + bo_ref[...]

    h = _layernorm(x + attn, ln1_ref[0:1, :], ln1_ref[1:2, :])

    ff = jnp.dot(h.astype(bf), w1_ref[...],
                 preferred_element_type=jnp.float32) + b1_ref[...]
    ff = _gelu_exact(ff)
    ff = jnp.dot(ff.astype(bf), w2_ref[...],
                 preferred_element_type=jnp.float32) + b2_ref[...]
    enc = _layernorm(h + ff, ln2_ref[0:1, :], ln2_ref[1:2, :])         # (TB, D)

    # ---------------- BiLSTM: input projection hoisted out of recurrence ----
    # One matmul covers x@W_ih (+ biases) for all timesteps and BOTH
    # directions: columns [0:4H) = fwd gates, [4H:8H) = bwd gates.
    xp = jnp.dot(enc.astype(bf), wih_ref[...],
                 preferred_element_type=jnp.float32) + blstm_ref[...]  # (TB, 8H)

    whh = whh_ref[...]                           # (2H, 8H) block-diagonal bf16

    def cell(gates, c):
        # PyTorch gate order: i, f, g, o
        i = jax.nn.sigmoid(gates[:, 0 * H:1 * H])
        f = jax.nn.sigmoid(gates[:, 1 * H:2 * H])
        g = jnp.tanh(gates[:, 2 * H:3 * H])
        o = jax.nn.sigmoid(gates[:, 3 * H:4 * H])
        c_new = f * c + i * g
        return o * jnp.tanh(c_new), c_new

    hc = jnp.zeros((BLK, 2 * H), jnp.float32)    # [h_fwd | h_bwd]
    c_f = jnp.zeros((BLK, H), jnp.float32)
    c_b = jnp.zeros((BLK, H), jnp.float32)
    hs_f = []
    hs_b_rev = []

    # Static unroll over S (fine at S=8).
    # TODO(synk): switch to lax.fori_loop + VMEM scratch for real S (~512).
    for t in range(S):
        tb = S - 1 - t
        # Single fused recurrent dot for both directions (block-diagonal W_hh).
        rec = jnp.dot(hc.astype(bf), whh, preferred_element_type=jnp.float32)  # (BLK, 8H)
        g_f = xp[t * BLK:(t + 1) * BLK, 0:4 * H] + rec[:, 0:4 * H]
        g_b = xp[tb * BLK:(tb + 1) * BLK, 4 * H:8 * H] + rec[:, 4 * H:8 * H]
        h_f, c_f = cell(g_f, c_f)
        h_b, c_b = cell(g_b, c_b)
        hc = jnp.concatenate([h_f, h_b], axis=1)
        hs_f.append(h_f)
        hs_b_rev.append(h_b)

    # One dense concat instead of 2*S masked partial scratch stores.
    fwd = jnp.concatenate(hs_f, axis=0)                      # (TB, H) time-major
    bwd = jnp.concatenate(hs_b_rev[::-1], axis=0)            # (TB, H) time-major
    hcat = jnp.concatenate([fwd, bwd], axis=1)               # (TB, 2H)

    # ---------------- final linear: lane-padded, one full-lane store --------
    logits = jnp.dot(hcat.astype(bf), lin_w_ref[...],
                     preferred_element_type=jnp.float32) + lin_b_ref[...]
    out_ref[...] = logits                                     # (TB, OUTW)


def _full_spec(arr):
    zeros = (0,) * arr.ndim

    def im(i):
        return zeros

    return pl.BlockSpec(arr.shape, im)


def fused_forward(emb_blk, bias, p):
    NB, TB, _ = emb_blk.shape
    weights = [p['wq'], p['bq'], p['wk'], p['bk'], p['wv'], p['bv'],
               p['wo'], p['bo'], p['ln1'],
               p['w1'], p['b1'], p['w2'], p['b2'], p['ln2'],
               p['wih'], p['b_lstm'], p['whh_blk'],
               p['lin_w'], p['lin_b']]
    return pl.pallas_call(
        fused_kernel,
        grid=(NB,),
        in_specs=[pl.BlockSpec((None, TB, D), lambda i: (i, 0, 0)),
                  pl.BlockSpec((None, TB, TB), lambda i: (i, 0, 0))]
                 + [_full_spec(w) for w in weights],
        out_specs=pl.BlockSpec((None, TB, OUTW), lambda i: (i, 0, 0)),
        out_shape=jax.ShapeDtypeStruct((NB, TB, OUTW), jnp.float32),
        compiler_params=pltpu.CompilerParams(
            dimension_semantics=("parallel",)),     # megacore across batch blocks (v7x)
    )(emb_blk, bias, *weights)


# ----------------------------------------------------------------------------
# Full forward (mirrors CommaModel.forward)
# ----------------------------------------------------------------------------
def comma_model_forward(x, attn_masks, params):
    if x.ndim == 1:                      # x = x.view(1, x.shape[0])
        x = x[None, :]
        attn_masks = attn_masks[None, :]
    B, S = x.shape

    NB = pl.cdiv(B, BLK)
    BPAD = NB * BLK
    pad = BPAD - B
    xP = jnp.pad(x, ((0, pad), (0, 0)))
    maskP = jnp.pad(attn_masks, ((0, pad), (0, 0))).astype(jnp.float32)

    # Embedding gather + flatten/transpose stay in plain JAX (free metadata /
    # tiny ops) so the kernel sees a lane/sublane-dense, time-major slab.
    emb = jnp.take(params['tok_emb'], xP, axis=0) + params['pos_emb'][None, :S, :]
    emb_blk = emb.reshape(NB, BLK, S, D).transpose(0, 2, 1, 3).reshape(NB, S * BLK, D)

    # Block-diagonal additive attention bias over the flat (S*BLK) axis:
    # attend only within the same sequence and only to valid (unmasked) keys.
    TB = S * BLK
    bidx = jnp.arange(TB) % BLK
    tidx = jnp.arange(TB) // BLK
    same = bidx[:, None] == bidx[None, :]
    maskB = maskP.reshape(NB, BLK, S)
    key_valid = maskB[:, bidx, tidx]                                  # (NB, TB)
    bias = jnp.where(same[None, :, :] & (key_valid[:, None, :] > 0.5),
                     0.0, -1e9).astype(jnp.float32)

    out = fused_forward(emb_blk, bias, params)                        # (NB, TB, OUTW)
    out = out.reshape(NB, S, BLK, OUTW).transpose(0, 2, 1, 3).reshape(BPAD, S, OUTW)
    return out[:B, :, :C]                                             # (B, S, C)


# ----------------------------------------------------------------------------
# Deterministic parameter init (synthetic; shapes follow the module __init__,
# but packed / padded / cast for the fused kernel).
# ----------------------------------------------------------------------------
def init_params(key, max_seq=16):
    ks = jax.random.split(key, 16)

    def nrm(k, shape, s=0.05):
        return jax.random.normal(k, shape, dtype=jnp.float32) * s

    bf = jnp.bfloat16
    p = {}
    # synthetic "pretrained transformer"
    p['tok_emb'] = nrm(ks[0], (V, D))
    p['pos_emb'] = nrm(ks[1], (max_seq, D))
    p['wq'] = nrm(ks[2], (D, D)).astype(bf)
    p['wk'] = nrm(ks[3], (D, D)).astype(bf)
    p['wv'] = nrm(ks[4], (D, D)).astype(bf)
    p['bq'] = jnp.zeros((1, D), jnp.float32)
    p['bk'] = jnp.zeros((1, D), jnp.float32)
    p['bv'] = jnp.zeros((1, D), jnp.float32)
    p['wo'] = nrm(ks[5], (D, D)).astype(bf)
    p['bo'] = jnp.zeros((1, D), jnp.float32)
    p['ln1'] = jnp.concatenate([jnp.ones((1, D), jnp.float32),
                                jnp.zeros((1, D), jnp.float32)], axis=0)   # [gamma; beta]
    p['w1'] = nrm(ks[6], (D, F)).astype(bf)
    p['b1'] = jnp.zeros((1, F), jnp.float32)
    p['w2'] = nrm(ks[7], (F, D)).astype(bf)
    p['b2'] = jnp.zeros((1, D), jnp.float32)
    p['ln2'] = jnp.concatenate([jnp.ones((1, D), jnp.float32),
                                jnp.zeros((1, D), jnp.float32)], axis=0)

    # BiLSTM (PyTorch: gates = x@W_ih.T + b_ih + h@W_hh.T + b_hh, order i,f,g,o)
    # wih packs [fwd 4H | bwd 4H]; b_lstm packs (b_ih + b_hh) for both dirs.
    p['wih'] = jnp.concatenate([nrm(ks[8], (D, 4 * H)),
                                nrm(ks[9], (D, 4 * H))], axis=1).astype(bf)
    p['b_lstm'] = jnp.concatenate([nrm(ks[10], (1, 4 * H)),
                                   nrm(ks[11], (1, 4 * H))], axis=1)
    # Block-diagonal recurrent weight: [h_f | h_b] @ whh_blk -> [fwd gates | bwd gates]
    whh_f = nrm(ks[12], (H, 4 * H))
    whh_b = nrm(ks[13], (H, 4 * H))
    whh_blk = jnp.zeros((2 * H, 8 * H), jnp.float32)
    whh_blk = whh_blk.at[0:H, 0:4 * H].set(whh_f)
    whh_blk = whh_blk.at[H:2 * H, 4 * H:8 * H].set(whh_b)
    p['whh_blk'] = whh_blk.astype(bf)

    # Linear(2H -> C): PyTorch W is (C, 2H); store transposed and lane-padded
    # to OUTW=128 so the output store is a full, unmasked vst.
    w_lin = nrm(ks[14], (C, 2 * H))
    lin_w = jnp.zeros((2 * H, OUTW), jnp.float32).at[:, :C].set(jnp.transpose(w_lin))
    p['lin_w'] = lin_w.astype(bf)
    p['lin_b'] = jnp.zeros((1, OUTW), jnp.float32)
    return p


if __name__ == "__main__":
    key = jax.random.PRNGKey(0)
    kp, kx = jax.random.split(key)
    params = init_params(kp, max_seq=16)

    B, S = 2, 8
    x = jax.random.randint(kx, (B, S), 0, V, dtype=jnp.int32)
    attn_masks = jnp.array([[1] * 8, [1] * 6 + [0] * 2], dtype=jnp.int32)

    fwd = jax.jit(lambda xx, mm: comma_model_forward(xx, mm, params))
    out = fwd(x, attn_masks)
    out = jax.block_until_ready(out)
    assert out.shape == (B, S, C), out.shape
    assert out.dtype == jnp.float32
    assert bool(jnp.all(jnp.isfinite(out)))
    print("KERNEL_OK")
</pallas_src>

<mosaic_0001>
module attributes {stable_mosaic.version = 11 : i64} {
  func.func @fused_kernel(%arg0: i32, %arg1: memref<1x64x32xf32, #tpu.memory_space<vmem>>, %arg2: memref<1x64x64xf32, #tpu.memory_space<vmem>>, %arg3: memref<32x32xbf16, #tpu.memory_space<vmem>>, %arg4: memref<1x32xf32, #tpu.memory_space<vmem>>, %arg5: memref<32x32xbf16, #tpu.memory_space<vmem>>, %arg6: memref<1x32xf32, #tpu.memory_space<vmem>>, %arg7: memref<32x32xbf16, #tpu.memory_space<vmem>>, %arg8: memref<1x32xf32, #tpu.memory_space<vmem>>, %arg9: memref<32x32xbf16, #tpu.memory_space<vmem>>, %arg10: memref<1x32xf32, #tpu.memory_space<vmem>>, %arg11: memref<2x32xf32, #tpu.memory_space<vmem>>, %arg12: memref<32x128xbf16, #tpu.memory_space<vmem>>, %arg13: memref<1x128xf32, #tpu.memory_space<vmem>>, %arg14: memref<128x32xbf16, #tpu.memory_space<vmem>>, %arg15: memref<1x32xf32, #tpu.memory_space<vmem>>, %arg16: memref<2x32xf32, #tpu.memory_space<vmem>>, %arg17: memref<32x256xbf16, #tpu.memory_space<vmem>>, %arg18: memref<1x256xf32, #tpu.memory_space<vmem>>, %arg19: memref<64x256xbf16, #tpu.memory_space<vmem>>, %arg20: memref<64x128xbf16, #tpu.memory_space<vmem>>, %arg21: memref<1x128xf32, #tpu.memory_space<vmem>>, %arg22: memref<1x64x128xf32, #tpu.memory_space<vmem>>) attributes {dimension_semantics = [#tpu.dimension_semantics<parallel>], iteration_bounds = array<i64: 1>, scalar_prefetch = 0 : i64, scratch_operands = 0 : i64, tpu.core_type = #tpu.core_type<tc>, window_params = [{transform_indices = @transform_0, window_bounds = array<i64: 1, 64, 32>}, {transform_indices = @transform_1, window_bounds = array<i64: 1, 64, 64>}, {pipeline_mode = #tpu.pipeline_mode<synchronous>, transform_indices = @transform_2, window_bounds = array<i64: 32, 32>}, {pipeline_mode = #tpu.pipeline_mode<synchronous>, transform_indices = @transform_3, window_bounds = array<i64: 1, 32>}, {pipeline_mode = #tpu.pipeline_mode<synchronous>, transform_indices = @transform_4, window_bounds = array<i64: 32, 32>}, {pipeline_mode = #tpu.pipeline_mode<synchronous>, transform_indices = @transform_5, window_bounds = array<i64: 1, 32>}, {pipeline_mode = #tpu.pipeline_mode<synchronous>, transform_indices = @transform_6, window_bounds = array<i64: 32, 32>}, {pipeline_mode = #tpu.pipeline_mode<synchronous>, transform_indices = @transform_7, window_bounds = array<i64: 1, 32>}, {pipeline_mode = #tpu.pipeline_mode<synchronous>, transform_indices = @transform_8, window_bounds = array<i64: 32, 32>}, {pipeline_mode = #tpu.pipeline_mode<synchronous>, transform_indices = @transform_9, window_bounds = array<i64: 1, 32>}, {pipeline_mode = #tpu.pipeline_mode<synchronous>, transform_indices = @transform_10, window_bounds = array<i64: 2, 32>}, {pipeline_mode = #tpu.pipeline_mode<synchronous>, transform_indices = @transform_11, window_bounds = array<i64: 32, 128>}, {pipeline_mode = #tpu.pipeline_mode<synchronous>, transform_indices = @transform_12, window_bounds = array<i64: 1, 128>}, {pipeline_mode = #tpu.pipeline_mode<synchronous>, transform_indices = @transform_13, window_bounds = array<i64: 128, 32>}, {pipeline_mode = #tpu.pipeline_mode<synchronous>, transform_indices = @transform_14, window_bounds = array<i64: 1, 32>}, {pipeline_mode = #tpu.pipeline_mode<synchronous>, transform_indices = @transform_15, window_bounds = array<i64: 2, 32>}, {pipeline_mode = #tpu.pipeline_mode<synchronous>, transform_indices = @transform_16, window_bounds = array<i64: 32, 256>}, {pipeline_mode = #tpu.pipeline_mode<synchronous>, transform_indices = @transform_17, window_bounds = array<i64: 1, 256>}, {pipeline_mode = #tpu.pipeline_mode<synchronous>, transform_indices = @transform_18, window_bounds = array<i64: 64, 256>}, {pipeline_mode = #tpu.pipeline_mode<synchronous>, transform_indices = @transform_19, window_bounds = array<i64: 64, 128>}, {pipeline_mode = #tpu.pipeline_mode<synchronous>, transform_indices = @transform_20, window_bounds = array<i64: 1, 128>}, {transform_indices = @transform_21, window_bounds = array<i64: 1, 64, 128>}]} {
    %c0 = arith.constant 0 : index
    %c0_0 = arith.constant 0 : index
    %c0_1 = arith.constant 0 : index
    %0 = vector.load %arg1[%c0, %c0_0, %c0_1] : memref<1x64x32xf32, #tpu.memory_space<vmem>>, vector<1x64x32xf32>
    %1 = vector.shape_cast %0 : vector<1x64x32xf32> to vector<64x32xf32>
    %2 = arith.truncf %1 : vector<64x32xf32> to vector<64x32xbf16>
    %c0_2 = arith.constant 0 : index
    %c0_3 = arith.constant 0 : index
    %3 = vector.load %arg3[%c0_2, %c0_3] : memref<32x32xbf16, #tpu.memory_space<vmem>>, vector<32x32xbf16>
    %cst = arith.constant dense<0.000000e+00> : vector<64x32xf32>
    %4 = tpu.matmul %2, %3, %cst {dimension_numbers = #tpu.dot_dimension_numbers<[1], [0], [0], [1], [0, 0, 1, 1], [], []>} : vector<64x32xbf16>, vector<32x32xbf16>, vector<64x32xf32> -> vector<64x32xf32>
    %c0_4 = arith.constant 0 : index
    %c0_5 = arith.constant 0 : index
    %5 = vector.load %arg4[%c0_4, %c0_5] : memref<1x32xf32, #tpu.memory_space<vmem>>, vector<1x32xf32>
    %6 = vector.broadcast %5 : vector<1x32xf32> to vector<64x32xf32>
    %7 = arith.addf %4, %6 : vector<64x32xf32>
    %c0_6 = arith.constant 0 : index
    %c0_7 = arith.constant 0 : index
    %8 = vector.load %arg5[%c0_6, %c0_7] : memref<32x32xbf16, #tpu.memory_space<vmem>>, vector<32x32xbf16>
    %cst_8 = arith.constant dense<0.000000e+00> : vector<64x32xf32>
    %9 = tpu.matmul %2, %8, %cst_8 {dimension_numbers = #tpu.dot_dimension_numbers<[1], [0], [0], [1], [0, 0, 1, 1], [], []>} : vector<64x32xbf16>, vector<32x32xbf16>, vector<64x32xf32> -> vector<64x32xf32>
    %c0_9 = arith.constant 0 : index
    %c0_10 = arith.constant 0 : index
    %10 = vector.load %arg6[%c0_9, %c0_10] : memref<1x32xf32, #tpu.memory_space<vmem>>, vector<1x32xf32>
    %11 = vector.broadcast %10 : vector<1x32xf32> to vector<64x32xf32>
    %12 = arith.addf %9, %11 : vector<64x32xf32>
    %c0_11 = arith.constant 0 : index
    %c0_12 = arith.constant 0 : index
    %13 = vector.load %arg7[%c0_11, %c0_12] : memref<32x32xbf16, #tpu.memory_space<vmem>>, vector<32x32xbf16>
    %cst_13 = arith.constant dense<0.000000e+00> : vector<64x32xf32>
    %14 = tpu.matmul %2, %13, %cst_13 {dimension_numbers = #tpu.dot_dimension_numbers<[1], [0], [0], [1], [0, 0, 1, 1], [], []>} : vector<64x32xbf16>, vector<32x32xbf16>, vector<64x32xf32> -> vector<64x32xf32>
    %c0_14 = arith.constant 0 : index
    %c0_15 = arith.constant 0 : index
    %15 = vector.load %arg8[%c0_14, %c0_15] : memref<1x32xf32, #tpu.memory_space<vmem>>, vector<1x32xf32>
    %16 = vector.broadcast %15 : vector<1x32xf32> to vector<64x32xf32>
    %17 = arith.addf %14, %16 : vector<64x32xf32>
    %cst_16 = arith.constant dense<0.000000e+00> : vector<64x64xf32>
    %18 = tpu.matmul %7, %12, %cst_16 {dimension_numbers = #tpu.dot_dimension_numbers<[1], [1], [0], [0], [0, 0, 1, 0], [], []>} : vector<64x32xf32>, vector<64x32xf32>, vector<64x64xf32> -> vector<64x64xf32>
    %cst_17 = arith.constant 0.176776692 : f32
    %19 = vector.broadcast %cst_17 : f32 to vector<64x64xf32>
    %20 = arith.mulf %18, %19 : vector<64x64xf32>
    %c0_18 = arith.constant 0 : index
    %c0_19 = arith.constant 0 : index
    %c0_20 = arith.constant 0 : index
    %21 = vector.load %arg2[%c0_18, %c0_19, %c0_20] : memref<1x64x64xf32, #tpu.memory_space<vmem>>, vector<1x64x64xf32>
    %22 = vector.shape_cast %21 : vector<1x64x64xf32> to vector<64x64xf32>
    %23 = arith.addf %20, %22 : vector<64x64xf32>
    %cst_21 = arith.constant dense<0xFF800000> : vector<64xf32>
    %24 = vector.multi_reduction <maximumf>, %23, %cst_21 [1] : vector<64x64xf32> to vector<64xf32>
    %25 = vector.shape_cast %24 : vector<64xf32> to vector<64x1xf32>
    %26 = vector.broadcast %25 : vector<64x1xf32> to vector<64x64xf32>
    %27 = arith.subf %23, %26 : vector<64x64xf32>
    %28 = math.exp %27 : vector<64x64xf32>
    %cst_22 = arith.constant dense<0.000000e+00> : vector<64xf32>
    %29 = vector.multi_reduction <add>, %28, %cst_22 [1] : vector<64x64xf32> to vector<64xf32>
    %30 = vector.shape_cast %29 : vector<64xf32> to vector<64x1xf32>
    %31 = tpu.reciprocal %30 {approx = true} : vector<64x1xf32> -> vector<64x1xf32>
    %32 = vector.broadcast %31 : vector<64x1xf32> to vector<64x64xf32>
    %33 = arith.mulf %28, %32 : vector<64x64xf32>
    %cst_23 = arith.constant dense<0.000000e+00> : vector<64x32xf32>
    %34 = tpu.matmul %33, %17, %cst_23 {dimension_numbers = #tpu.dot_dimension_numbers<[1], [0], [0], [1], [0, 0, 1, 1], [], []>} : vector<64x64xf32>, vector<64x32xf32>, vector<64x32xf32> -> vector<64x32xf32>
    %35 = arith.truncf %34 : vector<64x32xf32> to vector<64x32xbf16>
    %c0_24 = arith.constant 0 : index
    %c0_25 = arith.constant 0 : index
    %36 = vector.load %arg9[%c0_24, %c0_25] : memref<32x32xbf16, #tpu.memory_space<vmem>>, vector<32x32xbf16>
    %cst_26 = arith.constant dense<0.000000e+00> : vector<64x32xf32>
    %37 = tpu.matmul %35, %36, %cst_26 {dimension_numbers = #tpu.dot_dimension_numbers<[1], [0], [0], [1], [0, 0, 1, 1], [], []>} : vector<64x32xbf16>, vector<32x32xbf16>, vector<64x32xf32> -> vector<64x32xf32>
    %c0_27 = arith.constant 0 : index
    %c0_28 = arith.constant 0 : index
    %38 = vector.load %arg10[%c0_27, %c0_28] : memref<1x32xf32, #tpu.memory_space<vmem>>, vector<1x32xf32>
    %39 = vector.broadcast %38 : vector<1x32xf32> to vector<64x32xf32>
    %40 = arith.addf %37, %39 : vector<64x32xf32>
    %41 = arith.addf %1, %40 : vector<64x32xf32>
    %c0_29 = arith.constant 0 : index
    %c0_30 = arith.constant 0 : index
    %42 = vector.load %arg11[%c0_29, %c0_30] : memref<2x32xf32, #tpu.memory_space<vmem>>, vector<1x32xf32>
    %c1 = arith.constant 1 : index
    %c0_31 = arith.constant 0 : index
    %43 = vector.load %arg11[%c1, %c0_31] : memref<2x32xf32, #tpu.memory_space<vmem>>, vector<1x32xf32>
    %cst_32 = arith.constant dense<0.000000e+00> : vector<64xf32>
    %44 = vector.multi_reduction <add>, %41, %cst_32 [1] : vector<64x32xf32> to vector<64xf32>
    %45 = vector.shape_cast %44 : vector<64xf32> to vector<64x1xf32>
    %cst_33 = arith.constant 3.200000e+01 : f32
    %46 = vector.broadcast %cst_33 : f32 to vector<64x1xf32>
    %47 = arith.divf %45, %46 : vector<64x1xf32>
    %48 = vector.broadcast %47 : vector<64x1xf32> to vector<64x32xf32>
    %49 = arith.subf %41, %48 : vector<64x32xf32>
    %50 = arith.mulf %49, %49 : vector<64x32xf32>
    %cst_34 = arith.constant dense<0.000000e+00> : vector<64xf32>
    %51 = vector.multi_reduction <add>, %50, %cst_34 [1] : vector<64x32xf32> to vector<64xf32>
    %52 = vector.shape_cast %51 : vector<64xf32> to vector<64x1xf32>
    %cst_35 = arith.constant 3.200000e+01 : f32
    %53 = vector.broadcast %cst_35 : f32 to vector<64x1xf32>
    %54 = arith.divf %52, %53 : vector<64x1xf32>
    %55 = vector.broadcast %47 : vector<64x1xf32> to vector<64x32xf32>
    %56 = arith.subf %41, %55 : vector<64x32xf32>
    %cst_36 = arith.constant 9.99999996E-13 : f32
    %57 = vector.broadcast %cst_36 : f32 to vector<64x1xf32>
    %58 = arith.addf %54, %57 : vector<64x1xf32>
    %59 = math.rsqrt %58 : vector<64x1xf32>
    %60 = vector.broadcast %59 : vector<64x1xf32> to vector<64x32xf32>
    %61 = arith.mulf %56, %60 : vector<64x32xf32>
    %62 = vector.broadcast %42 : vector<1x32xf32> to vector<64x32xf32>
    %63 = arith.mulf %61, %62 : vector<64x32xf32>
    %64 = vector.broadcast %43 : vector<1x32xf32> to vector<64x32xf32>
    %65 = arith.addf %63, %64 : vector<64x32xf32>
    %66 = arith.truncf %65 : vector<64x32xf32> to vector<64x32xbf16>
    %c0_37 = arith.constant 0 : index
    %c0_38 = arith.constant 0 : index
    %67 = vector.load %arg12[%c0_37, %c0_38] : memref<32x128xbf16, #tpu.memory_space<vmem>>, vector<32x128xbf16>
    %cst_39 = arith.constant dense<0.000000e+00> : vector<64x128xf32>
    %68 = tpu.matmul %66, %67, %cst_39 {dimension_numbers = #tpu.dot_dimension_numbers<[1], [0], [0], [1], [0, 0, 1, 1], [], []>} : vector<64x32xbf16>, vector<32x128xbf16>, vector<64x128xf32> -> vector<64x128xf32>
    %c0_40 = arith.constant 0 : index
    %c0_41 = arith.constant 0 : index
    %69 = vector.load %arg13[%c0_40, %c0_41] : memref<1x128xf32, #tpu.memory_space<vmem>>, vector<1x128xf32>
    %70 = vector.broadcast %69 : vector<1x128xf32> to vector<64x128xf32>
    %71 = arith.addf %68, %70 : vector<64x128xf32>
    %cst_42 = arith.constant 5.000000e-01 : f32
    %72 = vector.broadcast %cst_42 : f32 to vector<64x128xf32>
    %73 = arith.mulf %72, %71 : vector<64x128xf32>
    %cst_43 = arith.constant 0.707106769 : f32
    %74 = vector.broadcast %cst_43 : f32 to vector<64x128xf32>
    %75 = arith.mulf %71, %74 : vector<64x128xf32>
    %76 = math.absf %75 : vector<64x128xf32>
    %cst_44 = arith.constant 0.327591091 : f32
    %77 = vector.broadcast %cst_44 : f32 to vector<64x128xf32>
    %78 = arith.mulf %77, %76 : vector<64x128xf32>
    %cst_45 = arith.constant 1.000000e+00 : f32
    %79 = vector.broadcast %cst_45 : f32 to vector<64x128xf32>
    %80 = arith.addf %79, %78 : vector<64x128xf32>
    %cst_46 = arith.constant 1.000000e+00 : f32
    %81 = vector.broadcast %cst_46 : f32 to vector<64x128xf32>
    %82 = arith.divf %81, %80 : vector<64x128xf32>
    %cst_47 = arith.constant 1.06140542 : f32
    %83 = vector.broadcast %cst_47 : f32 to vector<64x128xf32>
    %84 = arith.mulf %83, %82 : vector<64x128xf32>
    %cst_48 = arith.constant -1.45315206 : f32
    %85 = vector.broadcast %cst_48 : f32 to vector<64x128xf32>
    %86 = arith.addf %84, %85 : vector<64x128xf32>
    %87 = arith.mulf %86, %82 : vector<64x128xf32>
    %cst_49 = arith.constant 1.42141378 : f32
    %88 = vector.broadcast %cst_49 : f32 to vector<64x128xf32>
    %89 = arith.addf %87, %88 : vector<64x128xf32>
    %90 = arith.mulf %89, %82 : vector<64x128xf32>
    %cst_50 = arith.constant -0.284496725 : f32
    %91 = vector.broadcast %cst_50 : f32 to vector<64x128xf32>
    %92 = arith.addf %90, %91 : vector<64x128xf32>
    %93 = arith.mulf %92, %82 : vector<64x128xf32>
    %cst_51 = arith.constant 0.254829586 : f32
    %94 = vector.broadcast %cst_51 : f32 to vector<64x128xf32>
    %95 = arith.addf %93, %94 : vector<64x128xf32>
    %96 = arith.mulf %95, %82 : vector<64x128xf32>
    %cst_52 = arith.constant 0.000000e+00 : f32
    %97 = vector.broadcast %cst_52 : f32 to vector<64x128xf32>
    %98 = arith.subf %97, %76 : vector<64x128xf32>
    %99 = arith.mulf %98, %76 : vector<64x128xf32>
    %100 = math.exp %99 : vector<64x128xf32>
    %101 = arith.mulf %96, %100 : vector<64x128xf32>
    %cst_53 = arith.constant 1.000000e+00 : f32
    %102 = vector.broadcast %cst_53 : f32 to vector<64x128xf32>
    %103 = arith.subf %102, %101 : vector<64x128xf32>
    %cst_54 = arith.constant 0.000000e+00 : f32
    %104 = vector.broadcast %cst_54 : f32 to vector<64x128xf32>
    %105 = arith.cmpf oge, %75, %104 : vector<64x128xf32>
    %cst_55 = arith.constant 0.000000e+00 : f32
    %106 = vector.broadcast %cst_55 : f32 to vector<64x128xf32>
    %107 = arith.subf %106, %103 : vector<64x128xf32>
    %108 = arith.select %105, %103, %107 : vector<64x128xi1>, vector<64x128xf32>
    %cst_56 = arith.constant 1.000000e+00 : f32
    %109 = vector.broadcast %cst_56 : f32 to vector<64x128xf32>
    %110 = arith.addf %109, %108 : vector<64x128xf32>
    %111 = arith.mulf %73, %110 : vector<64x128xf32>
    %112 = arith.truncf %111 : vector<64x128xf32> to vector<64x128xbf16>
    %c0_57 = arith.constant 0 : index
    %c0_58 = arith.constant 0 : index
    %113 = vector.load %arg14[%c0_57, %c0_58] : memref<128x32xbf16, #tpu.memory_space<vmem>>, vector<128x32xbf16>
    %cst_59 = arith.constant dense<0.000000e+00> : vector<64x32xf32>
    %114 = tpu.matmul %112, %113, %cst_59 {dimension_numbers = #tpu.dot_dimension_numbers<[1], [0], [0], [1], [0, 0, 1, 1], [], []>} : vector<64x128xbf16>, vector<128x32xbf16>, vector<64x32xf32> -> vector<64x32xf32>
    %c0_60 = arith.constant 0 : index
    %c0_61 = arith.constant 0 : index
    %115 = vector.load %arg15[%c0_60, %c0_61] : memref<1x32xf32, #tpu.memory_space<vmem>>, vector<1x32xf32>
    %116 = vector.broadcast %115 : vector<1x32xf32> to vector<64x32xf32>
    %117 = arith.addf %114, %116 : vector<64x32xf32>
    %118 = arith.addf %65, %117 : vector<64x32xf32>
    %c0_62 = arith.constant 0 : index
    %c0_63 = arith.constant 0 : index
    %119 = vector.load %arg16[%c0_62, %c0_63] : memref<2x32xf32, #tpu.memory_space<vmem>>, vector<1x32xf32>
    %c1_64 = arith.constant 1 : index
    %c0_65 = arith.constant 0 : index
    %120 = vector.load %arg16[%c1_64, %c0_65] : memref<2x32xf32, #tpu.memory_space<vmem>>, vector<1x32xf32>
    %cst_66 = arith.constant dense<0.000000e+00> : vector<64xf32>
    %121 = vector.multi_reduction <add>, %118, %cst_66 [1] : vector<64x32xf32> to vector<64xf32>
    %122 = vector.shape_cast %121 : vector<64xf32> to vector<64x1xf32>
    %cst_67 = arith.constant 3.200000e+01 : f32
    %123 = vector.broadcast %cst_67 : f32 to vector<64x1xf32>
    %124 = arith.divf %122, %123 : vector<64x1xf32>
    %125 = vector.broadcast %124 : vector<64x1xf32> to vector<64x32xf32>
    %126 = arith.subf %118, %125 : vector<64x32xf32>
    %127 = arith.mulf %126, %126 : vector<64x32xf32>
    %cst_68 = arith.constant dense<0.000000e+00> : vector<64xf32>
    %128 = vector.multi_reduction <add>, %127, %cst_68 [1] : vector<64x32xf32> to vector<64xf32>
    %129 = vector.shape_cast %128 : vector<64xf32> to vector<64x1xf32>
    %cst_69 = arith.constant 3.200000e+01 : f32
    %130 = vector.broadcast %cst_69 : f32 to vector<64x1xf32>
    %131 = arith.divf %129, %130 : vector<64x1xf32>
    %132 = vector.broadcast %124 : vector<64x1xf32> to vector<64x32xf32>
    %133 = arith.subf %118, %132 : vector<64x32xf32>
    %cst_70 = arith.constant 9.99999996E-13 : f32
    %134 = vector.broadcast %cst_70 : f32 to vector<64x1xf32>
    %135 = arith.addf %131, %134 : vector<64x1xf32>
    %136 = math.rsqrt %135 : vector<64x1xf32>
    %137 = vector.broadcast %136 : vector<64x1xf32> to vector<64x32xf32>
    %138 = arith.mulf %133, %137 : vector<64x32xf32>
    %139 = vector.broadcast %119 : vector<1x32xf32> to vector<64x32xf32>
    %140 = arith.mulf %138, %139 : vector<64x32xf32>
    %141 = vector.broadcast %120 : vector<1x32xf32> to vector<64x32xf32>
    %142 = arith.addf %140, %141 : vector<64x32xf32>
    %143 = arith.truncf %142 : vector<64x32xf32> to vector<64x32xbf16>
    %c0_71 = arith.constant 0 : index
    %c0_72 = arith.constant 0 : index
    %144 = vector.load %arg17[%c0_71, %c0_72] : memref<32x256xbf16, #tpu.memory_space<vmem>>, vector<32x256xbf16>
    %cst_73 = arith.constant dense<0.000000e+00> : vector<64x256xf32>
    %145 = tpu.matmul %143, %144, %cst_73 {dimension_numbers = #tpu.dot_dimension_numbers<[1], [0], [0], [1], [0, 0, 1, 1], [], []>} : vector<64x32xbf16>, vector<32x256xbf16>, vector<64x256xf32> -> vector<64x256xf32>
    %c0_74 = arith.constant 0 : index
    %c0_75 = arith.constant 0 : index
    %146 = vector.load %arg18[%c0_74, %c0_75] : memref<1x256xf32, #tpu.memory_space<vmem>>, vector<1x256xf32>
    %147 = vector.broadcast %146 : vector<1x256xf32> to vector<64x256xf32>
    %148 = arith.addf %145, %147 : vector<64x256xf32>
    %c0_76 = arith.constant 0 : index
    %c0_77 = arith.constant 0 : index
    %149 = vector.load %arg19[%c0_76, %c0_77] : memref<64x256xbf16, #tpu.memory_space<vmem>>, vector<64x256xbf16>
    %cst_78 = arith.constant 0.000000e+00 : f32
    %150 = vector.broadcast %cst_78 : f32 to vector<8x64xf32>
    %cst_79 = arith.constant 0.000000e+00 : f32
    %151 = vector.broadcast %cst_79 : f32 to vector<8x32xf32>
    %cst_80 = arith.constant 0.000000e+00 : f32
    %152 = vector.broadcast %cst_80 : f32 to vector<8x32xf32>
    %153 = arith.truncf %150 : vector<8x64xf32> to vector<8x64xbf16>
    %cst_81 = arith.constant dense<0.000000e+00> : vector<8x256xf32>
    %154 = tpu.matmul %153, %149, %cst_81 {dimension_numbers = #tpu.dot_dimension_numbers<[1], [0], [0], [1], [0, 0, 1, 1], [], []>} : vector<8x64xbf16>, vector<64x256xbf16>, vector<8x256xf32> -> vector<8x256xf32>
    %155 = vector.extract_strided_slice %148 {offsets = [0, 0], sizes = [8, 128], strides = [1, 1]} : vector<64x256xf32> to vector<8x128xf32>
    %156 = vector.extract_strided_slice %154 {offsets = [0, 0], sizes = [8, 128], strides = [1, 1]} : vector<8x256xf32> to vector<8x128xf32>
    %157 = arith.addf %155, %156 : vector<8x128xf32>
    %158 = vector.extract_strided_slice %148 {offsets = [56, 128], sizes = [8, 128], strides = [1, 1]} : vector<64x256xf32> to vector<8x128xf32>
    %159 = vector.extract_strided_slice %154 {offsets = [0, 128], sizes = [8, 128], strides = [1, 1]} : vector<8x256xf32> to vector<8x128xf32>
    %160 = arith.addf %158, %159 : vector<8x128xf32>
    %161 = vector.extract_strided_slice %157 {offsets = [0, 0], sizes = [8, 32], strides = [1, 1]} : vector<8x128xf32> to vector<8x32xf32>
    %162 = arith.negf %161 : vector<8x32xf32>
    %163 = math.exp %162 : vector<8x32xf32>
    %cst_82 = arith.constant 1.000000e+00 : f32
    %164 = vector.broadcast %cst_82 : f32 to vector<8x32xf32>
    %165 = arith.addf %164, %163 : vector<8x32xf32>
    %166 = arith.divf %164, %165 : vector<8x32xf32>
    %167 = vector.extract_strided_slice %157 {offsets = [0, 32], sizes = [8, 32], strides = [1, 1]} : vector<8x128xf32> to vector<8x32xf32>
    %168 = arith.negf %167 : vector<8x32xf32>
    %169 = math.exp %168 : vector<8x32xf32>
    %cst_83 = arith.constant 1.000000e+00 : f32
    %170 = vector.broadcast %cst_83 : f32 to vector<8x32xf32>
    %171 = arith.addf %170, %169 : vector<8x32xf32>
    %172 = arith.divf %170, %171 : vector<8x32xf32>
    %173 = vector.extract_strided_slice %157 {offsets = [0, 64], sizes = [8, 32], strides = [1, 1]} : vector<8x128xf32> to vector<8x32xf32>
    %174 = math.tanh %173 : vector<8x32xf32>
    %175 = vector.extract_strided_slice %157 {offsets = [0, 96], sizes = [8, 32], strides = [1, 1]} : vector<8x128xf32> to vector<8x32xf32>
    %176 = arith.negf %175 : vector<8x32xf32>
    %177 = math.exp %176 : vector<8x32xf32>
    %cst_84 = arith.constant 1.000000e+00 : f32
    %178 = vector.broadcast %cst_84 : f32 to vector<8x32xf32>
    %179 = arith.addf %178, %177 : vector<8x32xf32>
    %180 = arith.divf %178, %179 : vector<8x32xf32>
    %181 = arith.mulf %172, %151 : vector<8x32xf32>
    %182 = arith.mulf %166, %174 : vector<8x32xf32>
    %183 = arith.addf %181, %182 : vector<8x32xf32>
    %184 = math.tanh %183 : vector<8x32xf32>
    %185 = arith.mulf %180, %184 : vector<8x32xf32>
    %186 = vector.extract_strided_slice %160 {offsets = [0, 0], sizes = [8, 32], strides = [1, 1]} : vector<8x128xf32> to vector<8x32xf32>
    %187 = arith.negf %186 : vector<8x32xf32>
    %188 = math.exp %187 : vector<8x32xf32>
    %cst_85 = arith.constant 1.000000e+00 : f32
    %189 = vector.broadcast %cst_85 : f32 to vector<8x32xf32>
    %190 = arith.addf %189, %188 : vector<8x32xf32>
    %191 = arith.divf %189, %190 : vector<8x32xf32>
    %192 = vector.extract_strided_slice %160 {offsets = [0, 32], sizes = [8, 32], strides = [1, 1]} : vector<8x128xf32> to vector<8x32xf32>
    %193 = arith.negf %192 : vector<8x32xf32>
    %194 = math.exp %193 : vector<8x32xf32>
    %cst_86 = arith.constant 1.000000e+00 : f32
    %195 = vector.broadcast %cst_86 : f32 to vector<8x32xf32>
    %196 = arith.addf %195, %194 : vector<8x32xf32>
    %197 = arith.divf %195, %196 : vector<8x32xf32>
    %198 = vector.extract_strided_slice %160 {offsets = [0, 64], sizes = [8, 32], strides = [1, 1]} : vector<8x128xf32> to vector<8x32xf32>
    %199 = math.tanh %198 : vector<8x32xf32>
    %200 = vector.extract_strided_slice %160 {offsets = [0, 96], sizes = [8, 32], strides = [1, 1]} : vector<8x128xf32> to vector<8x32xf32>
    %201 = arith.negf %200 : vector<8x32xf32>
    %202 = math.exp %201 : vector<8x32xf32>
    %cst_87 = arith.constant 1.000000e+00 : f32
    %203 = vector.broadcast %cst_87 : f32 to vector<8x32xf32>
    %204 = arith.addf %203, %202 : vector<8x32xf32>
    %205 = arith.divf %203, %204 : vector<8x32xf32>
    %206 = arith.mulf %197, %152 : vector<8x32xf32>
    %207 = arith.mulf %191, %199 : vector<8x32xf32>
    %208 = arith.addf %206, %207 : vector<8x32xf32>
    %209 = math.tanh %208 : vector<8x32xf32>
    %210 = arith.mulf %205, %209 : vector<8x32xf32>
    %211 = tpu.concatenate %185, %210 in 1 : vector<8x32xf32>, vector<8x32xf32> -> vector<8x64xf32>
    %212 = arith.truncf %211 : vector<8x64xf32> to vector<8x64xbf16>
    %cst_88 = arith.constant dense<0.000000e+00> : vector<8x256xf32>
    %213 = tpu.matmul %212, %149, %cst_88 {dimension_numbers = #tpu.dot_dimension_numbers<[1], [0], [0], [1], [0, 0, 1, 1], [], []>} : vector<8x64xbf16>, vector<64x256xbf16>, vector<8x256xf32> -> vector<8x256xf32>
    %214 = vector.extract_strided_slice %148 {offsets = [8, 0], sizes = [8, 128], strides = [1, 1]} : vector<64x256xf32> to vector<8x128xf32>
    %215 = vector.extract_strided_slice %213 {offsets = [0, 0], sizes = [8, 128], strides = [1, 1]} : vector<8x256xf32> to vector<8x128xf32>
    %216 = arith.addf %214, %215 : vector<8x128xf32>
    %217 = vector.extract_strided_slice %148 {offsets = [48, 128], sizes = [8, 128], strides = [1, 1]} : vector<64x256xf32> to vector<8x128xf32>
    %218 = vector.extract_strided_slice %213 {offsets = [0, 128], sizes = [8, 128], strides = [1, 1]} : vector<8x256xf32> to vector<8x128xf32>
    %219 = arith.addf %217, %218 : vector<8x128xf32>
    %220 = vector.extract_strided_slice %216 {offsets = [0, 0], sizes = [8, 32], strides = [1, 1]} : vector<8x128xf32> to vector<8x32xf32>
    %221 = arith.negf %220 : vector<8x32xf32>
    %222 = math.exp %221 : vector<8x32xf32>
    %cst_89 = arith.constant 1.000000e+00 : f32
    %223 = vector.broadcast %cst_89 : f32 to vector<8x32xf32>
    %224 = arith.addf %223, %222 : vector<8x32xf32>
    %225 = arith.divf %223, %224 : vector<8x32xf32>
    %226 = vector.extract_strided_slice %216 {offsets = [0, 32], sizes = [8, 32], strides = [1, 1]} : vector<8x128xf32> to vector<8x32xf32>
    %227 = arith.negf %226 : vector<8x32xf32>
    %228 = math.exp %227 : vector<8x32xf32>
    %cst_90 = arith.constant 1.000000e+00 : f32
    %229 = vector.broadcast %cst_90 : f32 to vector<8x32xf32>
    %230 = arith.addf %229, %228 : vector<8x32xf32>
    %231 = arith.divf %229, %230 : vector<8x32xf32>
    %232 = vector.extract_strided_slice %216 {offsets = [0, 64], sizes = [8, 32], strides = [1, 1]} : vector<8x128xf32> to vector<8x32xf32>
    %233 = math.tanh %232 : vector<8x32xf32>
    %234 = vector.extract_strided_slice %216 {offsets = [0, 96], sizes = [8, 32], strides = [1, 1]} : vector<8x128xf32> to vector<8x32xf32>
    %235 = arith.negf %234 : vector<8x32xf32>
    %236 = math.exp %235 : vector<8x32xf32>
    %cst_91 = arith.constant 1.000000e+00 : f32
    %237 = vector.broadcast %cst_91 : f32 to vector<8x32xf32>
    %238 = arith.addf %237, %236 : vector<8x32xf32>
    %239 = arith.divf %237, %238 : vector<8x32xf32>
    %240 = arith.mulf %231, %183 : vector<8x32xf32>
    %241 = arith.mulf %225, %233 : vector<8x32xf32>
    %242 = arith.addf %240, %241 : vector<8x32xf32>
    %243 = math.tanh %242 : vector<8x32xf32>
    %244 = arith.mulf %239, %243 : vector<8x32xf32>
    %245 = vector.extract_strided_slice %219 {offsets = [0, 0], sizes = [8, 32], strides = [1, 1]} : vector<8x128xf32> to vector<8x32xf32>
    %246 = arith.negf %245 : vector<8x32xf32>
    %247 = math.exp %246 : vector<8x32xf32>
    %cst_92 = arith.constant 1.000000e+00 : f32
    %248 = vector.broadcast %cst_92 : f32 to vector<8x32xf32>
    %249 = arith.addf %248, %247 : vector<8x32xf32>
    %250 = arith.divf %248, %249 : vector<8x32xf32>
    %251 = vector.extract_strided_slice %219 {offsets = [0, 32], sizes = [8, 32], strides = [1, 1]} : vector<8x128xf32> to vector<8x32xf32>
    %252 = arith.negf %251 : vector<8x32xf32>
    %253 = math.exp %252 : vector<8x32xf32>
    %cst_93 = arith.constant 1.000000e+00 : f32
    %254 = vector.broadcast %cst_93 : f32 to vector<8x32xf32>
    %255 = arith.addf %254, %253 : vector<8x32xf32>
    %256 = arith.divf %254, %255 : vector<8x32xf32>
    %257 = vector.extract_strided_slice %219 {offsets = [0, 64], sizes = [8, 32], strides = [1, 1]} : vector<8x128xf32> to vector<8x32xf32>
    %258 = math.tanh %257 : vector<8x32xf32>
    %259 = vector.extract_strided_slice %219 {offsets = [0, 96], sizes = [8, 32], strides = [1, 1]} : vector<8x128xf32> to vector<8x32xf32>
    %260 = arith.negf %259 : vector<8x32xf32>
    %261 = math.exp %260 : vector<8x32xf32>
    %cst_94 = arith.constant 1.000000e+00 : f32
    %262 = vector.broadcast %cst_94 : f32 to vector<8x32xf32>
    %263 = arith.addf %262, %261 : vector<8x32xf32>
    %264 = arith.divf %262, %263 : vector<8x32xf32>
    %265 = arith.mulf %256, %208 : vector<8x32xf32>
    %266 = arith.mulf %250, %258 : vector<8x32xf32>
    %267 = arith.addf %265, %266 : vector<8x32xf32>
    %268 = math.tanh %267 : vector<8x32xf32>
    %269 = arith.mulf %264, %268 : vector<8x32xf32>
    %270 = tpu.concatenate %244, %269 in 1 : vector<8x32xf32>, vector<8x32xf32> -> vector<8x64xf32>
    %271 = arith.truncf %270 : vector<8x64xf32> to vector<8x64xbf16>
    %cst_95 = arith.constant dense<0.000000e+00> : vector<8x256xf32>
    %272 = tpu.matmul %271, %149, %cst_95 {dimension_numbers = #tpu.dot_dimension_numbers<[1], [0], [0], [1], [0, 0, 1, 1], [], []>} : vector<8x64xbf16>, vector<64x256xbf16>, vector<8x256xf32> -> vector<8x256xf32>
    %273 = vector.extract_strided_slice %148 {offsets = [16, 0], sizes = [8, 128], strides = [1, 1]} : vector<64x256xf32> to vector<8x128xf32>
    %274 = vector.extract_strided_slice %272 {offsets = [0, 0], sizes = [8, 128], strides = [1, 1]} : vector<8x256xf32> to vector<8x128xf32>
    %275 = arith.addf %273, %274 : vector<8x128xf32>
    %276 = vector.extract_strided_slice %148 {offsets = [40, 128], sizes = [8, 128], strides = [1, 1]} : vector<64x256xf32> to vector<8x128xf32>
    %277 = vector.extract_strided_slice %272 {offsets = [0, 128], sizes = [8, 128], strides = [1, 1]} : vector<8x256xf32> to vector<8x128xf32>
    %278 = arith.addf %276, %277 : vector<8x128xf32>
    %279 = vector.extract_strided_slice %275 {offsets = [0, 0], sizes = [8, 32], strides = [1, 1]} : vector<8x128xf32> to vector<8x32xf32>
    %280 = arith.negf %279 : vector<8x32xf32>
    %281 = math.exp %280 : vector<8x32xf32>
    %cst_96 = arith.constant 1.000000e+00 : f32
    %282 = vector.broadcast %cst_96 : f32 to vector<8x32xf32>
    %283 = arith.addf %282, %281 : vector<8x32xf32>
    %284 = arith.divf %282, %283 : vector<8x32xf32>
    %285 = vector.extract_strided_slice %275 {offsets = [0, 32], sizes = [8, 32], strides = [1, 1]} : vector<8x128xf32> to vector<8x32xf32>
    %286 = arith.negf %285 : vector<8x32xf32>
    %287 = math.exp %286 : vector<8x32xf32>
    %cst_97 = arith.constant 1.000000e+00 : f32
    %288 = vector.broadcast %cst_97 : f32 to vector<8x32xf32>
    %289 = arith.addf %288, %287 : vector<8x32xf32>
    %290 = arith.divf %288, %289 : vector<8x32xf32>
    %291 = vector.extract_strided_slice %275 {offsets = [0, 64], sizes = [8, 32], strides = [1, 1]} : vector<8x128xf32> to vector<8x32xf32>
    %292 = math.tanh %291 : vector<8x32xf32>
    %293 = vector.extract_strided_slice %275 {offsets = [0, 96], sizes = [8, 32], strides = [1, 1]} : vector<8x128xf32> to vector<8x32xf32>
    %294 = arith.negf %293 : vector<8x32xf32>
    %295 = math.exp %294 : vector<8x32xf32>
    %cst_98 = arith.constant 1.000000e+00 : f32
    %296 = vector.broadcast %cst_98 : f32 to vector<8x32xf32>
    %297 = arith.addf %296, %295 : vector<8x32xf32>
    %298 = arith.divf %296, %297 : vector<8x32xf32>
    %299 = arith.mulf %290, %242 : vector<8x32xf32>
    %300 = arith.mulf %284, %292 : vector<8x32xf32>
    %301 = arith.addf %299, %300 : vector<8x32xf32>
    %302 = math.tanh %301 : vector<8x32xf32>
    %303 = arith.mulf %298, %302 : vector<8x32xf32>
    %304 = vector.extract_strided_slice %278 {offsets = [0, 0], sizes = [8, 32], strides = [1, 1]} : vector<8x128xf32> to vector<8x32xf32>
    %305 = arith.negf %304 : vector<8x32xf32>
    %306 = math.exp %305 : vector<8x32xf32>
    %cst_99 = arith.constant 1.000000e+00 : f32
    %307 = vector.broadcast %cst_99 : f32 to vector<8x32xf32>
    %308 = arith.addf %307, %306 : vector<8x32xf32>
    %309 = arith.divf %307, %308 : vector<8x32xf32>
    %310 = vector.extract_strided_slice %278 {offsets = [0, 32], sizes = [8, 32], strides = [1, 1]} : vector<8x128xf32> to vector<8x32xf32>
    %311 = arith.negf %310 : vector<8x32xf32>
    %312 = math.exp %311 : vector<8x32xf32>
    %cst_100 = arith.constant 1.000000e+00 : f32
    %313 = vector.broadcast %cst_100 : f32 to vector<8x32xf32>
    %314 = arith.addf %313, %312 : vector<8x32xf32>
    %315 = arith.divf %313, %314 : vector<8x32xf32>
    %316 = vector.extract_strided_slice %278 {offsets = [0, 64], sizes = [8, 32], strides = [1, 1]} : vector<8x128xf32> to vector<8x32xf32>
    %317 = math.tanh %316 : vector<8x32xf32>
    %318 = vector.extract_strided_slice %278 {offsets = [0, 96], sizes = [8, 32], strides = [1, 1]} : vector<8x128xf32> to vector<8x32xf32>
    %319 = arith.negf %318 : vector<8x32xf32>
    %320 = math.exp %319 : vector<8x32xf32>
    %cst_101 = arith.constant 1.000000e+00 : f32
    %321 = vector.broadcast %cst_101 : f32 to vector<8x32xf32>
    %322 = arith.addf %321, %320 : vector<8x32xf32>
    %323 = arith.divf %321, %322 : vector<8x32xf32>
    %324 = arith.mulf %315, %267 : vector<8x32xf32>
    %325 = arith.mulf %309, %317 : vector<8x32xf32>
    %326 = arith.addf %324, %325 : vector<8x32xf32>
    %327 = math.tanh %326 : vector<8x32xf32>
    %328 = arith.mulf %323, %327 : vector<8x32xf32>
    %329 = tpu.concatenate %303, %328 in 1 : vector<8x32xf32>, vector<8x32xf32> -> vector<8x64xf32>
    %330 = arith.truncf %329 : vector<8x64xf32> to vector<8x64xbf16>
    %cst_102 = arith.constant dense<0.000000e+00> : vector<8x256xf32>
    %331 = tpu.matmul %330, %149, %cst_102 {dimension_numbers = #tpu.dot_dimension_numbers<[1], [0], [0], [1], [0, 0, 1, 1], [], []>} : vector<8x64xbf16>, vector<64x256xbf16>, vector<8x256xf32> -> vector<8x256xf32>
    %332 = vector.extract_strided_slice %148 {offsets = [24, 0], sizes = [8, 128], strides = [1, 1]} : vector<64x256xf32> to vector<8x128xf32>
    %333 = vector.extract_strided_slice %331 {offsets = [0, 0], sizes = [8, 128], strides = [1, 1]} : vector<8x256xf32> to vector<8x128xf32>
    %334 = arith.addf %332, %333 : vector<8x128xf32>
    %335 = vector.extract_strided_slice %148 {offsets = [32, 128], sizes = [8, 128], strides = [1, 1]} : vector<64x256xf32> to vector<8x128xf32>
    %336 = vector.extract_strided_slice %331 {offsets = [0, 128], sizes = [8, 128], strides = [1, 1]} : vector<8x256xf32> to vector<8x128xf32>
    %337 = arith.addf %335, %336 : vector<8x128xf32>
    %338 = vector.extract_strided_slice %334 {offsets = [0, 0], sizes = [8, 32], strides = [1, 1]} : vector<8x128xf32> to vector<8x32xf32>
    %339 = arith.negf %338 : vector<8x32xf32>
    %340 = math.exp %339 : vector<8x32xf32>
    %cst_103 = arith.constant 1.000000e+00 : f32
    %341 = vector.broadcast %cst_103 : f32 to vector<8x32xf32>
    %342 = arith.addf %341, %340 : vector<8x32xf32>
    %343 = arith.divf %341, %342 : vector<8x32xf32>
    %344 = vector.extract_strided_slice %334 {offsets = [0, 32], sizes = [8, 32], strides = [1, 1]} : vector<8x128xf32> to vector<8x32xf32>
    %345 = arith.negf %344 : vector<8x32xf32>
    %346 = math.exp %345 : vector<8x32xf32>
    %cst_104 = arith.constant 1.000000e+00 : f32
    %347 = vector.broadcast %cst_104 : f32 to vector<8x32xf32>
    %348 = arith.addf %347, %346 : vector<8x32xf32>
    %349 = arith.divf %347, %348 : vector<8x32xf32>
    %350 = vector.extract_strided_slice %334 {offsets = [0, 64], sizes = [8, 32], strides = [1, 1]} : vector<8x128xf32> to vector<8x32xf32>
    %351 = math.tanh %350 : vector<8x32xf32>
    %352 = vector.extract_strided_slice %334 {offsets = [0, 96], sizes = [8, 32], strides = [1, 1]} : vector<8x128xf32> to vector<8x32xf32>
    %353 = arith.negf %352 : vector<8x32xf32>
    %354 = math.exp %353 : vector<8x32xf32>
    %cst_105 = arith.constant 1.000000e+00 : f32
    %355 = vector.broadcast %cst_105 : f32 to vector<8x32xf32>
    %356 = arith.addf %355, %354 : vector<8x32xf32>
    %357 = arith.divf %355, %356 : vector<8x32xf32>
    %358 = arith.mulf %349, %301 : vector<8x32xf32>
    %359 = arith.mulf %343, %351 : vector<8x32xf32>
    %360 = arith.addf %358, %359 : vector<8x32xf32>
    %361 = math.tanh %360 : vector<8x32xf32>
    %362 = arith.mulf %357, %361 : vector<8x32xf32>
    %363 = vector.extract_strided_slice %337 {offsets = [0, 0], sizes = [8, 32], strides = [1, 1]} : vector<8x128xf32> to vector<8x32xf32>
    %364 = arith.negf %363 : vector<8x32xf32>
    %365 = math.exp %364 : vector<8x32xf32>
    %cst_106 = arith.constant 1.000000e+00 : f32
    %366 = vector.broadcast %cst_106 : f32 to vector<8x32xf32>
    %367 = arith.addf %366, %365 : vector<8x32xf32>
    %368 = arith.divf %366, %367 : vector<8x32xf32>
    %369 = vector.extract_strided_slice %337 {offsets = [0, 32], sizes = [8, 32], strides = [1, 1]} : vector<8x128xf32> to vector<8x32xf32>
    %370 = arith.negf %369 : vector<8x32xf32>
    %371 = math.exp %370 : vector<8x32xf32>
    %cst_107 = arith.constant 1.000000e+00 : f32
    %372 = vector.broadcast %cst_107 : f32 to vector<8x32xf32>
    %373 = arith.addf %372, %371 : vector<8x32xf32>
    %374 = arith.divf %372, %373 : vector<8x32xf32>
    %375 = vector.extract_strided_slice %337 {offsets = [0, 64], sizes = [8, 32], strides = [1, 1]} : vector<8x128xf32> to vector<8x32xf32>
    %376 = math.tanh %375 : vector<8x32xf32>
    %377 = vector.extract_strided_slice %337 {offsets = [0, 96], sizes = [8, 32], strides = [1, 1]} : vector<8x128xf32> to vector<8x32xf32>
    %378 = arith.negf %377 : vector<8x32xf32>
    %379 = math.exp %378 : vector<8x32xf32>
    %cst_108 = arith.constant 1.000000e+00 : f32
    %380 = vector.broadcast %cst_108 : f32 to vector<8x32xf32>
    %381 = arith.addf %380, %379 : vector<8x32xf32>
    %382 = arith.divf %380, %381 : vector<8x32xf32>
    %383 = arith.mulf %374, %326 : vector<8x32xf32>
    %384 = arith.mulf %368, %376 : vector<8x32xf32>
    %385 = arith.addf %383, %384 : vector<8x32xf32>
    %386 = math.tanh %385 : vector<8x32xf32>
    %387 = arith.mulf %382, %386 : vector<8x32xf32>
    %388 = tpu.concatenate %362, %387 in 1 : vector<8x32xf32>, vector<8x32xf32> -> vector<8x64xf32>
    %389 = arith.truncf %388 : vector<8x64xf32> to vector<8x64xbf16>
    %cst_109 = arith.constant dense<0.000000e+00> : vector<8x256xf32>
    %390 = tpu.matmul %389, %149, %cst_109 {dimension_numbers = #tpu.dot_dimension_numbers<[1], [0], [0], [1], [0, 0, 1, 1], [], []>} : vector<8x64xbf16>, vector<64x256xbf16>, vector<8x256xf32> -> vector<8x256xf32>
    %391 = vector.extract_strided_slice %148 {offsets = [32, 0], sizes = [8, 128], strides = [1, 1]} : vector<64x256xf32> to vector<8x128xf32>
    %392 = vector.extract_strided_slice %390 {offsets = [0, 0], sizes = [8, 128], strides = [1, 1]} : vector<8x256xf32> to vector<8x128xf32>
    %393 = arith.addf %391, %392 : vector<8x128xf32>
    %394 = vector.extract_strided_slice %148 {offsets = [24, 128], sizes = [8, 128], strides = [1, 1]} : vector<64x256xf32> to vector<8x128xf32>
    %395 = vector.extract_strided_slice %390 {offsets = [0, 128], sizes = [8, 128], strides = [1, 1]} : vector<8x256xf32> to vector<8x128xf32>
    %396 = arith.addf %394, %395 : vector<8x128xf32>
    %397 = vector.extract_strided_slice %393 {offsets = [0, 0], sizes = [8, 32], strides = [1, 1]} : vector<8x128xf32> to vector<8x32xf32>
    %398 = arith.negf %397 : vector<8x32xf32>
    %399 = math.exp %398 : vector<8x32xf32>
    %cst_110 = arith.constant 1.000000e+00 : f32
    %400 = vector.broadcast %cst_110 : f32 to vector<8x32xf32>
    %401 = arith.addf %400, %399 : vector<8x32xf32>
    %402 = arith.divf %400, %401 : vector<8x32xf32>
    %403 = vector.extract_strided_slice %393 {offsets = [0, 32], sizes = [8, 32], strides = [1, 1]} : vector<8x128xf32> to vector<8x32xf32>
    %404 = arith.negf %403 : vector<8x32xf32>
    %405 = math.exp %404 : vector<8x32xf32>
    %cst_111 = arith.constant 1.000000e+00 : f32
    %406 = vector.broadcast %cst_111 : f32 to vector<8x32xf32>
    %407 = arith.addf %406, %405 : vector<8x32xf32>
    %408 = arith.divf %406, %407 : vector<8x32xf32>
    %409 = vector.extract_strided_slice %393 {offsets = [0, 64], sizes = [8, 32], strides = [1, 1]} : vector<8x128xf32> to vector<8x32xf32>
    %410 = math.tanh %409 : vector<8x32xf32>
    %411 = vector.extract_strided_slice %393 {offsets = [0, 96], sizes = [8, 32], strides = [1, 1]} : vector<8x128xf32> to vector<8x32xf32>
    %412 = arith.negf %411 : vector<8x32xf32>
    %413 = math.exp %412 : vector<8x32xf32>
    %cst_112 = arith.constant 1.000000e+00 : f32
    %414 = vector.broadcast %cst_112 : f32 to vector<8x32xf32>
    %415 = arith.addf %414, %413 : vector<8x32xf32>
    %416 = arith.divf %414, %415 : vector<8x32xf32>
    %417 = arith.mulf %408, %360 : vector<8x32xf32>
    %418 = arith.mulf %402, %410 : vector<8x32xf32>
    %419 = arith.addf %417, %418 : vector<8x32xf32>
    %420 = math.tanh %419 : vector<8x32xf32>
    %421 = arith.mulf %416, %420 : vector<8x32xf32>
    %422 = vector.extract_strided_slice %396 {offsets = [0, 0], sizes = [8, 32], strides = [1, 1]} : vector<8x128xf32> to vector<8x32xf32>
    %423 = arith.negf %422 : vector<8x32xf32>
    %424 = math.exp %423 : vector<8x32xf32>
    %cst_113 = arith.constant 1.000000e+00 : f32
    %425 = vector.broadcast %cst_113 : f32 to vector<8x32xf32>
    %426 = arith.addf %425, %424 : vector<8x32xf32>
    %427 = arith.divf %425, %426 : vector<8x32xf32>
    %428 = vector.extract_strided_slice %396 {offsets = [0, 32], sizes = [8, 32], strides = [1, 1]} : vector<8x128xf32> to vector<8x32xf32>
    %429 = arith.negf %428 : vector<8x32xf32>
    %430 = math.exp %429 : vector<8x32xf32>
    %cst_114 = arith.constant 1.000000e+00 : f32
    %431 = vector.broadcast %cst_114 : f32 to vector<8x32xf32>
    %432 = arith.addf %431, %430 : vector<8x32xf32>
    %433 = arith.divf %431, %432 : vector<8x32xf32>
    %434 = vector.extract_strided_slice %396 {offsets = [0, 64], sizes = [8, 32], strides = [1, 1]} : vector<8x128xf32> to vector<8x32xf32>
    %435 = math.tanh %434 : vector<8x32xf32>
    %436 = vector.extract_strided_slice %396 {offsets = [0, 96], sizes = [8, 32], strides = [1, 1]} : vector<8x128xf32> to vector<8x32xf32>
    %437 = arith.negf %436 : vector<8x32xf32>
    %438 = math.exp %437 : vector<8x32xf32>
    %cst_115 = arith.constant 1.000000e+00 : f32
    %439 = vector.broadcast %cst_115 : f32 to vector<8x32xf32>
    %440 = arith.addf %439, %438 : vector<8x32xf32>
    %441 = arith.divf %439, %440 : vector<8x32xf32>
    %442 = arith.mulf %433, %385 : vector<8x32xf32>
    %443 = arith.mulf %427, %435 : vector<8x32xf32>
    %444 = arith.addf %442, %443 : vector<8x32xf32>
    %445 = math.tanh %444 : vector<8x32xf32>
    %446 = arith.mulf %441, %445 : vector<8x32xf32>
    %447 = tpu.concatenate %421, %446 in 1 : vector<8x32xf32>, vector<8x32xf32> -> vector<8x64xf32>
    %448 = arith.truncf %447 : vector<8x64xf32> to vector<8x64xbf16>
    %cst_116 = arith.constant dense<0.000000e+00> : vector<8x256xf32>
    %449 = tpu.matmul %448, %149, %cst_116 {dimension_numbers = #tpu.dot_dimension_numbers<[1], [0], [0], [1], [0, 0, 1, 1], [], []>} : vector<8x64xbf16>, vector<64x256xbf16>, vector<8x256xf32> -> vector<8x256xf32>
    %450 = vector.extract_strided_slice %148 {offsets = [40, 0], sizes = [8, 128], strides = [1, 1]} : vector<64x256xf32> to vector<8x128xf32>
    %451 = vector.extract_strided_slice %449 {offsets = [0, 0], sizes = [8, 128], strides = [1, 1]} : vector<8x256xf32> to vector<8x128xf32>
    %452 = arith.addf %450, %451 : vector<8x128xf32>
    %453 = vector.extract_strided_slice %148 {offsets = [16, 128], sizes = [8, 128], strides = [1, 1]} : vector<64x256xf32> to vector<8x128xf32>
    %454 = vector.extract_strided_slice %449 {offsets = [0, 128], sizes = [8, 128], strides = [1, 1]} : vector<8x256xf32> to vector<8x128xf32>
    %455 = arith.addf %453, %454 : vector<8x128xf32>
    %456 = vector.extract_strided_slice %452 {offsets = [0, 0], sizes = [8, 32], strides = [1, 1]} : vector<8x128xf32> to vector<8x32xf32>
    %457 = arith.negf %456 : vector<8x32xf32>
    %458 = math.exp %457 : vector<8x32xf32>
    %cst_117 = arith.constant 1.000000e+00 : f32
    %459 = vector.broadcast %cst_117 : f32 to vector<8x32xf32>
    %460 = arith.addf %459, %458 : vector<8x32xf32>
    %461 = arith.divf %459, %460 : vector<8x32xf32>
    %462 = vector.extract_strided_slice %452 {offsets = [0, 32], sizes = [8, 32], strides = [1, 1]} : vector<8x128xf32> to vector<8x32xf32>
    %463 = arith.negf %462 : vector<8x32xf32>
    %464 = math.exp %463 : vector<8x32xf32>
    %cst_118 = arith.constant 1.000000e+00 : f32
    %465 = vector.broadcast %cst_118 : f32 to vector<8x32xf32>
    %466 = arith.addf %465, %464 : vector<8x32xf32>
    %467 = arith.divf %465, %466 : vector<8x32xf32>
    %468 = vector.extract_strided_slice %452 {offsets = [0, 64], sizes = [8, 32], strides = [1, 1]} : vector<8x128xf32> to vector<8x32xf32>
    %469 = math.tanh %468 : vector<8x32xf32>
    %470 = vector.extract_strided_slice %452 {offsets = [0, 96], sizes = [8, 32], strides = [1, 1]} : vector<8x128xf32> to vector<8x32xf32>
    %471 = arith.negf %470 : vector<8x32xf32>
    %472 = math.exp %471 : vector<8x32xf32>
    %cst_119 = arith.constant 1.000000e+00 : f32
    %473 = vector.broadcast %cst_119 : f32 to vector<8x32xf32>
    %474 = arith.addf %473, %472 : vector<8x32xf32>
    %475 = arith.divf %473, %474 : vector<8x32xf32>
    %476 = arith.mulf %467, %419 : vector<8x32xf32>
    %477 = arith.mulf %461, %469 : vector<8x32xf32>
    %478 = arith.addf %476, %477 : vector<8x32xf32>
    %479 = math.tanh %478 : vector<8x32xf32>
    %480 = arith.mulf %475, %479 : vector<8x32xf32>
    %481 = vector.extract_strided_slice %455 {offsets = [0, 0], sizes = [8, 32], strides = [1, 1]} : vector<8x128xf32> to vector<8x32xf32>
    %482 = arith.negf %481 : vector<8x32xf32>
    %483 = math.exp %482 : vector<8x32xf32>
    %cst_120 = arith.constant 1.000000e+00 : f32
    %484 = vector.broadcast %cst_120 : f32 to vector<8x32xf32>
    %485 = arith.addf %484, %483 : vector<8x32xf32>
    %486 = arith.divf %484, %485 : vector<8x32xf32>
    %487 = vector.extract_strided_slice %455 {offsets = [0, 32], sizes = [8, 32], strides = [1, 1]} : vector<8x128xf32> to vector<8x32xf32>
    %488 = arith.negf %487 : vector<8x32xf32>
    %489 = math.exp %488 : vector<8x32xf32>
    %cst_121 = arith.constant 1.000000e+00 : f32
    %490 = vector.broadcast %cst_121 : f32 to vector<8x32xf32>
    %491 = arith.addf %490, %489 : vector<8x32xf32>
    %492 = arith.divf %490, %491 : vector<8x32xf32>
    %493 = vector.extract_strided_slice %455 {offsets = [0, 64], sizes = [8, 32], strides = [1, 1]} : vector<8x128xf32> to vector<8x32xf32>
    %494 = math.tanh %493 : vector<8x32xf32>
    %495 = vector.extract_strided_slice %455 {offsets = [0, 96], sizes = [8, 32], strides = [1, 1]} : vector<8x128xf32> to vector<8x32xf32>
    %496 = arith.negf %495 : vector<8x32xf32>
    %497 = math.exp %496 : vector<8x32xf32>
    %cst_122 = arith.constant 1.000000e+00 : f32
    %498 = vector.broadcast %cst_122 : f32 to vector<8x32xf32>
    %499 = arith.addf %498, %497 : vector<8x32xf32>
    %500 = arith.divf %498, %499 : vector<8x32xf32>
    %501 = arith.mulf %492, %444 : vector<8x32xf32>
    %502 = arith.mulf %486, %494 : vector<8x32xf32>
    %503 = arith.addf %501, %502 : vector<8x32xf32>
    %504 = math.tanh %503 : vector<8x32xf32>
    %505 = arith.mulf %500, %504 : vector<8x32xf32>
    %506 = tpu.concatenate %480, %505 in 1 : vector<8x32xf32>, vector<8x32xf32> -> vector<8x64xf32>
    %507 = arith.truncf %506 : vector<8x64xf32> to vector<8x64xbf16>
    %cst_123 = arith.constant dense<0.000000e+00> : vector<8x256xf32>
    %508 = tpu.matmul %507, %149, %cst_123 {dimension_numbers = #tpu.dot_dimension_numbers<[1], [0], [0], [1], [0, 0, 1, 1], [], []>} : vector<8x64xbf16>, vector<64x256xbf16>, vector<8x256xf32> -> vector<8x256xf32>
    %509 = vector.extract_strided_slice %148 {offsets = [48, 0], sizes = [8, 128], strides = [1, 1]} : vector<64x256xf32> to vector<8x128xf32>
    %510 = vector.extract_strided_slice %508 {offsets = [0, 0], sizes = [8, 128], strides = [1, 1]} : vector<8x256xf32> to vector<8x128xf32>
    %511 = arith.addf %509, %510 : vector<8x128xf32>
    %512 = vector.extract_strided_slice %148 {offsets = [8, 128], sizes = [8, 128], strides = [1, 1]} : vector<64x256xf32> to vector<8x128xf32>
    %513 = vector.extract_strided_slice %508 {offsets = [0, 128], sizes = [8, 128], strides = [1, 1]} : vector<8x256xf32> to vector<8x128xf32>
    %514 = arith.addf %512, %513 : vector<8x128xf32>
    %515 = vector.extract_strided_slice %511 {offsets = [0, 0], sizes = [8, 32], strides = [1, 1]} : vector<8x128xf32> to vector<8x32xf32>
    %516 = arith.negf %515 : vector<8x32xf32>
    %517 = math.exp %516 : vector<8x32xf32>
    %cst_124 = arith.constant 1.000000e+00 : f32
    %518 = vector.broadcast %cst_124 : f32 to vector<8x32xf32>
    %519 = arith.addf %518, %517 : vector<8x32xf32>
    %520 = arith.divf %518, %519 : vector<8x32xf32>
    %521 = vector.extract_strided_slice %511 {offsets = [0, 32], sizes = [8, 32], strides = [1, 1]} : vector<8x128xf32> to vector<8x32xf32>
    %522 = arith.negf %521 : vector<8x32xf32>
    %523 = math.exp %522 : vector<8x32xf32>
    %cst_125 = arith.constant 1.000000e+00 : f32
    %524 = vector.broadcast %cst_125 : f32 to vector<8x32xf32>
    %525 = arith.addf %524, %523 : vector<8x32xf32>
    %526 = arith.divf %524, %525 : vector<8x32xf32>
    %527 = vector.extract_strided_slice %511 {offsets = [0, 64], sizes = [8, 32], strides = [1, 1]} : vector<8x128xf32> to vector<8x32xf32>
    %528 = math.tanh %527 : vector<8x32xf32>
    %529 = vector.extract_strided_slice %511 {offsets = [0, 96], sizes = [8, 32], strides = [1, 1]} : vector<8x128xf32> to vector<8x32xf32>
    %530 = arith.negf %529 : vector<8x32xf32>
    %531 = math.exp %530 : vector<8x32xf32>
    %cst_126 = arith.constant 1.000000e+00 : f32
    %532 = vector.broadcast %cst_126 : f32 to vector<8x32xf32>
    %533 = arith.addf %532, %531 : vector<8x32xf32>
    %534 = arith.divf %532, %533 : vector<8x32xf32>
    %535 = arith.mulf %526, %478 : vector<8x32xf32>
    %536 = arith.mulf %520, %528 : vector<8x32xf32>
    %537 = arith.addf %535, %536 : vector<8x32xf32>
    %538 = math.tanh %537 : vector<8x32xf32>
    %539 = arith.mulf %534, %538 : vector<8x32xf32>
    %540 = vector.extract_strided_slice %514 {offsets = [0, 0], sizes = [8, 32], strides = [1, 1]} : vector<8x128xf32> to vector<8x32xf32>
    %541 = arith.negf %540 : vector<8x32xf32>
    %542 = math.exp %541 : vector<8x32xf32>
    %cst_127 = arith.constant 1.000000e+00 : f32
    %543 = vector.broadcast %cst_127 : f32 to vector<8x32xf32>
    %544 = arith.addf %543, %542 : vector<8x32xf32>
    %545 = arith.divf %543, %544 : vector<8x32xf32>
    %546 = vector.extract_strided_slice %514 {offsets = [0, 32], sizes = [8, 32], strides = [1, 1]} : vector<8x128xf32> to vector<8x32xf32>
    %547 = arith.negf %546 : vector<8x32xf32>
    %548 = math.exp %547 : vector<8x32xf32>
    %cst_128 = arith.constant 1.000000e+00 : f32
    %549 = vector.broadcast %cst_128 : f32 to vector<8x32xf32>
    %550 = arith.addf %549, %548 : vector<8x32xf32>
    %551 = arith.divf %549, %550 : vector<8x32xf32>
    %552 = vector.extract_strided_slice %514 {offsets = [0, 64], sizes = [8, 32], strides = [1, 1]} : vector<8x128xf32> to vector<8x32xf32>
    %553 = math.tanh %552 : vector<8x32xf32>
    %554 = vector.extract_strided_slice %514 {offsets = [0, 96], sizes = [8, 32], strides = [1, 1]} : vector<8x128xf32> to vector<8x32xf32>
    %555 = arith.negf %554 : vector<8x32xf32>
    %556 = math.exp %555 : vector<8x32xf32>
    %cst_129 = arith.constant 1.000000e+00 : f32
    %557 = vector.broadcast %cst_129 : f32 to vector<8x32xf32>
    %558 = arith.addf %557, %556 : vector<8x32xf32>
    %559 = arith.divf %557, %558 : vector<8x32xf32>
    %560 = arith.mulf %551, %503 : vector<8x32xf32>
    %561 = arith.mulf %545, %553 : vector<8x32xf32>
    %562 = arith.addf %560, %561 : vector<8x32xf32>
    %563 = math.tanh %562 : vector<8x32xf32>
    %564 = arith.mulf %559, %563 : vector<8x32xf32>
    %565 = tpu.concatenate %539, %564 in 1 : vector<8x32xf32>, vector<8x32xf32> -> vector<8x64xf32>
    %566 = arith.truncf %565 : vector<8x64xf32> to vector<8x64xbf16>
    %cst_130 = arith.constant dense<0.000000e+00> : vector<8x256xf32>
    %567 = tpu.matmul %566, %149, %cst_130 {dimension_numbers = #tpu.dot_dimension_numbers<[1], [0], [0], [1], [0, 0, 1, 1], [], []>} : vector<8x64xbf16>, vector<64x256xbf16>, vector<8x256xf32> -> vector<8x256xf32>
    %568 = vector.extract_strided_slice %148 {offsets = [56, 0], sizes = [8, 128], strides = [1, 1]} : vector<64x256xf32> to vector<8x128xf32>
    %569 = vector.extract_strided_slice %567 {offsets = [0, 0], sizes = [8, 128], strides = [1, 1]} : vector<8x256xf32> to vector<8x128xf32>
    %570 = arith.addf %568, %569 : vector<8x128xf32>
    %571 = vector.extract_strided_slice %148 {offsets = [0, 128], sizes = [8, 128], strides = [1, 1]} : vector<64x256xf32> to vector<8x128xf32>
    %572 = vector.extract_strided_slice %567 {offsets = [0, 128], sizes = [8, 128], strides = [1, 1]} : vector<8x256xf32> to vector<8x128xf32>
    %573 = arith.addf %571, %572 : vector<8x128xf32>
    %574 = vector.extract_strided_slice %570 {offsets = [0, 0], sizes = [8, 32], strides = [1, 1]} : vector<8x128xf32> to vector<8x32xf32>
    %575 = arith.negf %574 : vector<8x32xf32>
    %576 = math.exp %575 : vector<8x32xf32>
    %cst_131 = arith.constant 1.000000e+00 : f32
    %577 = vector.broadcast %cst_131 : f32 to vector<8x32xf32>
    %578 = arith.addf %577, %576 : vector<8x32xf32>
    %579 = arith.divf %577, %578 : vector<8x32xf32>
    %580 = vector.extract_strided_slice %570 {offsets = [0, 32], sizes = [8, 32], strides = [1, 1]} : vector<8x128xf32> to vector<8x32xf32>
    %581 = arith.negf %580 : vector<8x32xf32>
    %582 = math.exp %581 : vector<8x32xf32>
    %cst_132 = arith.constant 1.000000e+00 : f32
    %583 = vector.broadcast %cst_132 : f32 to vector<8x32xf32>
    %584 = arith.addf %583, %582 : vector<8x32xf32>
    %585 = arith.divf %583, %584 : vector<8x32xf32>
    %586 = vector.extract_strided_slice %570 {offsets = [0, 64], sizes = [8, 32], strides = [1, 1]} : vector<8x128xf32> to vector<8x32xf32>
    %587 = math.tanh %586 : vector<8x32xf32>
    %588 = vector.extract_strided_slice %570 {offsets = [0, 96], sizes = [8, 32], strides = [1, 1]} : vector<8x128xf32> to vector<8x32xf32>
    %589 = arith.negf %588 : vector<8x32xf32>
    %590 = math.exp %589 : vector<8x32xf32>
    %cst_133 = arith.constant 1.000000e+00 : f32
    %591 = vector.broadcast %cst_133 : f32 to vector<8x32xf32>
    %592 = arith.addf %591, %590 : vector<8x32xf32>
    %593 = arith.divf %591, %592 : vector<8x32xf32>
    %594 = arith.mulf %585, %537 : vector<8x32xf32>
    %595 = arith.mulf %579, %587 : vector<8x32xf32>
    %596 = arith.addf %594, %595 : vector<8x32xf32>
    %597 = math.tanh %596 : vector<8x32xf32>
    %598 = arith.mulf %593, %597 : vector<8x32xf32>
    %599 = vector.extract_strided_slice %573 {offsets = [0, 0], sizes = [8, 32], strides = [1, 1]} : vector<8x128xf32> to vector<8x32xf32>
    %600 = arith.negf %599 : vector<8x32xf32>
    %601 = math.exp %600 : vector<8x32xf32>
    %cst_134 = arith.constant 1.000000e+00 : f32
    %602 = vector.broadcast %cst_134 : f32 to vector<8x32xf32>
    %603 = arith.addf %602, %601 : vector<8x32xf32>
    %604 = arith.divf %602, %603 : vector<8x32xf32>
    %605 = vector.extract_strided_slice %573 {offsets = [0, 32], sizes = [8, 32], strides = [1, 1]} : vector<8x128xf32> to vector<8x32xf32>
    %606 = arith.negf %605 : vector<8x32xf32>
    %607 = math.exp %606 : vector<8x32xf32>
    %cst_135 = arith.constant 1.000000e+00 : f32
    %608 = vector.broadcast %cst_135 : f32 to vector<8x32xf32>
    %609 = arith.addf %608, %607 : vector<8x32xf32>
    %610 = arith.divf %608, %609 : vector<8x32xf32>
    %611 = vector.extract_strided_slice %573 {offsets = [0, 64], sizes = [8, 32], strides = [1, 1]} : vector<8x128xf32> to vector<8x32xf32>
    %612 = math.tanh %611 : vector<8x32xf32>
    %613 = vector.extract_strided_slice %573 {offsets = [0, 96], sizes = [8, 32], strides = [1, 1]} : vector<8x128xf32> to vector<8x32xf32>
    %614 = arith.negf %613 : vector<8x32xf32>
    %615 = math.exp %614 : vector<8x32xf32>
    %cst_136 = arith.constant 1.000000e+00 : f32
    %616 = vector.broadcast %cst_136 : f32 to vector<8x32xf32>
    %617 = arith.addf %616, %615 : vector<8x32xf32>
    %618 = arith.divf %616, %617 : vector<8x32xf32>
    %619 = arith.mulf %610, %562 : vector<8x32xf32>
    %620 = arith.mulf %604, %612 : vector<8x32xf32>
    %621 = arith.addf %619, %620 : vector<8x32xf32>
    %622 = math.tanh %621 : vector<8x32xf32>
    %623 = arith.mulf %618, %622 : vector<8x32xf32>
    %624 = tpu.concatenate %185, %244, %303, %362, %421, %480, %539, %598 in 0 : vector<8x32xf32>, vector<8x32xf32>, vector<8x32xf32>, vector<8x32xf32>, vector<8x32xf32>, vector<8x32xf32>, vector<8x32xf32>, vector<8x32xf32> -> vector<64x32xf32>
    %625 = tpu.concatenate %623, %564, %505, %446, %387, %328, %269, %210 in 0 : vector<8x32xf32>, vector<8x32xf32>, vector<8x32xf32>, vector<8x32xf32>, vector<8x32xf32>, vector<8x32xf32>, vector<8x32xf32>, vector<8x32xf32> -> vector<64x32xf32>
    %626 = tpu.concatenate %624, %625 in 1 : vector<64x32xf32>, vector<64x32xf32> -> vector<64x64xf32>
    %627 = arith.truncf %626 : vector<64x64xf32> to vector<64x64xbf16>
    %c0_137 = arith.constant 0 : index
    %c0_138 = arith.constant 0 : index
    %628 = vector.load %arg20[%c0_137, %c0_138] : memref<64x128xbf16, #tpu.memory_space<vmem>>, vector<64x128xbf16>
    %cst_139 = arith.constant dense<0.000000e+00> : vector<64x128xf32>
    %629 = tpu.matmul %627, %628, %cst_139 {dimension_numbers = #tpu.dot_dimension_numbers<[1], [0], [0], [1], [0, 0, 1, 1], [], []>} : vector<64x64xbf16>, vector<64x128xbf16>, vector<64x128xf32> -> vector<64x128xf32>
    %c0_140 = arith.constant 0 : index
    %c0_141 = arith.constant 0 : index
    %630 = vector.load %arg21[%c0_140, %c0_141] : memref<1x128xf32, #tpu.memory_space<vmem>>, vector<1x128xf32>
    %631 = vector.broadcast %630 : vector<1x128xf32> to vector<64x128xf32>
    %632 = arith.addf %629, %631 : vector<64x128xf32>
    %c0_142 = arith.constant 0 : index
    %c0_143 = arith.constant 0 : index
    %c0_144 = arith.constant 0 : index
    %633 = vector.load %arg22[%c0_142, %c0_143, %c0_144] : memref<1x64x128xf32, #tpu.memory_space<vmem>>, vector<1x64x128xf32>
    %634 = vector.shape_cast %633 : vector<1x64x128xf32> to vector<64x128xf32>
    %635 = vector.shape_cast %632 : vector<64x128xf32> to vector<1x64x128xf32>
    tpu.vector_store %arg22[%c0_142, %c0_143, %c0_144], %635 {strides = array<i32>} : memref<1x64x128xf32, #tpu.memory_space<vmem>>, vector<1x64x128xf32>,
    return
  }
  func.func @transform_0(%arg0: i32) -> (i32, i32, i32) {
    %c0_i32 = arith.constant 0 : i32
    %c0_i32_0 = arith.constant 0 : i32
    %c0_i32_1 = arith.constant 0 : i32
    return %arg0, %c0_i32, %c0_i32_0 : i32, i32, i32
  }
  func.func @transform_1(%arg0: i32) -> (i32, i32, i32) {
    %c0_i32 = arith.constant 0 : i32
    %c0_i32_0 = arith.constant 0 : i32
    %c0_i32_1 = arith.constant 0 : i32
    return %arg0, %c0_i32, %c0_i32_0 : i32, i32, i32
  }
  func.func @transform_2(%arg0: i32) -> (i32, i32) {
    %c0_i32 = arith.constant 0 : i32
    %c0_i32_0 = arith.constant 0 : i32
    %c0_i32_1 = arith.constant 0 : i32
    return %c0_i32, %c0_i32_0 : i32, i32
  }
  func.func @transform_3(%arg0: i32) -> (i32, i32) {
    %c0_i32 = arith.constant 0 : i32
    %c0_i32_0 = arith.constant 0 : i32
    %c0_i32_1 = arith.constant 0 : i32
    return %c0_i32, %c0_i32_0 : i32, i32
  }
  func.func @transform_4(%arg0: i32) -> (i32, i32) {
    %c0_i32 = arith.constant 0 : i32
    %c0_i32_0 = arith.constant 0 : i32
    %c0_i32_1 = arith.constant 0 : i32
    return %c0_i32, %c0_i32_0 : i32, i32
  }
  func.func @transform_5(%arg0: i32) -> (i32, i32) {
    %c0_i32 = arith.constant 0 : i32
    %c0_i32_0 = arith.constant 0 : i32
    %c0_i32_1 = arith.constant 0 : i32
    return %c0_i32, %c0_i32_0 : i32, i32
  }
  func.func @transform_6(%arg0: i32) -> (i32, i32) {
    %c0_i32 = arith.constant 0 : i32
    %c0_i32_0 = arith.constant 0 : i32
    %c0_i32_1 = arith.constant 0 : i32
    return %c0_i32, %c0_i32_0 : i32, i32
  }
  func.func @transform_7(%arg0: i32) -> (i32, i32) {
    %c0_i32 = arith.constant 0 : i32
    %c0_i32_0 = arith.constant 0 : i32
    %c0_i32_1 = arith.constant 0 : i32
    return %c0_i32, %c0_i32_0 : i32, i32
  }
  func.func @transform_8(%arg0: i32) -> (i32, i32) {
    %c0_i32 = arith.constant 0 : i32
    %c0_i32_0 = arith.constant 0 : i32
    %c0_i32_1 = arith.constant 0 : i32
    return %c0_i32, %c0_i32_0 : i32, i32
  }
  func.func @transform_9(%arg0: i32) -> (i32, i32) {
    %c0_i32 = arith.constant 0 : i32
    %c0_i32_0 = arith.constant 0 : i32
    %c0_i32_1 = arith.constant 0 : i32
    return %c0_i32, %c0_i32_0 : i32, i32
  }
  func.func @transform_10(%arg0: i32) -> (i32, i32) {
    %c0_i32 = arith.constant 0 : i32
    %c0_i32_0 = arith.constant 0 : i32
    %c0_i32_1 = arith.constant 0 : i32
    return %c0_i32, %c0_i32_0 : i32, i32
  }
  func.func @transform_11(%arg0: i32) -> (i32, i32) {
    %c0_i32 = arith.constant 0 : i32
    %c0_i32_0 = arith.constant 0 : i32
    %c0_i32_1 = arith.constant 0 : i32
    return %c0_i32, %c0_i32_0 : i32, i32
  }
  func.func @transform_12(%arg0: i32) -> (i32, i32) {
    %c0_i32 = arith.constant 0 : i32
    %c0_i32_0 = arith.constant 0 : i32
    %c0_i32_1 = arith.constant 0 : i32
    return %c0_i32, %c0_i32_0 : i32, i32
  }
  func.func @transform_13(%arg0: i32) -> (i32, i32) {
    %c0_i32 = arith.constant 0 : i32
    %c0_i32_0 = arith.constant 0 : i32
    %c0_i32_1 = arith.constant 0 : i32
    return %c0_i32, %c0_i32_0 : i32, i32
  }
  func.func @transform_14(%arg0: i32) -> (i32, i32) {
    %c0_i32 = arith.constant 0 : i32
    %c0_i32_0 = arith.constant 0 : i32
    %c0_i32_1 = arith.constant 0 : i32
    return %c0_i32, %c0_i32_0 : i32, i32
  }
  func.func @transform_15(%arg0: i32) -> (i32, i32) {
    %c0_i32 = arith.constant 0 : i32
    %c0_i32_0 = arith.constant 0 : i32
    %c0_i32_1 = arith.constant 0 : i32
    return %c0_i32, %c0_i32_0 : i32, i32
  }
  func.func @transform_16(%arg0: i32) -> (i32, i32) {
    %c0_i32 = arith.constant 0 : i32
    %c0_i32_0 = arith.constant 0 : i32
    %c0_i32_1 = arith.constant 0 : i32
    return %c0_i32, %c0_i32_0 : i32, i32
  }
  func.func @transform_17(%arg0: i32) -> (i32, i32) {
    %c0_i32 = arith.constant 0 : i32
    %c0_i32_0 = arith.constant 0 : i32
    %c0_i32_1 = arith.constant 0 : i32
    return %c0_i32, %c0_i32_0 : i32, i32
  }
  func.func @transform_18(%arg0: i32) -> (i32, i32) {
    %c0_i32 = arith.constant 0 : i32
    %c0_i32_0 = arith.constant 0 : i32
    %c0_i32_1 = arith.constant 0 : i32
    return %c0_i32, %c0_i32_0 : i32, i32
  }
  func.func @transform_19(%arg0: i32) -> (i32, i32) {
    %c0_i32 = arith.constant 0 : i32
    %c0_i32_0 = arith.constant 0 : i32
    %c0_i32_1 = arith.constant 0 : i32
    return %c0_i32, %c0_i32_0 : i32, i32
  }
  func.func @transform_20(%arg0: i32) -> (i32, i32) {
    %c0_i32 = arith.constant 0 : i32
    %c0_i32_0 = arith.constant 0 : i32
    %c0_i32_1 = arith.constant 0 : i32
    return %c0_i32, %c0_i32_0 : i32, i32
  }
  func.func @transform_21(%arg0: i32) -> (i32, i32, i32) {
    %c0_i32 = arith.constant 0 : i32
    %c0_i32_0 = arith.constant 0 : i32
    %c0_i32_1 = arith.constant 0 : i32
    return %arg0, %c0_i32, %c0_i32_0 : i32, i32, i32
  }
}

</mosaic_0001>

<bundles_post_ra>
// kernel: _lambda_.1
= control target key start
LH: loop header
LB: loop body
LE: loop exit
PB: predicated region body
PF: predicated region fallthrough
CT: control target
= control target key end

     0   :  { %vm101_vm0 = vcmask 261120   ;;  %vm354_vm1 = vcmask 523264   ;;  %s4394_s4 = inlined_call_operand.vmem [shape: bf16[32,32], index: 4, kind: input, shape index: {}]   ;;  %s4395_s0 = inlined_call_operand.vmem [shape: f32[1,64,32], index: 0, kind: input, shape index: {}]   ;;  %s4396_s2 = inlined_call_operand.vmem [shape: bf16[32,32], index: 2, kind: input, shape index: {}]   ;;  %s4397_s5 = inlined_call_operand.vmem [shape: f32[1,32], index: 5, kind: input, shape index: {}, may-alias: {3,5,7,9,14}]   ;;  %s4398_s3 = inlined_call_operand.vmem [shape: f32[1,32], index: 3, kind: input, shape index: {}, may-alias: {3,5,7,9,14}]   ;;  %s4399_s6 = inlined_call_operand.vmem [shape: bf16[32,32], index: 6, kind: input, shape index: {}]   ;;  %s4400_s7 = inlined_call_operand.vmem [shape: f32[1,32], index: 7, kind: input, shape index: {}, may-alias: {3,5,7,9,14}]   ;;  %s4401_s1 = inlined_call_operand.vmem [shape: f32[1,64,64], index: 1, kind: input, shape index: {}]   ;;  %s4402_s8 = inlined_call_operand.vmem [shape: bf16[32,32], index: 8, kind: input, shape index: {}]   ;;  %s4403_s9 = inlined_call_operand.vmem [shape: f32[1,32], index: 9, kind: input, shape index: {}, may-alias: {3,5,7,9,14}]   ;;  %s4404_s10 = inlined_call_operand.vmem [shape: f32[2,32], index: 10, kind: input, shape index: {}, may-alias: {10,15}]   ;;  %s4405_s11 = inlined_call_operand.vmem [shape: bf16[32,128], index: 11, kind: input, shape index: {}]   ;;  %s4406_s12 = inlined_call_operand.vmem [shape: f32[1,128], index: 12, kind: input, shape index: {}, may-alias: {12,20}]   ;;  %s4407_s13 = inlined_call_operand.vmem [shape: bf16[128,32], index: 13, kind: input, shape index: {}]   ;;  %s4408_s14 = inlined_call_operand.vmem [shape: f32[1,32], index: 14, kind: input, shape index: {}, may-alias: {3,5,7,9,14}]   ;;  %s4409_s15 = inlined_call_operand.vmem [shape: f32[2,32], index: 15, kind: input, shape index: {}, may-alias: {10,15}]   ;;  %s4410_s18 = inlined_call_operand.vmem [shape: bf16[64,256], index: 18, kind: input, shape index: {}]   ;;  %s4411_s16 = inlined_call_operand.vmem [shape: bf16[32,256], index: 16, kind: input, shape index: {}]   ;;  %s4412_s17 = inlined_call_operand.vmem [shape: f32[1,256], index: 17, kind: input, shape index: {}]   ;;  %s4413_s19 = inlined_call_operand.vmem [shape: bf16[64,128], index: 19, kind: input, shape index: {}]   ;;  %s4414_s20 = inlined_call_operand.vmem [shape: f32[1,128], index: 20, kind: input, shape index: {}, may-alias: {12,20}]   ;;  %s4415_s21 = inlined_call_operand.vmem [shape: f32[1,64,128], index: 21, kind: output, shape index: {}]  }
   0x1   :  { %4420 = sst [smem:[#allocation2_spill]] %s4394_s4  ;;  %v338_v53 = vld [vmem:[%s4401_s1] sm:$0xff]  ;;  %v339_v58 = vld [vmem:[%s4401_s1 + $0x8] sm:$0xff]  ;;  %v340_v63 = vld [vmem:[%s4401_s1 + $0x10] sm:$0xff] }
   0x2   :  { %4421 = sst [smem:[#allocation3_spill]] %s4395_s0 }
   0x3   :  { %4422 = sst [smem:[#allocation4_spill]] %s4396_s2 }
   0x4   :  { %4423 = sst [smem:[#allocation5_spill]] %s4397_s5  ;;  %s3148_s5 = smov 64  }
   0x5   :  { %4424 = sst [smem:[#allocation6_spill]] %s4398_s3 }
   0x6   :  { %4425 = sst [smem:[#allocation7_spill]] %s4399_s6 }
   0x7   :  { %s4426_s26 = sld [smem:[#allocation2_spill]] }
   0x8   :  { %s4427_s29 = sld [smem:[#allocation3_spill]] }
   0x9   :  { %s4428_s28 = sld [smem:[#allocation4_spill]] }
   0xa   :  { %s4429_s24 = sld [smem:[#allocation5_spill]] }
   0xd   :  { %v2870_v0 = vld [vmem:[%s4426_s26 + $0x8] sm:$0xff]  ;;  %v2869_v1 = vld [vmem:[%s4426_s26] sm:$0xff]  ;;  %s4430_s26 = sld [smem:[#allocation6_spill]] }
   0xe   :  { %v3269_v2 = vld [vmem:[%s4427_s29 + $0x20] sm:$0xff]  ;;  %2902 = vmatpush.bf16.msra.mxu3 %v2870_v0  ;;  %v3274_v3 = vld [vmem:[%s4427_s29 + $0x28] sm:$0xff]  ;;  %2901 = vmatpush.bf16.msra.mxu2 %v2870_v0  ;;  %v3279_v4 = vld [vmem:[%s4427_s29 + $0x10] sm:$0xff] }
   0xf   :  { %v3284_v5 = vld [vmem:[%s4427_s29 + $0x18] sm:$0xff]  ;;  %169 = vmatpush.bf16.msra.mxu1 %v2870_v0  ;;  %v3289_v6 = vld [vmem:[%s4427_s29] sm:$0xff]  ;;  %v3294_v7 = vld [vmem:[%s4427_s29 + $0x8] sm:$0xff]  ;;  %v3301_v9 = vpack.c.bf16 %v3274_v3, %v3269_v2 }
  0x10   :  { %v2868_v8 = vld [vmem:[%s4428_s28 + $0x8] sm:$0xff]  ;;  %v3305_v10 = vpack.c.bf16 %v3284_v5, %v3279_v4  ;;  %v3309_v11 = vpack.c.bf16 %v3294_v7, %v3289_v6  ;;  %v2867_v12 = vld [vmem:[%s4428_s28] sm:$0xff]  ;;  %v3325_v13 = vld [vmem:[%s4427_s29 + $0x30] sm:$0xff]  ;;  %s4431_s28 = sld [smem:[#allocation7_spill]] }
  0x11   :  { %120 = vmatpush.bf16.msra.mxu0 %v2868_v8  ;;  %v3330_v14 = vld [vmem:[%s4427_s29 + $0x38] sm:$0xff]  ;;  %v2909_v19 = vld [vmem:[%s4429_s24] ss:$0 sm:$0xff] }
  0x12   :  { %2904 = vmatpush.bf16.msra.mxu3 %v2869_v1  ;;  %2903 = vmatpush.bf16.msra.mxu2 %v2869_v1  ;;  %v3334_v15 = vpack.c.bf16 %v3330_v14, %v3325_v13 }
  0x13   :  { %170 = vmatpush.bf16.msra.mxu1 %v2869_v1  ;;  %v2910_v34 = vld [vmem:[%s4430_s26] ss:$0 sm:$0xff] }
  0x15   :  { %2667 = vmatmul.msk.bf16.vlgmr.msra.gmra.mxu3 %vm101_vm0, %v3301_v9  ;;  %2666 = vmatmul.msk.bf16.vlgmr.msra.gmra.mxu2 %vm101_vm0, %v3305_v10 }
  0x16   :  { %2665 = vmatmul.msk.bf16.vlgmr.msra.gmra.mxu1 %vm101_vm0, %v3309_v11  ;;  %121 = vmatpush.bf16.msra.mxu0 %v2867_v12  ;;  %v2872_v43 = vld [vmem:[%s4431_s28 + $0x8] sm:$0xff]  ;;  %v2871_v44 = vld [vmem:[%s4431_s28] sm:$0xff] }
  0x17   :  { %218 = vmatpush.bf16.msrb.mxu2 %v2872_v43  ;;  %v2911_v43 = vld [vmem:[%s4400_s7] ss:$0 sm:$0xff] }
  0x19   :  { %2653 = vmatmul.msk.bf16.vlgmr.msra.gmra.mxu0 %vm101_vm0, %v3309_v11 }
  0x1b   :  { %219 = vmatpush.bf16.msrb.mxu2 %v2871_v44 }
  0x25   :  { %2668 = vmatmul.msk.bf16.gmra.mxu3 %vm101_vm0, %v3334_v15  ;;  %2677 = vmatmul.msk.bf16.vlgmr.msrb.gmra.mxu2 %vm101_vm0, %v3309_v11 }
  0x29   :  { %2654 = vmatmul.msk.bf16.gmra.mxu0 %vm101_vm0, %v3305_v10 }
  0x35   :  { %2678 = vmatmul.msk.bf16.gmra.mxu2 %vm101_vm0, %v3305_v10  ;;  %v341_v10 = vld [vmem:[%s4401_s1 + $0x18] sm:$0xff] }
  0x39   :  { %2655 = vmatmul.msk.bf16.gmra.mxu0 %vm101_vm0, %v3301_v9 }
  0x45   :  { %2679 = vmatmul.msk.bf16.gmra.mxu2 %vm101_vm0, %v3301_v9 }
  0x49   :  { %2656 = vmatmul.msk.bf16.gmra.mxu0 %vm101_vm0, %v3334_v15 }
  0x55   :  { %2680 = vmatmul.msk.bf16.gmra.mxu2 %vm101_vm0, %v3334_v15 }
  0x93   :  { %v172_v25 = vpop.f32.mrf.mxu1 }
  0x94   :  { %v173_v35 = vadd.f32 %v2909_v19, %v172_v25 }
  0x96   :  { %v123_v28 = vpop.f32.mrf.mxu0 }
  0x97   :  { %v124_v36 = vadd.f32 %v2910_v34, %v123_v28 }
  0x98   :  { %v182_v16 = vpop.f32.mrf.mxu3  ;;  %v177_v22 = vpop.f32.mrf.mxu2 }
  0x99   :  { %v183_v26 = vadd.f32 %v2909_v19, %v182_v16  ;;  %v178_v30 = vadd.f32 %v2909_v19, %v177_v22 }
  0x9b   :  { %v174_v31 = vpop.f32.mrf.mxu1 }
  0x9c   :  { %v175_v32 = vadd.f32 %v2909_v19, %v174_v31 }
  0x9e   :  { %v125_v33 = vpop.f32.mrf.mxu0 }
  0x9f   :  { %v126_v38 = vadd.f32 %v2910_v34, %v125_v33 }
  0xa0   :  { %v184_v17 = vpop.f32.mrf.mxu3  ;;  %v179_v27 = vpop.f32.mrf.mxu2 }
  0xa1   :  { %v185_v24 = vadd.f32 %v2909_v19, %v184_v17  ;;  %v180_v29 = vadd.f32 %v2909_v19, %v179_v27  ;;  %v342_v17 = vld [vmem:[%s4401_s1 + $0x20] sm:$0xff] }
  0xa6   :  { %v128_v37 = vpop.f32.mrf.mxu0 }
  0xa7   :  { %v129_v40 = vadd.f32 %v2910_v34, %v128_v37 }
  0xa8   :  { %v187_v18 = vpop.f32.mrf.mxu3 }
  0xa9   :  { %v188_v23 = vadd.f32 %v2909_v19, %v187_v18 }
  0xae   :  { %v130_v39 = vpop.f32.mrf.mxu0 }
  0xaf   :  { %v131_v42 = vadd.f32 %v2910_v34, %v130_v39 }
  0xb0   :  { %v189_v20 = vpop.f32.mrf.mxu3 }
  0xb1   :  { %v190_v21 = vadd.f32 %v2909_v19, %v189_v20  ;;  %v221_v19 = vpop.f32.mrf.mxu2 }
  0xb3   :  { %2681 = vmatpush.xpose.msk.msrb.mxu3 %vm101_vm0, %v190_v21 }
  0xb6   :  { %v133_v41 = vpop.f32.mrf.mxu0 }
  0xb7   :  { %2682 = vmatpush.xpose.msk.msrb.mxu3 %vm101_vm0, %v188_v23  ;;  %v134_v45 = vadd.f32 %v2910_v34, %v133_v41  ;;  %v343_v23 = vld [vmem:[%s4401_s1 + $0x28] sm:$0xff] }
  0xb9   :  { %v223_v25 = vpop.f32.mrf.mxu2 }
  0xbb   :  { %2683 = vmatpush.xpose.msk.msrb.mxu3 %vm101_vm0, %v185_v24 }
  0xbe   :  { %v135_v46 = vpop.f32.mrf.mxu0 }
  0xbf   :  { %2684 = vmatpush.xpose.msk.msrb.mxu3 %vm101_vm0, %v183_v26  ;;  %v136_v47 = vadd.f32 %v2910_v34, %v135_v46 }
  0xc1   :  { %v226_v31 = vpop.f32.mrf.mxu2 }
  0xc3   :  { %2685 = vmatpush.xpose.msk.msrb.mxu3 %vm101_vm0, %v180_v29  ;;  %v344_v29 = vld [vmem:[%s4401_s1 + $0x30] sm:$0xff] }
  0xc6   :  { %v138_v48 = vpop.f32.mrf.mxu0 }
  0xc7   :  { %2686 = vmatpush.xpose.msk.msrb.mxu3 %vm101_vm0, %v178_v30  ;;  %v139_v49 = vadd.f32 %v2910_v34, %v138_v48 }
  0xc9   :  { %v228_v37 = vpop.f32.mrf.mxu2 }
  0xcb   :  { %2687 = vmatpush.xpose.msk.msrb.mxu3 %vm101_vm0, %v175_v32 }
  0xce   :  { %v140_v50 = vpop.f32.mrf.mxu0 }
  0xcf   :  { %2688 = vmatpush.xpose.msk.msrb.mxu3 %vm101_vm0, %v173_v35  ;;  %v141_v51 = vadd.f32 %v2910_v34, %v140_v50  ;;  %v345_v35 = vld [vmem:[%s4401_s1 + $0x38] sm:$0xff]  ;;  %v227_v50 = vadd.f32 %v2911_v43, %v226_v31 }
  0xd2   :  { %2689 = vmatmul.msk.f32.vlgmr.msrb.gmra.mxu3 %vm101_vm0, %v124_v36 }
  0xda   :  { %2690 = vmatmul.msk.f32.gmra.mxu3 %vm101_vm0, %v126_v38 }
  0xe2   :  { %2691 = vmatmul.msk.f32.gmra.mxu3 %vm101_vm0, %v129_v40  ;;  %v231_v40 = vpop.f32.mrf.mxu2 }
  0xe3   :  { %v232_v48 = vadd.f32 %v2911_v43, %v231_v40 }
  0xea   :  { %2692 = vmatmul.msk.f32.gmra.mxu3 %vm101_vm0, %v131_v42  ;;  %v233_v41 = vpop.f32.mrf.mxu2 }
  0xf2   :  { %2693 = vmatmul.msk.f32.gmra.mxu3 %vm101_vm0, %v134_v45  ;;  %v236_v42 = vpop.f32.mrf.mxu2 }
  0xf3   :  { %v237_v45 = vadd.f32 %v2911_v43, %v236_v42 }
  0xfa   :  { %2694 = vmatmul.msk.f32.gmra.mxu3 %vm101_vm0, %v136_v47  ;;  %v238_v44 = vpop.f32.mrf.mxu2  ;;  %v234_v47 = vadd.f32 %v2911_v43, %v233_v41 }
  0xfb   :  { %v239_v46 = vadd.f32 %v2911_v43, %v238_v44 }
  0xfd   :  { %475 = vmatpush.msrb.mxu0 %v239_v46 }
  0xff   :  { %476 = vmatpush.msrb.mxu0 %v237_v45 }
 0x101   :  { %477 = vmatpush.msrb.mxu0 %v234_v47 }
 0x102   :  { %2695 = vmatmul.msk.f32.gmra.mxu3 %vm101_vm0, %v139_v49  ;;  %v229_v49 = vadd.f32 %v2911_v43, %v228_v37 }
 0x103   :  { %478 = vmatpush.msrb.mxu0 %v232_v48 }
 0x105   :  { %479 = vmatpush.msrb.mxu0 %v229_v49 }
 0x107   :  { %480 = vmatpush.msrb.mxu0 %v227_v50  ;;  %v2874_v50 = vld [vmem:[%s4402_s8 + $0x8] sm:$0xff] }
 0x108   :  { %550 = vmatpush.bf16.msrb.mxu1 %v2874_v50 }
 0x10a   :  { %2696 = vmatmul.msk.f32.gmra.mxu3 %vm101_vm0, %v141_v51  ;;  %v222_v51 = vadd.f32 %v2911_v43, %v221_v19 }
 0x155   :  { %v306_v52 = vpop.f32.mrf.mxu3 }
 0x156   :  { %v330_v54 = vmul.f32 0.17677669, %v306_v52  ;;  %v224_v52 = vadd.f32 %v2911_v43, %v223_v25 }
 0x158   :  { %v3383_v55 = vadd.f32 %v338_v53, %v330_v54  ;;  %481 = vmatpush.msrb.mxu0 %v224_v52 }
 0x15a   :  { %v355_v56 = vsel %vm354_vm1, %v3383_v55, -inf  ;;  %482 = vmatpush.msrb.mxu0 %v222_v51 }
 0x15b   :  { %356 = vmax.xlane.f32.xlu0 %v355_v56 }
 0x15d   :  { %v309_v57 = vpop.f32.mrf.mxu3 }
 0x15e   :  { %v331_v59 = vmul.f32 0.17677669, %v309_v57 }
 0x160   :  { %v3390_v60 = vadd.f32 %v339_v58, %v331_v59 }
 0x162   :  { %v358_v61 = vsel %vm354_vm1, %v3390_v60, -inf }
 0x163   :  { %359 = vmax.xlane.f32.xlu0 %v358_v61 }
 0x165   :  { %v312_v62 = vpop.f32.mrf.mxu3 }
 0x166   :  { %v332_v0 = vmul.f32 0.17677669, %v312_v62 }
 0x168   :  { %v3397_v1 = vadd.f32 %v340_v63, %v332_v0 }
 0x16a   :  { %v361_v8 = vsel %vm354_vm1, %v3397_v1, -inf }
 0x16b   :  { %362 = vmax.xlane.f32.xlu1 %v361_v8 }
 0x16d   :  { %v315_v9 = vpop.f32.mrf.mxu3 }
 0x16e   :  { %v333_v11 = vmul.f32 0.17677669, %v315_v9 }
 0x170   :  { %v3404_v12 = vadd.f32 %v341_v10, %v333_v11 }
 0x172   :  { %v364_v15 = vsel %vm354_vm1, %v3404_v12, -inf }
 0x173   :  { %365 = vmax.xlane.f32.xlu1 %v364_v15 }
 0x175   :  { %v318_v16 = vpop.f32.mrf.mxu3 }
 0x176   :  { %v334_v18 = vmul.f32 0.17677669, %v318_v16 }
 0x178   :  { %v3411_v20 = vadd.f32 %v342_v17, %v334_v18 }
 0x17a   :  { %v367_v21 = vsel %vm354_vm1, %v3411_v20, -inf }
 0x17b   :  { %368 = vmax.xlane.f32.xlu2 %v367_v21 }
 0x17d   :  { %v321_v22 = vpop.f32.mrf.mxu3 }
 0x17e   :  { %v335_v24 = vmul.f32 0.17677669, %v321_v22 }
 0x180   :  { %v3418_v26 = vadd.f32 %v343_v23, %v335_v24 }
 0x182   :  { %v370_v27 = vsel %vm354_vm1, %v3418_v26, -inf }
 0x183   :  { %371 = vmax.xlane.f32.xlu2 %v370_v27 }
 0x185   :  { %v324_v28 = vpop.f32.mrf.mxu3 }
 0x186   :  { %v336_v30 = vmul.f32 0.17677669, %v324_v28 }
 0x188   :  { %v3425_v32 = vadd.f32 %v344_v29, %v336_v30 }
 0x18a   :  { %v373_v33 = vsel %vm354_vm1, %v3425_v32, -inf }
 0x18b   :  { %374 = vmax.xlane.f32.xlu0 %v373_v33 }
 0x18d   :  { %v327_v34 = vpop.f32.mrf.mxu3 }
 0x18e   :  { %v337_v36 = vmul.f32 0.17677669, %v327_v34 }
 0x190   :  { %v3432_v38 = vadd.f32 %v345_v35, %v337_v36 }
 0x192   :  { %v376_v39 = vsel %vm354_vm1, %v3432_v38, -inf }
 0x193   :  { %377 = vmax.xlane.f32.xlu2 %v376_v39 }
 0x1ce   :  { %v357_v53 = vpop.xlane.xlu0 %356 }
 0x1cf   :  { %v379_v54 = vsub.f32 %v3383_v55, %v357_v53 }
 0x1d1   :  { %v387_v56 = vmul.f32 1.442695, %v379_v54 }
 0x1d3   :  { %2920 = vpow2.f32 %v387_v56 }
 0x1d6   :  { %v360_v57 = vpop.xlane.xlu0 %359 }
 0x1d7   :  { %v380_v58 = vsub.f32 %v3390_v60, %v360_v57 }
 0x1d9   :  { %v2921_v59 = vpop.eup %2920  ;;  %v389_v61 = vmul.f32 1.442695, %v380_v58 }
 0x1da   :  { %v403_v62 = vsel %vm354_vm1, %v2921_v59, 0.0 }
 0x1db   :  { %2922 = vpow2.f32 %v389_v61  ;;  %404 = vadd.xlane.f32.xlu1 %v403_v62 }
 0x1de   :  { %v363_v63 = vpop.xlane.xlu1 %362 }
 0x1df   :  { %v381_v0 = vsub.f32 %v3397_v1, %v363_v63 }
 0x1e1   :  { %v2923_v8 = vpop.eup %2922  ;;  %v391_v9 = vmul.f32 1.442695, %v381_v0  ;;  %v2873_v0 = vld [vmem:[%s4402_s8] sm:$0xff] }
 0x1e2   :  { %v406_v10 = vsel %vm354_vm1, %v2923_v8, 0.0  ;;  %551 = vmatpush.bf16.msrb.mxu1 %v2873_v0 }
 0x1e3   :  { %2924 = vpow2.f32 %v391_v9  ;;  %407 = vadd.xlane.f32.xlu0 %v406_v10 }
 0x1e6   :  { %v366_v55 = vpop.xlane.xlu1 %365 }
 0x1e7   :  { %v382_v11 = vsub.f32 %v3404_v12, %v366_v55 }
 0x1e9   :  { %v2925_v15 = vpop.eup %2924  ;;  %v393_v60 = vmul.f32 1.442695, %v382_v11 }
 0x1ea   :  { %v409_v16 = vsel %vm354_vm1, %v2925_v15, 0.0 }
 0x1eb   :  { %2926 = vpow2.f32 %v393_v60  ;;  %410 = vadd.xlane.f32.xlu1 %v409_v16 }
 0x1ee   :  { %v369_v17 = vpop.xlane.xlu2 %368 }
 0x1ef   :  { %v383_v18 = vsub.f32 %v3411_v20, %v369_v17 }
 0x1f1   :  { %v2927_v19 = vpop.eup %2926  ;;  %v395_v1 = vmul.f32 1.442695, %v383_v18 }
 0x1f2   :  { %v412_v21 = vsel %vm354_vm1, %v2927_v19, 0.0 }
 0x1f3   :  { %2928 = vpow2.f32 %v395_v1  ;;  %413 = vadd.xlane.f32.xlu2 %v412_v21  ;;  %v2912_v21 = vld [vmem:[%s4403_s9] ss:$0 sm:$0xff] }
 0x1f6   :  { %v372_v22 = vpop.xlane.xlu2 %371 }
 0x1f7   :  { %v384_v23 = vsub.f32 %v3418_v26, %v372_v22 }
 0x1f9   :  { %v2929_v24 = vpop.eup %2928  ;;  %v397_v12 = vmul.f32 1.442695, %v384_v23 }
 0x1fa   :  { %v415_v25 = vsel %vm354_vm1, %v2929_v24, 0.0 }
 0x1fb   :  { %2930 = vpow2.f32 %v397_v12  ;;  %416 = vadd.xlane.f32.xlu0 %v415_v25 }
 0x1fe   :  { %v375_v27 = vpop.xlane.xlu0 %374 }
 0x1ff   :  { %v385_v28 = vsub.f32 %v3425_v32, %v375_v27 }
 0x201   :  { %v2931_v29 = vpop.eup %2930  ;;  %v399_v20 = vmul.f32 1.442695, %v385_v28 }
 0x202   :  { %v418_v30 = vsel %vm354_vm1, %v2931_v29, 0.0 }
 0x203   :  { %2932 = vpow2.f32 %v399_v20  ;;  %419 = vadd.xlane.f32.xlu1 %v418_v30 }
 0x206   :  { %v378_v31 = vpop.xlane.xlu2 %377 }
 0x207   :  { %v386_v33 = vsub.f32 %v3432_v38, %v378_v31 }
 0x209   :  { %v2933_v34 = vpop.eup %2932  ;;  %v401_v26 = vmul.f32 1.442695, %v386_v33 }
 0x20a   :  { %v421_v35 = vsel %vm354_vm1, %v2933_v34, 0.0 }
 0x20b   :  { %2934 = vpow2.f32 %v401_v26  ;;  %422 = vadd.xlane.f32.xlu2 %v421_v35 }
 0x211   :  { %v2935_v36 = vpop.eup %2934 }
 0x212   :  { %v424_v37 = vsel %vm354_vm1, %v2935_v36, 0.0 }
 0x213   :  { %425 = vadd.xlane.f32.xlu0 %v424_v37 }
 0x24e   :  { %v405_v32 = vpop.xlane.xlu1 %404 }
 0x24f   :  { %2936 = vrcp.f32 %v405_v32 }
 0x255   :  { %v2937_v39 = vpop.eup %2936 }
 0x256   :  { %v408_v40 = vpop.xlane.xlu0 %407  ;;  %v435_v41 = vmul.f32 %v2937_v39, %v2921_v59 }
 0x257   :  { %2938 = vrcp.f32 %v408_v40 }
 0x258   :  { %2697 = vmatmul.msk.f32.vlgmr.msrb.gmra.mxu0 %vm354_vm1, %v435_v41 }
 0x25d   :  { %v2939_v42 = vpop.eup %2938 }
 0x25e   :  { %v411_v38 = vpop.xlane.xlu1 %410  ;;  %v436_v43 = vmul.f32 %v2939_v42, %v2923_v8 }
 0x25f   :  { %2940 = vrcp.f32 %v411_v38 }
 0x260   :  { %2698 = vmatmul.msk.f32.gmra.mxu0 %vm354_vm1, %v436_v43 }
 0x265   :  { %v2941_v44 = vpop.eup %2940 }
 0x266   :  { %v414_v45 = vpop.xlane.xlu2 %413  ;;  %v437_v46 = vmul.f32 %v2941_v44, %v2925_v15  ;;  %v3146_v44 = vmov 32.0  }
 0x267   :  { %2942 = vrcp.f32 %v414_v45 }
 0x268   :  { %2699 = vmatmul.msk.f32.gmra.mxu0 %vm354_vm1, %v437_v46 }
 0x26d   :  { %v2943_v47 = vpop.eup %2942 }
 0x26e   :  { %v417_v48 = vpop.xlane.xlu0 %416  ;;  %v438_v49 = vmul.f32 %v2943_v47, %v2927_v19 }
 0x26f   :  { %2944 = vrcp.f32 %v417_v48 }
 0x270   :  { %2700 = vmatmul.msk.f32.gmra.mxu0 %vm354_vm1, %v438_v49 }
 0x275   :  { %v2945_v51 = vpop.eup %2944 }
 0x276   :  { %v420_v52 = vpop.xlane.xlu1 %419  ;;  %v439_v53 = vmul.f32 %v2945_v51, %v2929_v24 }
 0x277   :  { %2946 = vrcp.f32 %v420_v52 }
 0x278   :  { %2701 = vmatmul.msk.f32.gmra.mxu0 %vm354_vm1, %v439_v53 }
 0x27d   :  { %v2947_v54 = vpop.eup %2946 }
 0x27e   :  { %v423_v56 = vpop.xlane.xlu2 %422  ;;  %v440_v57 = vmul.f32 %v2947_v54, %v2931_v29 }
 0x27f   :  { %2948 = vrcp.f32 %v423_v56 }
 0x280   :  { %2702 = vmatmul.msk.f32.gmra.mxu0 %vm354_vm1, %v440_v57 }
 0x285   :  { %v2949_v58 = vpop.eup %2948 }
 0x286   :  { %v426_v59 = vpop.xlane.xlu0 %425  ;;  %v441_v61 = vmul.f32 %v2949_v58, %v2933_v34 }
 0x287   :  { %2950 = vrcp.f32 %v426_v59 }
 0x288   :  { %2703 = vmatmul.msk.f32.gmra.mxu0 %vm354_vm1, %v441_v61  ;;  %2952 = vrcp.f32 %v3146_v44 }
 0x28d   :  { %v2951_v62 = vpop.eup %2950 }
 0x28e   :  { %v442_v63 = vmul.f32 %v2951_v62, %v2935_v36 }
 0x290   :  { %2704 = vmatmul.msk.f32.gmra.mxu0 %vm354_vm1, %v442_v63 }
 0x2d5   :  { %v484_v8 = vpop.f32.mrf.mxu0 }
 0x2dd   :  { %v487_v9 = vpop.f32.mrf.mxu0 }
 0x2de   :  { %v508_v10 = vpack.c.bf16 %v487_v9, %v484_v8 }
 0x2e0   :  { %2713 = vmatmul.msk.bf16.vlgmr.msrb.gmra.mxu1 %vm101_vm0, %v508_v10 }
 0x2e5   :  { %v490_v55 = vpop.f32.mrf.mxu0 }
 0x2ed   :  { %v493_v11 = vpop.f32.mrf.mxu0 }
 0x2ee   :  { %v509_v15 = vpack.c.bf16 %v493_v11, %v490_v55  ;;  %v2876_v11 = vld [vmem:[%s4405_s11 + $0x8] sm:$0xff] }
 0x2ef   :  { %826 = vmatpush.bf16.msra.mxu2 %v2876_v11 }
 0x2f0   :  { %2714 = vmatmul.msk.bf16.gmra.mxu1 %vm101_vm0, %v509_v15 }
 0x2f5   :  { %v496_v60 = vpop.f32.mrf.mxu0 }
 0x2fd   :  { %v499_v16 = vpop.f32.mrf.mxu0 }
 0x2fe   :  { %v510_v17 = vpack.c.bf16 %v499_v16, %v496_v60 }
 0x300   :  { %2715 = vmatmul.msk.bf16.gmra.mxu1 %vm101_vm0, %v510_v17 }
 0x305   :  { %v502_v18 = vpop.f32.mrf.mxu0 }
 0x30d   :  { %v505_v19 = vpop.f32.mrf.mxu0 }
 0x30e   :  { %v511_v1 = vpack.c.bf16 %v505_v19, %v502_v18 }
 0x310   :  { %2716 = vmatmul.msk.bf16.gmra.mxu1 %vm101_vm0, %v511_v1 }
 0x35d   :  { %v553_v22 = vpop.f32.mrf.mxu1 }
 0x35e   :  { %v554_v23 = vadd.f32 %v2912_v21, %v553_v22 }
 0x360   :  { %v573_v24 = vadd.f32 %v554_v23, %v3289_v6 }
 0x362   :  { %v583_v12 = vsel %vm101_vm0, %v573_v24, 0.0 }
 0x363   :  { %584 = vadd.xlane.f32.xlu1 %v583_v12 }
 0x365   :  { %v555_v25 = vpop.f32.mrf.mxu1 }
 0x366   :  { %v556_v27 = vadd.f32 %v2912_v21, %v555_v25 }
 0x368   :  { %v574_v28 = vadd.f32 %v556_v27, %v3294_v7 }
 0x36a   :  { %v586_v29 = vsel %vm101_vm0, %v574_v28, 0.0 }
 0x36b   :  { %587 = vadd.xlane.f32.xlu2 %v586_v29 }
 0x36d   :  { %v558_v20 = vpop.f32.mrf.mxu1 }
 0x36e   :  { %v559_v30 = vadd.f32 %v2912_v21, %v558_v20 }
 0x370   :  { %v575_v31 = vadd.f32 %v559_v30, %v3279_v4 }
 0x372   :  { %v589_v33 = vsel %vm101_vm0, %v575_v31, 0.0 }
 0x373   :  { %590 = vadd.xlane.f32.xlu0 %v589_v33  ;;  %v2875_v33 = vld [vmem:[%s4405_s11] sm:$0xff] }
 0x374   :  { %827 = vmatpush.bf16.msra.mxu2 %v2875_v33 }
 0x375   :  { %v560_v34 = vpop.f32.mrf.mxu1 }
 0x376   :  { %v561_v26 = vadd.f32 %v2912_v21, %v560_v34 }
 0x378   :  { %v576_v6 = vadd.f32 %v561_v26, %v3284_v5 }
 0x37a   :  { %v592_v35 = vsel %vm101_vm0, %v576_v6, 0.0 }
 0x37b   :  { %593 = vadd.xlane.f32.xlu1 %v592_v35 }
 0x37d   :  { %v563_v36 = vpop.f32.mrf.mxu1 }
 0x37e   :  { %v564_v37 = vadd.f32 %v2912_v21, %v563_v36 }
 0x380   :  { %v577_v7 = vadd.f32 %v564_v37, %v3269_v2  ;;  %v2953_v2 = vpop.eup %2952 }
 0x381   :  { %v608_v45 = vmul.f32 32.0, %v2953_v2  ;;  %vm612_vm2 = vweird.f32 %v2953_v2 }
 0x382   :  { %v595_v32 = vsel %vm101_vm0, %v577_v7, 0.0 }
 0x383   :  { %596 = vadd.xlane.f32.xlu2 %v595_v32  ;;  %v609_v46 = vsub.f32 1.0, %v608_v45 }
 0x385   :  { %v565_v39 = vpop.f32.mrf.mxu1  ;;  %v610_v47 = vmul.f32 %v2953_v2, %v609_v46 }
 0x386   :  { %v566_v40 = vadd.f32 %v2912_v21, %v565_v39 }
 0x387   :  { %v611_v48 = vadd.f32 %v2953_v2, %v610_v47 }
 0x388   :  { %v578_v4 = vadd.f32 %v566_v40, %v3274_v3 }
 0x389   :  { %v3490_v49 = vsel %vm612_vm2, %v2953_v2, %v611_v48 }
 0x38a   :  { %v598_v41 = vsel %vm101_vm0, %v578_v4, 0.0 }
 0x38b   :  { %599 = vadd.xlane.f32.xlu0 %v598_v41 }
 0x38d   :  { %v568_v42 = vpop.f32.mrf.mxu1 }
 0x38e   :  { %v569_v38 = vadd.f32 %v2912_v21, %v568_v42 }
 0x390   :  { %v579_v5 = vadd.f32 %v569_v38, %v3325_v13 }
 0x392   :  { %v601_v43 = vsel %vm101_vm0, %v579_v5, 0.0 }
 0x393   :  { %602 = vadd.xlane.f32.xlu0 %v601_v43 }
 0x395   :  { %v570_v52 = vpop.f32.mrf.mxu1 }
 0x396   :  { %v571_v53 = vadd.f32 %v2912_v21, %v570_v52 }
 0x398   :  { %v580_v59 = vadd.f32 %v571_v53, %v3330_v14 }
 0x39a   :  { %v604_v62 = vsel %vm101_vm0, %v580_v59, 0.0 }
 0x3d6   :  { %v585_v3 = vpop.xlane.xlu1 %584 }
 0x3d7   :  { %v614_v50 = vmul.f32 %v3490_v49, %v585_v3 }
 0x3d9   :  { %v3493_v51 = vsub.f32 %v573_v24, %v614_v50 }
 0x3db   :  { %v630_v13 = vmul.f32 %v3493_v51, %v3493_v51 }
 0x3dd   :  { %v638_v54 = vsel %vm101_vm0, %v630_v13, 0.0 }
 0x3de   :  { %639 = vadd.xlane.f32.xlu1 %v638_v54  ;;  %v588_v56 = vpop.xlane.xlu2 %587 }
 0x3df   :  { %v615_v57 = vmul.f32 %v3490_v49, %v588_v56 }
 0x3e1   :  { %v3499_v58 = vsub.f32 %v574_v28, %v615_v57  ;;  %v3555_v57 = vld [vmem:[%s4404_s10] ss:$0 sm:$0xff] }
 0x3e3   :  { %v631_v61 = vmul.f32 %v3499_v58, %v3499_v58 }
 0x3e5   :  { %v641_v63 = vsel %vm101_vm0, %v631_v61, 0.0 }
 0x3e6   :  { %v591_v0 = vpop.xlane.xlu0 %590  ;;  %605 = vadd.xlane.f32.xlu1 %v604_v62  ;;  %642 = vadd.xlane.f32.xlu2 %v641_v63 }
 0x3e7   :  { %v616_v8 = vmul.f32 %v3490_v49, %v591_v0 }
 0x3e9   :  { %v3507_v9 = vsub.f32 %v575_v31, %v616_v8 }
 0x3eb   :  { %v632_v10 = vmul.f32 %v3507_v9, %v3507_v9 }
 0x3ed   :  { %v644_v55 = vsel %vm101_vm0, %v632_v10, 0.0  ;;  %v3561_v10 = vld [vmem:[%s4404_s10 + $0x1] ss:$0 sm:$0xff] }
 0x3ee   :  { %v594_v14 = vpop.xlane.xlu1 %593  ;;  %645 = vadd.xlane.f32.xlu2 %v644_v55 }
 0x3ef   :  { %v617_v15 = vmul.f32 %v3490_v49, %v594_v14 }
 0x3f1   :  { %v3516_v60 = vsub.f32 %v576_v6, %v617_v15 }
 0x3f3   :  { %v633_v16 = vmul.f32 %v3516_v60, %v3516_v60 }
 0x3f5   :  { %v647_v17 = vsel %vm101_vm0, %v633_v16, 0.0 }
 0x3f6   :  { %648 = vadd.xlane.f32.xlu0 %v647_v17  ;;  %v597_v18 = vpop.xlane.xlu2 %596 }
 0x3f7   :  { %v618_v19 = vmul.f32 %v3490_v49, %v597_v18 }
 0x3f9   :  { %v3522_v1 = vsub.f32 %v577_v7, %v618_v19 }
 0x3fb   :  { %v634_v21 = vmul.f32 %v3522_v1, %v3522_v1 }
 0x3fd   :  { %v650_v22 = vsel %vm101_vm0, %v634_v21, 0.0 }
 0x3fe   :  { %v600_v23 = vpop.xlane.xlu0 %599  ;;  %651 = vadd.xlane.f32.xlu1 %v650_v22 }
 0x3ff   :  { %v619_v24 = vmul.f32 %v3490_v49, %v600_v23 }
 0x401   :  { %v3528_v12 = vsub.f32 %v578_v4, %v619_v24 }
 0x403   :  { %v635_v25 = vmul.f32 %v3528_v12, %v3528_v12 }
 0x405   :  { %v653_v27 = vsel %vm101_vm0, %v635_v25, 0.0 }
 0x406   :  { %v603_v28 = vpop.xlane.xlu0 %602  ;;  %654 = vadd.xlane.f32.xlu2 %v653_v27 }
 0x407   :  { %v620_v29 = vmul.f32 %v3490_v49, %v603_v28 }
 0x409   :  { %v3534_v20 = vsub.f32 %v579_v5, %v620_v29 }
 0x40b   :  { %v636_v30 = vmul.f32 %v3534_v20, %v3534_v20 }
 0x40d   :  { %v656_v31 = vsel %vm101_vm0, %v636_v30, 0.0 }
 0x40e   :  { %657 = vadd.xlane.f32.xlu0 %v656_v31 }
 0x451   :  { %v640_v34 = vpop.xlane.xlu1 %639 }
 0x452   :  { %v662_v26 = vmul.f32 %v640_v34, %v3490_v49 }
 0x454   :  { %v670_v6 = vadd.f32 1e-12, %v662_v26 }
 0x456   :  { %2954 = vrsqrt.f32 %v670_v6  ;;  %vm684_vm4 = vweird.f32 %v670_v6 }
 0x459   :  { %v606_v35 = vpop.xlane.xlu1 %605  ;;  %v643_v36 = vpop.xlane.xlu2 %642 }
 0x45a   :  { %v621_v37 = vmul.f32 %v3490_v49, %v606_v35  ;;  %v663_v7 = vmul.f32 %v643_v36, %v3490_v49 }
 0x45c   :  { %v2955_v32 = vpop.eup %2954  ;;  %v3545_v39 = vsub.f32 %v580_v59, %v621_v37  ;;  %v671_v40 = vadd.f32 1e-12, %v663_v7 }
 0x45d   :  { %v679_v4 = vmul.f32 %v2955_v32, %v670_v6  ;;  %vm685_vm3 = vweird.f32 %v2955_v32 }
 0x45e   :  { %2956 = vrsqrt.f32 %v671_v40  ;;  %v637_v41 = vmul.f32 %v3545_v39, %v3545_v39  ;;  %vm686_vm5 = vmor %vm684_vm4, %vm685_vm3  ;;  %vm694_vm7 = vweird.f32 %v671_v40 }
 0x45f   :  { %v680_v42 = vmul.f32 %v2955_v32, %v679_v4 }
 0x460   :  { %v659_v38 = vsel %vm101_vm0, %v637_v41, 0.0 }
 0x461   :  { %v681_v5 = vmul.f32 0.5, %v680_v42  ;;  %660 = vadd.xlane.f32.xlu1 %v659_v38  ;;  %v646_v43 = vpop.xlane.xlu2 %645 }
 0x462   :  { %v664_v44 = vmul.f32 %v646_v43, %v3490_v49 }
 0x463   :  { %v682_v2 = vsub.f32 1.5, %v681_v5 }
 0x464   :  { %v2957_v45 = vpop.eup %2956  ;;  %v672_v46 = vadd.f32 1e-12, %v664_v44 }
 0x465   :  { %v683_v47 = vmul.f32 %v2955_v32, %v682_v2  ;;  %v689_v48 = vmul.f32 %v2957_v45, %v671_v40  ;;  %vm695_vm6 = vweird.f32 %v2957_v45 }
 0x466   :  { %2958 = vrsqrt.f32 %v672_v46  ;;  %vm696_vm8 = vmor %vm694_vm7, %vm695_vm6  ;;  %vm704_vm10 = vweird.f32 %v672_v46 }
 0x467   :  { %v690_v3 = vmul.f32 %v2957_v45, %v689_v48  ;;  %v687_v50 = vsel %vm686_vm5, %v2955_v32, %v683_v47 }
 0x468   :  { %v758_v59 = vmul.f32 %v687_v50, %v3493_v51 }
 0x469   :  { %v691_v52 = vmul.f32 0.5, %v690_v3  ;;  %v649_v13 = vpop.xlane.xlu0 %648 }
 0x46a   :  { %v665_v53 = vmul.f32 %v649_v13, %v3490_v49  ;;  %v767_v55 = vmul.f32 %v3555_v57, %v758_v59 }
 0x46b   :  { %v692_v54 = vsub.f32 1.5, %v691_v52 }
 0x46c   :  { %v2959_v56 = vpop.eup %2958  ;;  %v673_v61 = vadd.f32 1e-12, %v665_v53  ;;  %v3568_v19 = vadd.f32 %v3561_v10, %v767_v55 }
 0x46d   :  { %v693_v62 = vmul.f32 %v2957_v45, %v692_v54  ;;  %v699_v63 = vmul.f32 %v2959_v56, %v672_v46  ;;  %vm705_vm9 = vweird.f32 %v2959_v56 }
 0x46e   :  { %2960 = vrsqrt.f32 %v673_v61  ;;  %vm706_vm11 = vmor %vm704_vm10, %vm705_vm9  ;;  %vm714_vm13 = vweird.f32 %v673_v61 }
 0x46f   :  { %v697_v0 = vsel %vm696_vm8, %v2957_v45, %v693_v62  ;;  %v700_v8 = vmul.f32 %v2959_v56, %v699_v63 }
 0x470   :  { %v759_v14 = vmul.f32 %v697_v0, %v3499_v58 }
 0x471   :  { %v701_v11 = vmul.f32 0.5, %v700_v8  ;;  %v652_v15 = vpop.xlane.xlu1 %651 }
 0x472   :  { %v768_v51 = vmul.f32 %v3555_v57, %v759_v14  ;;  %v666_v16 = vmul.f32 %v652_v15, %v3490_v49 }
 0x473   :  { %v702_v17 = vsub.f32 1.5, %v701_v11 }
 0x474   :  { %v2961_v18 = vpop.eup %2960  ;;  %v3571_v21 = vadd.f32 %v3561_v10, %v768_v51  ;;  %v674_v22 = vadd.f32 1e-12, %v666_v16 }
 0x475   :  { %v703_v23 = vmul.f32 %v2959_v56, %v702_v17  ;;  %v709_v24 = vmul.f32 %v2961_v18, %v673_v61  ;;  %vm715_vm12 = vweird.f32 %v2961_v18 }
 0x476   :  { %2962 = vrsqrt.f32 %v674_v22  ;;  %v784_v58 = vpack.c.bf16 %v3571_v21, %v3568_v19  ;;  %vm716_vm14 = vmor %vm714_vm13, %vm715_vm12  ;;  %vm724_vm2 = vweird.f32 %v674_v22 }
 0x477   :  { %v710_v25 = vmul.f32 %v2961_v18, %v709_v24  ;;  %v707_v27 = vsel %vm706_vm11, %v2959_v56, %v703_v23 }
 0x478   :  { %2725 = vmatmul.msk.bf16.vlgmr.msra.gmra.mxu2 %vm101_vm0, %v784_v58  ;;  %v760_v34 = vmul.f32 %v707_v27, %v3507_v9 }
 0x479   :  { %v711_v28 = vmul.f32 0.5, %v710_v25  ;;  %v655_v29 = vpop.xlane.xlu2 %654 }
 0x47a   :  { %v667_v30 = vmul.f32 %v655_v29, %v3490_v49  ;;  %v769_v32 = vmul.f32 %v3555_v57, %v760_v34 }
 0x47b   :  { %v712_v31 = vsub.f32 1.5, %v711_v28 }
 0x47c   :  { %v2963_v33 = vpop.eup %2962  ;;  %v675_v26 = vadd.f32 1e-12, %v667_v30  ;;  %v3582_v38 = vadd.f32 %v3561_v10, %v769_v32 }
 0x47d   :  { %v713_v6 = vmul.f32 %v2961_v18, %v712_v31  ;;  %v719_v35 = vmul.f32 %v2963_v33, %v674_v22  ;;  %vm725_vm15 = vweird.f32 %v2963_v33 }
 0x47e   :  { %2964 = vrsqrt.f32 %v675_v26  ;;  %vm726_vm3 = vmor %vm724_vm2, %vm725_vm15  ;;  %vm734_vm5 = vweird.f32 %v675_v26 }
 0x47f   :  { %v717_v36 = vsel %vm716_vm14, %v2961_v18, %v713_v6  ;;  %v720_v37 = vmul.f32 %v2963_v33, %v719_v35 }
 0x480   :  { %v761_v7 = vmul.f32 %v717_v36, %v3516_v60  ;;  %v2883_v36 = vld [vmem:[%s4407_s13 + $0x30] sm:$0xff] }
 0x481   :  { %v721_v40 = vmul.f32 0.5, %v720_v37 }
 0x482   :  { %v770_v4 = vmul.f32 %v3555_v57, %v761_v7 }
 0x483   :  { %v722_v41 = vsub.f32 1.5, %v721_v40  ;;  %v2882_v40 = vld [vmem:[%s4407_s13 + $0x28] sm:$0xff] }
 0x484   :  { %v2965_v42 = vpop.eup %2964  ;;  %v3585_v9 = vadd.f32 %v3561_v10, %v770_v4 }
 0x485   :  { %v723_v5 = vmul.f32 %v2963_v33, %v722_v41  ;;  %v729_v43 = vmul.f32 %v2965_v42, %v675_v26  ;;  %vm735_vm4 = vweird.f32 %v2965_v42 }
 0x486   :  { %v785_v44 = vpack.c.bf16 %v3585_v9, %v3582_v38  ;;  %vm736_vm6 = vmor %vm734_vm5, %vm735_vm4 }
 0x487   :  { %v730_v60 = vmul.f32 %v2965_v42, %v729_v43  ;;  %v727_v2 = vsel %vm726_vm3, %v2963_v33, %v723_v5 }
 0x488   :  { %2726 = vmatmul.msk.bf16.gmra.mxu2 %vm101_vm0, %v785_v44  ;;  %v762_v47 = vmul.f32 %v727_v2, %v3522_v1  ;;  %v658_v1 = vpop.xlane.xlu0 %657  ;;  %v2881_v44 = vld [vmem:[%s4407_s13 + $0x20] sm:$0xff] }
 0x489   :  { %v731_v45 = vmul.f32 0.5, %v730_v60  ;;  %v668_v59 = vmul.f32 %v658_v1, %v3490_v49 }
 0x48a   :  { %v771_v52 = vmul.f32 %v3555_v57, %v762_v47 }
 0x48b   :  { %v732_v46 = vsub.f32 1.5, %v731_v45  ;;  %v676_v61 = vadd.f32 1e-12, %v668_v59 }
 0x48c   :  { %v3595_v53 = vadd.f32 %v3561_v10, %v771_v52  ;;  %v2880_v52 = vld [vmem:[%s4407_s13 + $0x18] sm:$0xff] }
 0x48d   :  { %v733_v48 = vmul.f32 %v2965_v42, %v732_v46  ;;  %2966 = vrsqrt.f32 %v676_v61  ;;  %vm744_vm8 = vweird.f32 %v676_v61 }
 0x48f   :  { %v737_v3 = vsel %vm736_vm6, %v2965_v42, %v733_v48 }
 0x490   :  { %v763_v50 = vmul.f32 %v737_v3, %v3528_v12 }
 0x492   :  { %v772_v13 = vmul.f32 %v3555_v57, %v763_v50 }
 0x493   :  { %v2967_v12 = vpop.eup %2966 }
 0x494   :  { %v3598_v54 = vadd.f32 %v3561_v10, %v772_v13  ;;  %v739_v62 = vmul.f32 %v2967_v12, %v676_v61  ;;  %vm745_vm7 = vweird.f32 %v2967_v12 }
 0x495   :  { %vm746_vm9 = vmor %vm744_vm8, %vm745_vm7 }
 0x496   :  { %v786_v56 = vpack.c.bf16 %v3598_v54, %v3595_v53  ;;  %v740_v63 = vmul.f32 %v2967_v12, %v739_v62  ;;  %v2879_v62 = vld [vmem:[%s4407_s13 + $0x10] sm:$0xff] }
 0x498   :  { %2727 = vmatmul.msk.bf16.gmra.mxu2 %vm101_vm0, %v786_v56  ;;  %v741_v14 = vmul.f32 0.5, %v740_v63 }
 0x49a   :  { %v742_v11 = vsub.f32 1.5, %v741_v14 }
 0x49c   :  { %v743_v51 = vmul.f32 %v2967_v12, %v742_v11 }
 0x49e   :  { %v747_v18 = vsel %vm746_vm9, %v2967_v12, %v743_v51 }
 0x49f   :  { %v764_v24 = vmul.f32 %v747_v18, %v3534_v20  ;;  %v3621_v20 = vld [vmem:[%s4406_s12] ss:$0 sm:$0xff] }
 0x4a1   :  { %v773_v28 = vmul.f32 %v3555_v57, %v764_v24 }
 0x4a3   :  { %v3610_v30 = vadd.f32 %v3561_v10, %v773_v28 }
 0x4d4   :  { %v661_v0 = vpop.xlane.xlu1 %660 }
 0x4d5   :  { %v669_v8 = vmul.f32 %v661_v0, %v3490_v49 }
 0x4d7   :  { %v677_v55 = vadd.f32 1e-12, %v669_v8 }
 0x4d9   :  { %2968 = vrsqrt.f32 %v677_v55  ;;  %vm754_vm11 = vweird.f32 %v677_v55 }
 0x4df   :  { %v2969_v15 = vpop.eup %2968 }
 0x4e0   :  { %v749_v16 = vmul.f32 %v2969_v15, %v677_v55  ;;  %vm755_vm10 = vweird.f32 %v2969_v15 }
 0x4e1   :  { %vm756_vm12 = vmor %vm754_vm11, %vm755_vm10 }
 0x4e2   :  { %v750_v17 = vmul.f32 %v2969_v15, %v749_v16  ;;  %v2878_v16 = vld [vmem:[%s4407_s13 + $0x8] sm:$0xff] }
 0x4e4   :  { %v751_v22 = vmul.f32 0.5, %v750_v17 }
 0x4e6   :  { %v752_v23 = vsub.f32 1.5, %v751_v22 }
 0x4e8   :  { %v753_v58 = vmul.f32 %v2969_v15, %v752_v23 }
 0x4ea   :  { %v757_v25 = vsel %vm756_vm12, %v2969_v15, %v753_v58 }
 0x4eb   :  { %v765_v27 = vmul.f32 %v757_v25, %v3545_v39 }
 0x4ed   :  { %v774_v29 = vmul.f32 %v3555_v57, %v765_v27 }
 0x4ef   :  { %v3613_v31 = vadd.f32 %v3561_v10, %v774_v29  ;;  %v2884_v10 = vld [vmem:[%s4407_s13 + $0x38] sm:$0xff] }
 0x4f0   :  { %1241 = vmatpush.bf16.msra.mxu3 %v2884_v10  ;;  %v2877_v10 = vld [vmem:[%s4407_s13] sm:$0xff] }
 0x4f1   :  { %v787_v33 = vpack.c.bf16 %v3613_v31, %v3610_v30 }
 0x4f3   :  { %2728 = vmatmul.msk.bf16.gmra.mxu2 %vm101_vm0, %v787_v33 }
 0x4f4   :  { %1242 = vmatpush.bf16.msra.mxu3 %v2883_v36 }
 0x4f8   :  { %1243 = vmatpush.bf16.msra.mxu3 %v2882_v40 }
 0x4fb   :  { %v829_v39 = vpop.f32.mrf.mxu2 }
 0x4fc   :  { %v3624_v34 = vadd.f32 %v3621_v20, %v829_v39  ;;  %1244 = vmatpush.bf16.msra.mxu3 %v2881_v44 }
 0x4fe   :  { %v3627_v57 = vmul.f32 0.70710677, %v3624_v34 }
 0x500   :  { %v865_v26 = vand.u32 2147483647, %v3627_v57  ;;  %1245 = vmatpush.bf16.msra.mxu3 %v2880_v52  ;;  %vm1129_vm11 = vcmp.ge.f32.partialorder %v3627_v57, 0.0 }
 0x502   :  { %v873_v6 = vmul.f32 0.3275911, %v865_v26  ;;  %v1081_v8 = vsub.f32 0.0, %v865_v26 }
 0x503   :  { %v831_v35 = vpop.f32.mrf.mxu2 }
 0x504   :  { %v881_v37 = vadd.f32 1.0, %v873_v6  ;;  %v3637_v7 = vadd.f32 %v3621_v20, %v831_v35  ;;  %1246 = vmatpush.bf16.msra.mxu3 %v2879_v62  ;;  %v1089_v18 = vmul.f32 %v1081_v8, %v865_v26 }
 0x506   :  { %2970 = vrcp.f32 %v881_v37  ;;  %v3640_v32 = vmul.f32 0.70710677, %v3637_v7  ;;  %v900_v47 = vand.u32 2147483648, %v881_v37  ;;  %v898_v50 = vand.u32 2147483647, %v881_v37 }
 0x507   :  { %vm894_vm14 = vweird.f32 %v881_v37  ;;  %v1097_v6 = vmul.f32 1.442695, %v1089_v18 }
 0x508   :  { %v3646_v4 = vand.u32 2147483647, %v3640_v32  ;;  %v901_v59 = vor.u32 1.1754944e-38, %v900_v47  ;;  %vm899_vm2 = vcmp.eq.f32.partialorder %v898_v50, 8.507059e+37  ;;  %1247 = vmatpush.bf16.msra.mxu3 %v2878_v16 }
 0x50a   :  { %v874_v41 = vmul.f32 0.3275911, %v3646_v4  ;;  %v1082_v40 = vsub.f32 0.0, %v3646_v4 }
 0x50b   :  { %v834_v42 = vpop.f32.mrf.mxu2 }
 0x50c   :  { %v2971_v5 = vpop.eup %2970  ;;  %v3650_v43 = vadd.f32 %v3621_v20, %v834_v42  ;;  %v882_v2 = vadd.f32 1.0, %v874_v41  ;;  %1248 = vmatpush.bf16.msra.mxu3 %v2877_v10  ;;  %v1090_v52 = vmul.f32 %v1082_v40, %v3646_v4 }
 0x50d   :  { %v890_v60 = vmul.f32 %v2971_v5, %v881_v37  ;;  %vm895_vm13 = vweird.f32 %v2971_v5 }
 0x50e   :  { %v3656_v45 = vmul.f32 0.70710677, %v3650_v43  ;;  %2972 = vrcp.f32 %v882_v2  ;;  %vm896_vm15 = vmor %vm894_vm14, %vm895_vm13  ;;  %v915_v22 = vand.u32 2147483648, %v882_v2  ;;  %v913_v24 = vand.u32 2147483647, %v882_v2 }
 0x50f   :  { %v891_v46 = vsub.f32 1.0, %v890_v60  ;;  %vm909_vm4 = vweird.f32 %v882_v2  ;;  %vm1130_vm13 = vcmp.ge.f32.partialorder %v3640_v32, 0.0 }
 0x510   :  { %v3659_v48 = vand.u32 2147483647, %v3656_v45  ;;  %v916_v35 = vor.u32 1.1754944e-38, %v915_v22  ;;  %vm914_vm6 = vcmp.eq.f32.partialorder %v913_v24, 8.507059e+37 }
 0x511   :  { %v892_v3 = vmul.f32 %v2971_v5, %v891_v46 }
 0x512   :  { %v875_v13 = vmul.f32 0.3275911, %v3659_v48 }
 0x513   :  { %v893_v56 = vadd.f32 %v2971_v5, %v892_v3  ;;  %v836_v1 = vpop.f32.mrf.mxu2 }
 0x514   :  { %v3665_v61 = vadd.f32 1.0, %v875_v13  ;;  %v3668_v12 = vadd.f32 %v3621_v20, %v836_v1  ;;  %v2973_v63 = vpop.eup %2972  ;;  %v1083_v13 = vsub.f32 0.0, %v3659_v48 }
 0x515   :  { %v897_v0 = vsel %vm896_vm15, %v2971_v5, %v893_v56  ;;  %v905_v14 = vmul.f32 %v2973_v63, %v882_v2  ;;  %vm910_vm3 = vweird.f32 %v2973_v63 }
 0x516   :  { %v3673_v55 = vsel %vm899_vm2, %v901_v59, %v897_v0  ;;  %2974 = vrcp.f32 %v3665_v61  ;;  %v3678_v51 = vmul.f32 0.70710677, %v3668_v12  ;;  %vm911_vm5 = vmor %vm909_vm4, %vm910_vm3  ;;  %vm924_vm8 = vweird.f32 %v3665_v61 }
 0x517   :  { %v1009_v11 = vmul.f32 1.0614054, %v3673_v55  ;;  %v906_v15 = vsub.f32 1.0, %v905_v14  ;;  %v1091_v22 = vmul.f32 %v1083_v13, %v3659_v48 }
 0x518   :  { %v3684_v58 = vand.u32 2147483647, %v3678_v51 }
 0x519   :  { %v1017_v17 = vadd.f32 -1.4531521, %v1009_v11  ;;  %v907_v23 = vmul.f32 %v2973_v63, %v906_v15  ;;  %v928_v11 = vand.u32 2147483647, %v3665_v61 }
 0x51a   :  { %v876_v33 = vmul.f32 0.3275911, %v3684_v58 }
 0x51b   :  { %v1025_v25 = vmul.f32 %v1017_v17, %v3673_v55  ;;  %v839_v27 = vpop.f32.mrf.mxu2  ;;  %v908_v29 = vadd.f32 %v2973_v63, %v907_v23  ;;  %v1099_v17 = vmul.f32 1.442695, %v1090_v52  ;;  %vm929_vm10 = vcmp.eq.f32.partialorder %v928_v11, 8.507059e+37 }
 0x51c   :  { %v2975_v28 = vpop.eup %2974  ;;  %v3689_v39 = vadd.f32 %v3621_v20, %v839_v27  ;;  %v3696_v41 = vadd.f32 1.0, %v876_v33 }
 0x51d   :  { %v1033_v26 = vadd.f32 1.4214138, %v1025_v25  ;;  %v920_v36 = vmul.f32 %v2975_v28, %v3665_v61  ;;  %v912_v37 = vsel %vm911_vm5, %v2973_v63, %v908_v29  ;;  %vm925_vm7 = vweird.f32 %v2975_v28 }
 0x51e   :  { %v3699_v5 = vsel %vm914_vm6, %v916_v35, %v912_v37  ;;  %v3702_v60 = vmul.f32 0.70710677, %v3689_v39  ;;  %2976 = vrcp.f32 %v3696_v41  ;;  %v930_v63 = vand.u32 2147483648, %v3665_v61  ;;  %vm3722_vm9 = vmor %vm924_vm8, %vm925_vm7 }
 0x51f   :  { %v1041_v42 = vmul.f32 %v1033_v26, %v3673_v55  ;;  %v921_v44 = vsub.f32 1.0, %v920_v36  ;;  %v1010_v2 = vmul.f32 1.0614054, %v3699_v5  ;;  %2978 = vpow2.f32 %v1097_v6 }
 0x520   :  { %v3707_v3 = vand.u32 2147483647, %v3702_v60  ;;  %v931_v33 = vor.u32 1.1754944e-38, %v930_v63  ;;  %v3740_v6 = vmul.f32 0.5, %v3624_v34  ;;  %v945_v34 = vand.u32 2147483648, %v3696_v41 }
 0x521   :  { %v1049_v46 = vadd.f32 -0.28449672, %v1041_v42  ;;  %v922_v47 = vmul.f32 %v2975_v28, %v921_v44  ;;  %v1018_v50 = vadd.f32 -1.4531521, %v1010_v2  ;;  %v1084_v44 = vsub.f32 0.0, %v3684_v58 }
 0x522   :  { %v877_v1 = vmul.f32 0.3275911, %v3707_v3  ;;  %vm939_vm14 = vweird.f32 %v3696_v41  ;;  %v946_v11 = vor.u32 1.1754944e-38, %v945_v34 }
 0x523   :  { %v1057_v56 = vmul.f32 %v1049_v46, %v3673_v55  ;;  %v841_v59 = vpop.f32.mrf.mxu2  ;;  %v1026_v62 = vmul.f32 %v1018_v50, %v3699_v5  ;;  %v923_v8 = vadd.f32 %v2975_v28, %v922_v47 }
 0x524   :  { %v3716_v0 = vadd.f32 %v3621_v20, %v841_v59  ;;  %v3719_v4 = vadd.f32 1.0, %v877_v1  ;;  %v2977_v15 = vpop.eup %2976  ;;  %v850_v59 = vmul.f32 0.5, %v3637_v7 }
 0x525   :  { %v1065_v14 = vadd.f32 0.2548296, %v1057_v56  ;;  %v1034_v16 = vadd.f32 1.4214138, %v1026_v62  ;;  %v935_v25 = vmul.f32 %v2977_v15, %v3696_v41  ;;  %v927_v61 = vsel %vm3722_vm9, %v2975_v28, %v923_v8  ;;  %v2979_v27 = vpop.eup %2978 }
 0x526   :  { %v3728_v23 = vmul.f32 0.70710677, %v3716_v0  ;;  %2980 = vrcp.f32 %v3719_v4  ;;  %v3742_v35 = vsel %vm929_vm10, %v931_v33, %v927_v61  ;;  %v1101_v28 = vmul.f32 1.442695, %v1091_v22 }
 0x527   :  { %v1073_v24 = vmul.f32 %v1065_v14, %v3673_v55  ;;  %v1042_v29 = vmul.f32 %v1034_v16, %v3699_v5  ;;  %v936_v26 = vsub.f32 1.0, %v935_v25  ;;  %2982 = vpow2.f32 %v1099_v17 }
 0x528   :  { %v3737_v48 = vand.u32 2147483647, %v3728_v23  ;;  %v1011_v2 = vmul.f32 1.0614054, %v3742_v35  ;;  %vm940_vm12 = vweird.f32 %v2977_v15  ;;  %v943_v56 = vand.u32 2147483647, %v3696_v41 }
 0x529   :  { %v1113_v10 = vmul.f32 %v2979_v27, %v1073_v24  ;;  %v1050_v55 = vadd.f32 -0.28449672, %v1042_v29  ;;  %v937_v36 = vmul.f32 %v2977_v15, %v936_v26  ;;  %vm941_vm15 = vmor %vm939_vm14, %vm940_vm12  ;;  %v1092_v16 = vmul.f32 %v1084_v44, %v3684_v58 }
 0x52a   :  { %v878_v37 = vmul.f32 0.3275911, %v3737_v48  ;;  %v1019_v1 = vadd.f32 -1.4531521, %v1011_v2  ;;  %v960_v41 = vand.u32 2147483648, %v3719_v4  ;;  %vm944_vm2 = vcmp.eq.f32.partialorder %v943_v56, 8.507059e+37 }
 0x52b   :  { %v1121_v40 = vsub.f32 1.0, %v1113_v10  ;;  %v1058_v42 = vmul.f32 %v1050_v55, %v3699_v5  ;;  %v938_v50 = vadd.f32 %v2977_v15, %v937_v36  ;;  %v958_v25 = vand.u32 2147483647, %v3719_v4 }
 0x52c   :  { %v2981_v46 = vpop.eup %2980  ;;  %v3750_v47 = vadd.f32 1.0, %v878_v37  ;;  %v1027_v7 = vmul.f32 %v1019_v1, %v3742_v35  ;;  %v1103_v33 = vmul.f32 1.442695, %v1092_v16  ;;  %vm954_vm4 = vweird.f32 %v3719_v4 }
 0x52d   :  { %v1066_v52 = vadd.f32 0.2548296, %v1058_v42  ;;  %v950_v13 = vmul.f32 %v2981_v46, %v3719_v4  ;;  %v1137_v62 = vsub.f32 0.0, %v1121_v40  ;;  %v2983_v14 = vpop.eup %2982  ;;  %v942_v17 = vsel %vm941_vm15, %v2977_v15, %v938_v50 }
 0x52e   :  { %2984 = vrcp.f32 %v3750_v47  ;;  %vm955_vm3 = vweird.f32 %v2981_v46  ;;  %v3763_v24 = vsel %vm944_vm2, %v946_v11, %v942_v17  ;;  %v1085_v10 = vsub.f32 0.0, %v3707_v3 }
 0x52f   :  { %v1074_v63 = vmul.f32 %v1066_v52, %v3699_v5  ;;  %2986 = vpow2.f32 %v1101_v28  ;;  %v951_v8 = vsub.f32 1.0, %v950_v13  ;;  %v1035_v5 = vadd.f32 1.4214138, %v1027_v7  ;;  %vm956_vm5 = vmor %vm954_vm4, %vm955_vm3 }
 0x530   :  { %v1145_v61 = vsel %vm1129_vm11, %v1121_v40, %v1137_v62  ;;  %v1012_v58 = vmul.f32 1.0614054, %v3763_v24  ;;  %v961_v36 = vor.u32 1.1754944e-38, %v960_v41  ;;  %vm959_vm6 = vcmp.eq.f32.partialorder %v958_v25, 8.507059e+37 }
 0x531   :  { %v1114_v18 = vmul.f32 %v2983_v14, %v1074_v63  ;;  %v952_v22 = vmul.f32 %v2981_v46, %v951_v8  ;;  %v1043_v26 = vmul.f32 %v1035_v5, %v3742_v35  ;;  %v1153_v40 = vadd.f32 1.0, %v1145_v61 }
 0x532   :  { %v1020_v37 = vadd.f32 -1.4531521, %v1012_v58  ;;  %v975_v13 = vand.u32 2147483648, %v3750_v47  ;;  %v973_v8 = vand.u32 2147483647, %v3750_v47  ;;  %v1093_v16 = vmul.f32 %v1085_v10, %v3707_v3 }
 0x533   :  { %v1122_v27 = vsub.f32 1.0, %v1114_v18  ;;  %v953_v15 = vadd.f32 %v2981_v46, %v952_v22  ;;  %v1051_v42 = vadd.f32 -0.28449672, %v1043_v26  ;;  %vm969_vm8 = vweird.f32 %v3750_v47 }
 0x534   :  { %v2985_v29 = vpop.eup %2984  ;;  %v1028_v34 = vmul.f32 %v1020_v37, %v3763_v24  ;;  %v976_v22 = vor.u32 1.1754944e-38, %v975_v13  ;;  %2988 = vpow2.f32 %v1103_v33  ;;  %vm974_vm10 = vcmp.eq.f32.partialorder %v973_v8, 8.507059e+37 }
 0x535   :  { %v2987_v55 = vpop.eup %2986  ;;  %v1138_v28 = vsub.f32 0.0, %v1122_v27  ;;  %v965_v57 = vmul.f32 %v2985_v29, %v3750_v47  ;;  %v957_v44 = vsel %vm956_vm5, %v2981_v46, %v953_v15  ;;  %v1059_v56 = vmul.f32 %v1051_v42, %v3742_v35 }
 0x536   :  { %v962_v50 = vsel %vm959_vm6, %v961_v36, %v957_v44  ;;  %vm970_vm7 = vweird.f32 %v2985_v29  ;;  %v1036_v63 = vadd.f32 1.4214138, %v1028_v34  ;;  %v1161_v46 = vmul.f32 %v1153_v40, %v3740_v6 }
 0x537   :  { %v1146_v2 = vsel %vm1130_vm13, %v1122_v27, %v1138_v28  ;;  %v966_v4 = vsub.f32 1.0, %v965_v57  ;;  %v1013_v1 = vmul.f32 1.0614054, %v962_v50  ;;  %v1067_v32 = vadd.f32 0.2548296, %v1059_v56  ;;  %vm971_vm9 = vmor %vm969_vm8, %vm970_vm7 }
 0x538   :  { %v1154_v52 = vadd.f32 1.0, %v1146_v2  ;;  %v1044_v17 = vmul.f32 %v1036_v63, %v3763_v24  ;;  %v1086_v6 = vsub.f32 0.0, %v3737_v48  ;;  %v1105_v47 = vmul.f32 1.442695, %v1093_v16 }
 0x539   :  { %v967_v62 = vmul.f32 %v2985_v29, %v966_v4  ;;  %v1021_v11 = vadd.f32 -1.4531521, %v1013_v1  ;;  %v1075_v41 = vmul.f32 %v1067_v32, %v3742_v35  ;;  %vm1131_vm11 = vcmp.ge.f32.partialorder %v3656_v45, 0.0 }
 0x53a   :  { %v1162_v14 = vmul.f32 %v1154_v52, %v850_v59  ;;  %v1052_v25 = vadd.f32 -0.28449672, %v1044_v17  ;;  %v1094_v35 = vmul.f32 %v1086_v6, %v3737_v48  ;;  %v2989_v57 = vpop.eup %2988  ;;  %2990 = vpow2.f32 %v1105_v47 }
 0x53b   :  { %v968_v7 = vadd.f32 %v2985_v29, %v967_v62  ;;  %v1029_v5 = vmul.f32 %v1021_v11, %v962_v50  ;;  %v1115_v59 = vmul.f32 %v2987_v55, %v1075_v41  ;;  %vm1132_vm12 = vcmp.ge.f32.partialorder %v3678_v51, 0.0 }
 0x53c   :  { %v1169_v18 = vpack.c.bf16 %v1162_v14, %v1161_v46  ;;  %v1060_v58 = vmul.f32 %v1052_v25, %v3763_v24  ;;  %v1107_v2 = vmul.f32 1.442695, %v1094_v35  ;;  %v851_v14 = vmul.f32 0.5, %v3650_v43 }
 0x53d   :  { %v972_v61 = vsel %vm971_vm9, %v2985_v29, %v968_v7  ;;  %v1037_v27 = vadd.f32 1.4214138, %v1029_v5  ;;  %v1123_v10 = vsub.f32 1.0, %v1115_v59  ;;  %v852_v45 = vmul.f32 0.5, %v3668_v12 }
 0x53e   :  { %1249 = vmatmul.bf16.vlgmr.msra.gmra.mxu3 %v1169_v18  ;;  %v977_v3 = vsel %vm974_vm10, %v976_v22, %v972_v61  ;;  %v1068_v28 = vadd.f32 0.2548296, %v1060_v58  ;;  %2992 = vpow2.f32 %v1107_v2  ;;  %vm1133_vm13 = vcmp.ge.f32.partialorder %v3702_v60, 0.0 }
 0x53f   :  { %v1014_v15 = vmul.f32 1.0614054, %v977_v3  ;;  %v1045_v26 = vmul.f32 %v1037_v27, %v962_v50  ;;  %v1139_v37 = vsub.f32 0.0, %v1123_v10  ;;  %vm1134_vm14 = vcmp.ge.f32.partialorder %v3728_v23, 0.0 }
 0x540   :  { %v1076_v29 = vmul.f32 %v1068_v28, %v3763_v24  ;;  %v2991_v1 = vpop.eup %2990  ;;  %v854_v12 = vmul.f32 0.5, %v3716_v0  ;;  %v853_v27 = vmul.f32 0.5, %v3689_v39 }
 0x541   :  { %v1022_v36 = vadd.f32 -1.4531521, %v1014_v15  ;;  %v1053_v33 = vadd.f32 -0.28449672, %v1045_v26  ;;  %v1147_v52 = vsel %vm1131_vm11, %v1123_v10, %v1139_v37 }
 0x542   :  { %v1116_v42 = vmul.f32 %v2989_v57, %v1076_v29  ;;  %v1155_v24 = vadd.f32 1.0, %v1147_v52 }
 0x543   :  { %v1030_v40 = vmul.f32 %v1022_v36, %v977_v3  ;;  %v1061_v55 = vmul.f32 %v1053_v33, %v962_v50 }
 0x544   :  { %v1124_v34 = vsub.f32 1.0, %v1116_v42  ;;  %v1163_v17 = vmul.f32 %v1155_v24, %v851_v14  ;;  %v2993_v18 = vpop.eup %2992 }
 0x545   :  { %v1038_v44 = vadd.f32 1.4214138, %v1030_v40  ;;  %v1069_v4 = vadd.f32 0.2548296, %v1061_v55 }
 0x546   :  { %v1140_v48 = vsub.f32 0.0, %v1124_v34 }
 0x547   :  { %v1046_v13 = vmul.f32 %v1038_v44, %v977_v3  ;;  %v1077_v56 = vmul.f32 %v1069_v4, %v962_v50 }
 0x548   :  { %v1148_v8 = vsel %vm1132_vm12, %v1124_v34, %v1140_v48 }
 0x549   :  { %v1054_v62 = vadd.f32 -0.28449672, %v1046_v13  ;;  %v1117_v63 = vmul.f32 %v2991_v1, %v1077_v56  ;;  %v1156_v32 = vadd.f32 1.0, %v1148_v8 }
 0x54b   :  { %v1062_v46 = vmul.f32 %v1054_v62, %v977_v3  ;;  %v1125_v16 = vsub.f32 1.0, %v1117_v63  ;;  %v1164_v7 = vmul.f32 %v1156_v32, %v852_v45 }
 0x54d   :  { %v1070_v11 = vadd.f32 0.2548296, %v1062_v46  ;;  %v1170_v22 = vpack.c.bf16 %v1164_v7, %v1163_v17  ;;  %v1141_v5 = vsub.f32 0.0, %v1125_v16 }
 0x54f   :  { %v1078_v50 = vmul.f32 %v1070_v11, %v977_v3  ;;  %1254 = vmatmul.bf16.gmra.mxu3 %v1170_v22  ;;  %v1149_v61 = vsel %vm1133_vm13, %v1125_v16, %v1141_v5 }
 0x550   :  { %v1157_v6 = vadd.f32 1.0, %v1149_v61 }
 0x551   :  { %v1118_v41 = vmul.f32 %v2993_v18, %v1078_v50 }
 0x552   :  { %v1165_v47 = vmul.f32 %v1157_v6, %v853_v27 }
 0x553   :  { %v1126_v51 = vsub.f32 1.0, %v1118_v41 }
 0x555   :  { %v1142_v25 = vsub.f32 0.0, %v1126_v51 }
 0x557   :  { %v1150_v43 = vsel %vm1134_vm14, %v1126_v51, %v1142_v25 }
 0x558   :  { %v1158_v59 = vadd.f32 1.0, %v1150_v43 }
 0x55a   :  { %v1166_v3 = vmul.f32 %v1158_v59, %v854_v12 }
 0x55c   :  { %v1171_v58 = vpack.c.bf16 %v1166_v3, %v1165_v47 }
 0x55f   :  { %1259 = vmatmul.bf16.gmra.mxu3 %v1171_v58 }
 0x576   :  { %v844_v15 = vpop.f32.mrf.mxu2 }
 0x577   :  { %v3798_v10 = vadd.f32 %v3621_v20, %v844_v15 }
 0x579   :  { %v3801_v60 = vmul.f32 0.70710677, %v3798_v10 }
 0x57b   :  { %v871_v23 = vand.u32 2147483647, %v3801_v60  ;;  %vm1135_vm9 = vcmp.ge.f32.partialorder %v3801_v60, 0.0  ;;  %v2916_v60 = vld [vmem:[%s4408_s14] ss:$0 sm:$0xff] }
 0x57d   :  { %v879_v26 = vmul.f32 0.3275911, %v871_v23  ;;  %v1087_v52 = vsub.f32 0.0, %v871_v23 }
 0x57e   :  { %v846_v28 = vpop.f32.mrf.mxu2 }
 0x57f   :  { %v887_v0 = vadd.f32 1.0, %v879_v26  ;;  %v3805_v36 = vadd.f32 %v3621_v20, %v846_v28  ;;  %v1095_v63 = vmul.f32 %v1087_v52, %v871_v23 }
 0x581   :  { %2994 = vrcp.f32 %v887_v0  ;;  %v3808_v39 = vmul.f32 0.70710677, %v3805_v36  ;;  %v990_v55 = vand.u32 2147483648, %v887_v0  ;;  %v988_v44 = vand.u32 2147483647, %v887_v0 }
 0x582   :  { %vm984_vm2 = vweird.f32 %v887_v0  ;;  %v1109_v16 = vmul.f32 1.442695, %v1095_v63 }
 0x583   :  { %v872_v35 = vand.u32 2147483647, %v3808_v39  ;;  %v991_v20 = vor.u32 1.1754944e-38, %v990_v55  ;;  %vm989_vm4 = vcmp.eq.f32.partialorder %v988_v44, 8.507059e+37  ;;  %vm1136_vm10 = vcmp.ge.f32.partialorder %v3808_v39, 0.0 }
 0x584   :  { %v856_v44 = vmul.f32 0.5, %v3805_v36 }
 0x585   :  { %v880_v33 = vmul.f32 0.3275911, %v872_v35  ;;  %v1088_v7 = vsub.f32 0.0, %v872_v35 }
 0x587   :  { %v2995_v57 = vpop.eup %2994  ;;  %v888_v37 = vadd.f32 1.0, %v880_v33  ;;  %v1096_v51 = vmul.f32 %v1088_v7, %v872_v35 }
 0x588   :  { %v980_v29 = vmul.f32 %v2995_v57, %v887_v0  ;;  %vm985_vm15 = vweird.f32 %v2995_v57 }
 0x589   :  { %2996 = vrcp.f32 %v888_v37  ;;  %vm986_vm3 = vmor %vm984_vm2, %vm985_vm15  ;;  %v1005_v62 = vand.u32 2147483648, %v888_v37  ;;  %v1003_v46 = vand.u32 2147483647, %v888_v37  ;;  %vm999_vm6 = vweird.f32 %v888_v37 }
 0x58a   :  { %v981_v40 = vsub.f32 1.0, %v980_v29  ;;  %2998 = vpow2.f32 %v1109_v16  ;;  %v1111_v6 = vmul.f32 1.442695, %v1096_v51 }
 0x58b   :  { %v1006_v32 = vor.u32 1.1754944e-38, %v1005_v62  ;;  %vm1004_vm8 = vcmp.eq.f32.partialorder %v1003_v46, 8.507059e+37 }
 0x58c   :  { %v982_v42 = vmul.f32 %v2995_v57, %v981_v40  ;;  %3000 = vpow2.f32 %v1111_v6 }
 0x58e   :  { %v983_v2 = vadd.f32 %v2995_v57, %v982_v42  ;;  %v855_v42 = vmul.f32 0.5, %v3798_v10 }
 0x58f   :  { %v2997_v4 = vpop.eup %2996 }
 0x590   :  { %v987_v34 = vsel %vm986_vm3, %v2995_v57, %v983_v2  ;;  %v995_v13 = vmul.f32 %v2997_v4, %v888_v37  ;;  %vm1000_vm5 = vweird.f32 %v2997_v4  ;;  %v2999_v27 = vpop.eup %2998 }
 0x591   :  { %v992_v56 = vsel %vm989_vm4, %v991_v20, %v987_v34  ;;  %vm1001_vm7 = vmor %vm999_vm6, %vm1000_vm5 }
 0x592   :  { %v1015_v1 = vmul.f32 1.0614054, %v992_v56  ;;  %v996_v48 = vsub.f32 1.0, %v995_v13  ;;  %v3001_v33 = vpop.eup %3000 }
 0x594   :  { %v1023_v24 = vadd.f32 -1.4531521, %v1015_v1  ;;  %v997_v8 = vmul.f32 %v2997_v4, %v996_v48 }
 0x596   :  { %v1031_v14 = vmul.f32 %v1023_v24, %v992_v56  ;;  %v998_v45 = vadd.f32 %v2997_v4, %v997_v8 }
 0x598   :  { %v1039_v11 = vadd.f32 1.4214138, %v1031_v14  ;;  %v1002_v17 = vsel %vm1001_vm7, %v2997_v4, %v998_v45 }
 0x599   :  { %v1007_v50 = vsel %vm1004_vm8, %v1006_v32, %v1002_v17 }
 0x59a   :  { %v1047_v18 = vmul.f32 %v1039_v11, %v992_v56  ;;  %v1016_v22 = vmul.f32 1.0614054, %v1007_v50 }
 0x59c   :  { %v1055_v41 = vadd.f32 -0.28449672, %v1047_v18  ;;  %v1024_v5 = vadd.f32 -1.4531521, %v1016_v22 }
 0x59e   :  { %v1063_v25 = vmul.f32 %v1055_v41, %v992_v56  ;;  %v1032_v61 = vmul.f32 %v1024_v5, %v1007_v50 }
 0x5a0   :  { %v1071_v43 = vadd.f32 0.2548296, %v1063_v25  ;;  %v1040_v12 = vadd.f32 1.4214138, %v1032_v61 }
 0x5a2   :  { %v1079_v59 = vmul.f32 %v1071_v43, %v992_v56  ;;  %v1048_v3 = vmul.f32 %v1040_v12, %v1007_v50 }
 0x5a4   :  { %v1119_v47 = vmul.f32 %v2999_v27, %v1079_v59  ;;  %v1056_v58 = vadd.f32 -0.28449672, %v1048_v3 }
 0x5a6   :  { %v1064_v15 = vmul.f32 %v1056_v58, %v1007_v50  ;;  %v1127_v23 = vsub.f32 1.0, %v1119_v47 }
 0x5a8   :  { %v1072_v26 = vadd.f32 0.2548296, %v1064_v15  ;;  %v1143_v0 = vsub.f32 0.0, %v1127_v23 }
 0x5aa   :  { %v1080_v28 = vmul.f32 %v1072_v26, %v1007_v50  ;;  %v1151_v29 = vsel %vm1135_vm9, %v1127_v23, %v1143_v0 }
 0x5ab   :  { %v1159_v40 = vadd.f32 1.0, %v1151_v29 }
 0x5ac   :  { %v1120_v57 = vmul.f32 %v3001_v33, %v1080_v28 }
 0x5ad   :  { %v1167_v20 = vmul.f32 %v1159_v40, %v855_v42 }
 0x5ae   :  { %v1128_v35 = vsub.f32 1.0, %v1120_v57 }
 0x5b0   :  { %v1144_v37 = vsub.f32 0.0, %v1128_v35 }
 0x5b2   :  { %v1152_v55 = vsel %vm1136_vm10, %v1128_v35, %v1144_v37 }
 0x5b3   :  { %v1160_v2 = vadd.f32 1.0, %v1152_v55 }
 0x5b5   :  { %v1168_v4 = vmul.f32 %v1160_v2, %v856_v44 }
 0x5b7   :  { %v1172_v34 = vpack.c.bf16 %v1168_v4, %v1167_v20 }
 0x5b9   :  { %1264 = vmatmul.bf16.gmra.mxu3 %v1172_v34 }
 0x5c1   :  { %v1250_v52 = vpop.f32.mrf.mxu3 }
 0x5c2   :  { %v1251_v13 = vadd.f32 %v2916_v60, %v1250_v52  ;;  %v2896_v52 = vld [vmem:[%s4410_s18 + $0x34] sm:$0xf0] }
 0x5c4   :  { %v1270_v56 = vadd.f32 %v1251_v13, %v3568_v19 }
 0x5c6   :  { %v1280_v39 = vsel %vm101_vm0, %v1270_v56, 0.0 }
 0x5c7   :  { %1281 = vadd.xlane.f32.xlu2 %v1280_v39  ;;  %v2894_v39 = vld [vmem:[%s4410_s18 + $0x24] sm:$0xf0] }
 0x5c9   :  { %v1252_v1 = vpop.f32.mrf.mxu3 }
 0x5ca   :  { %v1253_v10 = vadd.f32 %v2916_v60, %v1252_v1 }
 0x5cc   :  { %v1271_v36 = vadd.f32 %v1253_v10, %v3571_v21 }
 0x5ce   :  { %v1283_v48 = vsel %vm101_vm0, %v1271_v36, 0.0 }
 0x5cf   :  { %1284 = vadd.xlane.f32.xlu0 %v1283_v48 }
 0x5d2   :  { %v1255_v62 = vpop.f32.mrf.mxu3 }
 0x5d3   :  { %v1256_v24 = vadd.f32 %v2916_v60, %v1255_v62 }
 0x5d5   :  { %v1272_v63 = vadd.f32 %v1256_v24, %v3582_v38  ;;  %v2795_v24 = vld [vmem:[%s4410_s18 + $0x10] sm:$0xf] }
 0x5d7   :  { %v1286_v8 = vsel %vm101_vm0, %v1272_v63, 0.0 }
 0x5d8   :  { %1287 = vadd.xlane.f32.xlu1 %v1286_v8 }
 0x5da   :  { %v1257_v46 = vpop.f32.mrf.mxu3 }
 0x5db   :  { %v1258_v14 = vadd.f32 %v2916_v60, %v1257_v46 }
 0x5dd   :  { %v1273_v19 = vadd.f32 %v1258_v14, %v3585_v9 }
 0x5df   :  { %v1289_v45 = vsel %vm101_vm0, %v1273_v19, 0.0 }
 0x5e0   :  { %1290 = vadd.xlane.f32.xlu2 %v1289_v45  ;;  %v2771_v45 = vld [vmem:[%s4411_s16 + $0x10] sm:$0xf] }
 0x5e2   :  { %v1260_v32 = vpop.f32.mrf.mxu3 }
 0x5e3   :  { %v1261_v11 = vadd.f32 %v2916_v60, %v1260_v32  ;;  %v2888_v32 = vld [vmem:[%s4411_s16 + $0x14] sm:$0xf0] }
 0x5e5   :  { %v1274_v21 = vadd.f32 %v1261_v11, %v3595_v53  ;;  %v2887_v11 = vld [vmem:[%s4411_s16 + $0x14] sm:$0xf] }
 0x5e7   :  { %v1292_v16 = vsel %vm101_vm0, %v1274_v21, 0.0 }
 0x5e8   :  { %1293 = vadd.xlane.f32.xlu0 %v1292_v16  ;;  %v2773_v16 = vld [vmem:[%s4411_s16 + $0x18] sm:$0xf0] }
 0x5ea   :  { %v1262_v17 = vpop.f32.mrf.mxu3 }
 0x5eb   :  { %v1263_v7 = vadd.f32 %v2916_v60, %v1262_v17  ;;  %v2787_v17 = vld [vmem:[%s4410_s18] sm:$0xf] }
 0x5ed   :  { %v1275_v38 = vadd.f32 %v1263_v7, %v3598_v54  ;;  %v2890_v7 = vld [vmem:[%s4410_s18 + $0x4] sm:$0xf0] }
 0x5ef   :  { %v1295_v50 = vsel %vm101_vm0, %v1275_v38, 0.0 }
 0x5f0   :  { %1296 = vadd.xlane.f32.xlu1 %v1295_v50  ;;  %v2776_v50 = vor.u32 %v2887_v11, %v2773_v16 }
 0x5f2   :  { %1555 = vmatpush.bf16.msra.mxu1 %v2776_v50 }
 0x63a   :  { %v1282_v18 = vpop.xlane.xlu2 %1281 }
 0x63b   :  { %v1304_v9 = vmul.f32 %v1282_v18, %v3490_v49  ;;  %v3928_v18 = vor.u32 %v2890_v7, %v2787_v17 }
 0x63c   :  { %v1265_v22 = vpop.f32.mrf.mxu3 }
 0x63d   :  { %v3831_v41 = vsub.f32 %v1270_v56, %v1304_v9  ;;  %v1266_v5 = vadd.f32 %v2916_v60, %v1265_v22  ;;  %v2803_v56 = vld [vmem:[%s4410_s18 + $0x20] sm:$0xf] }
 0x63e   :  { %v3889_v1 = vor.u32 %v2894_v39, %v2803_v56 }
 0x63f   :  { %v1276_v51 = vadd.f32 %v1266_v5, %v3610_v30  ;;  %v1320_v53 = vmul.f32 %v3831_v41, %v3831_v41 }
 0x641   :  { %v1298_v25 = vsel %vm101_vm0, %v1276_v51, 0.0  ;;  %v1328_v61 = vsel %vm101_vm0, %v1320_v53, 0.0  ;;  %v2763_v53 = vld [vmem:[%s4411_s16] sm:$0xf] }
 0x642   :  { %v1285_v54 = vpop.xlane.xlu0 %1284  ;;  %1299 = vadd.xlane.f32.xlu1 %v1298_v25  ;;  %1329 = vadd.xlane.f32.xlu2 %v1328_v61  ;;  %v2886_v25 = vld [vmem:[%s4411_s16 + $0x4] sm:$0xf0]  ;;  %v2885_v61 = vld [vmem:[%s4411_s16 + $0x4] sm:$0xf] }
 0x643   :  { %v1305_v43 = vmul.f32 %v1285_v54, %v3490_v49  ;;  %v2764_v54 = vor.u32 %v2886_v25, %v2763_v53 }
 0x644   :  { %v1267_v12 = vpop.f32.mrf.mxu3 }
 0x645   :  { %v3839_v6 = vsub.f32 %v1271_v36, %v1305_v43  ;;  %v1268_v59 = vadd.f32 %v2916_v60, %v1267_v12  ;;  %v2811_v60 = vld [vmem:[%s4410_s18 + $0x30] sm:$0xf]  ;;  %v2765_v43 = vld [vmem:[%s4411_s16 + $0x8] sm:$0xf0] }
 0x646   :  { %v3879_v13 = vor.u32 %v2896_v52, %v2811_v60 }
 0x647   :  { %v1321_v27 = vmul.f32 %v3839_v6, %v3839_v6  ;;  %v3844_v30 = vadd.f32 %v1268_v59, %v3613_v31 }
 0x648   :  { %1633 = vmatpush.bf16.msrb.mxu2 %v3879_v13  ;;  %1748 = vmatpush.bf16.msrb.mxu3 %v3879_v13 }
 0x649   :  { %v1331_v3 = vsel %vm101_vm0, %v1321_v27, 0.0  ;;  %v1301_v47 = vsel %vm101_vm0, %v3844_v30, 0.0 }
 0x64a   :  { %1332 = vadd.xlane.f32.xlu0 %v1331_v3  ;;  %1302 = vadd.xlane.f32.xlu2 %v1301_v47  ;;  %v2768_v3 = vor.u32 %v2885_v61, %v2765_v43 }
 0x64b   :  { %v1288_v58 = vpop.xlane.xlu1 %1287 }
 0x64c   :  { %v1306_v15 = vmul.f32 %v1288_v58, %v3490_v49  ;;  %1634 = vmatpush.bf16.msrb.mxu2 %v3889_v1  ;;  %1749 = vmatpush.bf16.msrb.mxu3 %v3889_v1  ;;  %v3147_v58 = vmov 0  }
 0x64d   :  { %1556 = vmatpush.bf16.msra.mxu1 %v2768_v3 }
 0x64e   :  { %v3850_v23 = vsub.f32 %v1272_v63, %v1306_v15  ;;  %v2892_v63 = vld [vmem:[%s4410_s18 + $0x14] sm:$0xf0] }
 0x64f   :  { %v3901_v8 = vor.u32 %v2892_v63, %v2795_v24 }
 0x650   :  { %v1322_v26 = vmul.f32 %v3850_v23, %v3850_v23 }
 0x651   :  { %1635 = vmatpush.bf16.msrb.mxu2 %v3901_v8  ;;  %1750 = vmatpush.bf16.msrb.mxu3 %v3901_v8 }
 0x652   :  { %v1334_v28 = vsel %vm101_vm0, %v1322_v26, 0.0  ;;  %2093 = vmatpush.bf16.msrb.mxu1 %v3879_v13 }
 0x653   :  { %1335 = vadd.xlane.f32.xlu0 %v1334_v28  ;;  %v1291_v31 = vpop.xlane.xlu2 %1290 }
 0x654   :  { %v1307_v0 = vmul.f32 %v1291_v31, %v3490_v49 }
 0x655   :  { %1636 = vmatpush.bf16.msrb.mxu2 %v3928_v18  ;;  %1751 = vmatpush.bf16.msrb.mxu3 %v3928_v18 }
 0x656   :  { %v3856_v33 = vsub.f32 %v1273_v19, %v1307_v0  ;;  %2094 = vmatpush.bf16.msrb.mxu1 %v3889_v1 }
 0x658   :  { %v1323_v57 = vmul.f32 %v3856_v33, %v3856_v33  ;;  %1637 = vmatmul.bf16.vlgmr.msrb.gmra.mxu2 %v3147_v58 }
 0x659   :  { %1863 = vmatpush.bf16.msra.mxu3 %v3879_v13 }
 0x65a   :  { %v1337_v35 = vsel %vm101_vm0, %v1323_v57, 0.0  ;;  %2095 = vmatpush.bf16.msrb.mxu1 %v3901_v8 }
 0x65b   :  { %v1294_v29 = vpop.xlane.xlu0 %1293  ;;  %1338 = vadd.xlane.f32.xlu1 %v1337_v35 }
 0x65c   :  { %v1308_v37 = vmul.f32 %v1294_v29, %v3490_v49 }
 0x65d   :  { %1864 = vmatpush.bf16.msra.mxu3 %v3889_v1 }
 0x65e   :  { %v3862_v40 = vsub.f32 %v1274_v21, %v1308_v37  ;;  %v2772_v21 = vor.u32 %v2888_v32, %v2771_v45  ;;  %2096 = vmatpush.bf16.msrb.mxu1 %v3928_v18 }
 0x660   :  { %v1324_v55 = vmul.f32 %v3862_v40, %v3862_v40  ;;  %1526 = vmatpush.bf16.msra.mxu0 %v2772_v21 }
 0x661   :  { %1865 = vmatpush.bf16.msra.mxu3 %v3901_v8 }
 0x662   :  { %v1340_v42 = vsel %vm101_vm0, %v1324_v55, 0.0 }
 0x663   :  { %v1297_v44 = vpop.xlane.xlu1 %1296  ;;  %1341 = vadd.xlane.f32.xlu2 %v1340_v42 }
 0x664   :  { %v1309_v2 = vmul.f32 %v1297_v44, %v3490_v49  ;;  %1527 = vmatpush.bf16.msra.mxu0 %v2764_v54 }
 0x665   :  { %1866 = vmatpush.bf16.msra.mxu3 %v3928_v18 }
 0x666   :  { %v3868_v20 = vsub.f32 %v1275_v38, %v1309_v2 }
 0x668   :  { %v1325_v4 = vmul.f32 %v3868_v20, %v3868_v20 }
 0x66a   :  { %v1343_v34 = vsel %vm101_vm0, %v1325_v4, 0.0 }
 0x66b   :  { %1344 = vadd.xlane.f32.xlu0 %v1343_v34  ;;  %v3965_v34 = vld [vmem:[%s4409_s15] ss:$0 sm:$0xff] }
 0x6b5   :  { %v1300_v10 = vpop.xlane.xlu1 %1299  ;;  %v1330_v36 = vpop.xlane.xlu2 %1329 }
 0x6b6   :  { %v1310_v48 = vmul.f32 %v1300_v10, %v3490_v49  ;;  %v1352_v62 = vmul.f32 %v1330_v36, %v3490_v49 }
 0x6b8   :  { %v3903_v46 = vsub.f32 %v1276_v51, %v1310_v48  ;;  %v1360_v14 = vadd.f32 1e-12, %v1352_v62  ;;  %v3972_v48 = vld [vmem:[%s4409_s15 + $0x1] ss:$0 sm:$0xff] }
 0x6ba   :  { %3002 = vrsqrt.f32 %v1360_v14  ;;  %v1326_v19 = vmul.f32 %v3903_v46, %v3903_v46  ;;  %vm1374_vm12 = vweird.f32 %v1360_v14 }
 0x6bc   :  { %v1346_v38 = vsel %vm101_vm0, %v1326_v19, 0.0 }
 0x6bd   :  { %v1333_v9 = vpop.xlane.xlu0 %1332  ;;  %1347 = vadd.xlane.f32.xlu1 %v1346_v38  ;;  %v1303_v22 = vpop.xlane.xlu2 %1302 }
 0x6be   :  { %v1353_v5 = vmul.f32 %v1333_v9, %v3490_v49  ;;  %v1311_v51 = vmul.f32 %v1303_v22, %v3490_v49 }
 0x6c0   :  { %v3003_v12 = vpop.eup %3002  ;;  %v1361_v59 = vadd.f32 1e-12, %v1353_v5  ;;  %v3947_v27 = vsub.f32 %v3844_v30, %v1311_v51 }
 0x6c1   :  { %v1369_v47 = vmul.f32 %v3003_v12, %v1360_v14  ;;  %vm1375_vm11 = vweird.f32 %v3003_v12 }
 0x6c2   :  { %3004 = vrsqrt.f32 %v1361_v59  ;;  %v1327_v15 = vmul.f32 %v3947_v27, %v3947_v27  ;;  %vm1376_vm13 = vmor %vm1374_vm12, %vm1375_vm11  ;;  %vm1384_vm15 = vweird.f32 %v1361_v59 }
 0x6c3   :  { %v1370_v26 = vmul.f32 %v3003_v12, %v1369_v47 }
 0x6c4   :  { %v1349_v28 = vsel %vm101_vm0, %v1327_v15, 0.0 }
 0x6c5   :  { %v1371_v30 = vmul.f32 0.5, %v1370_v26  ;;  %1350 = vadd.xlane.f32.xlu2 %v1349_v28 }
 0x6c6   :  { %v1336_v29 = vpop.xlane.xlu0 %1335 }
 0x6c7   :  { %v1372_v31 = vsub.f32 1.5, %v1371_v30  ;;  %v1354_v37 = vmul.f32 %v1336_v29, %v3490_v49 }
 0x6c8   :  { %v3005_v0 = vpop.eup %3004 }
 0x6c9   :  { %v1373_v57 = vmul.f32 %v3003_v12, %v1372_v31  ;;  %v1379_v35 = vmul.f32 %v3005_v0, %v1361_v59  ;;  %v1362_v42 = vadd.f32 1e-12, %v1354_v37  ;;  %vm1385_vm14 = vweird.f32 %v3005_v0 }
 0x6ca   :  { %vm1386_vm2 = vmor %vm1384_vm15, %vm1385_vm14 }
 0x6cb   :  { %v1380_v55 = vmul.f32 %v3005_v0, %v1379_v35  ;;  %v1377_v44 = vsel %vm1376_vm13, %v3003_v12, %v1373_v57  ;;  %3006 = vrsqrt.f32 %v1362_v42  ;;  %vm1394_vm4 = vweird.f32 %v1362_v42 }
 0x6cc   :  { %v1448_v60 = vmul.f32 %v1377_v44, %v3831_v41 }
 0x6cd   :  { %v1381_v2 = vmul.f32 0.5, %v1380_v55 }
 0x6ce   :  { %v1339_v56 = vpop.xlane.xlu1 %1338  ;;  %v1457_v62 = vmul.f32 %v3965_v34, %v1448_v60 }
 0x6cf   :  { %v1382_v4 = vsub.f32 1.5, %v1381_v2  ;;  %v1355_v39 = vmul.f32 %v1339_v56, %v3490_v49 }
 0x6d0   :  { %v1466_v45 = vadd.f32 %v3972_v48, %v1457_v62 }
 0x6d1   :  { %v1383_v52 = vmul.f32 %v3005_v0, %v1382_v4  ;;  %v3007_v36 = vpop.eup %3006  ;;  %v1363_v63 = vadd.f32 1e-12, %v1355_v39 }
 0x6d2   :  { %v1389_v14 = vmul.f32 %v3007_v36, %v1362_v42  ;;  %vm1395_vm3 = vweird.f32 %v3007_v36 }
 0x6d3   :  { %v1387_v10 = vsel %vm1386_vm2, %v3005_v0, %v1383_v52  ;;  %3008 = vrsqrt.f32 %v1363_v63  ;;  %vm1396_vm5 = vmor %vm1394_vm4, %vm1395_vm3  ;;  %vm1404_vm7 = vweird.f32 %v1363_v63 }
 0x6d4   :  { %v1449_v24 = vmul.f32 %v1387_v10, %v3839_v6  ;;  %v1390_v19 = vmul.f32 %v3007_v36, %v1389_v14  ;;  %v2893_v14 = vld [vmem:[%s4410_s18 + $0x24] sm:$0xf] }
 0x6d6   :  { %v1458_v41 = vmul.f32 %v3965_v34, %v1449_v24  ;;  %v1391_v11 = vmul.f32 0.5, %v1390_v19  ;;  %v1342_v21 = vpop.xlane.xlu2 %1341 }
 0x6d7   :  { %v1356_v16 = vmul.f32 %v1342_v21, %v3490_v49 }
 0x6d8   :  { %v1467_v32 = vadd.f32 %v3972_v48, %v1458_v41  ;;  %v1392_v7 = vsub.f32 1.5, %v1391_v11  ;;  %v2805_v41 = vld [vmem:[%s4410_s18 + $0x28] sm:$0xf0] }
 0x6d9   :  { %v3009_v38 = vpop.eup %3008  ;;  %v1364_v50 = vadd.f32 1e-12, %v1356_v16  ;;  %v4019_v19 = vor.u32 %v2893_v14, %v2805_v41 }
 0x6da   :  { %v1474_v17 = vpack.c.bf16 %v1467_v32, %v1466_v45  ;;  %v1393_v6 = vmul.f32 %v3007_v36, %v1392_v7  ;;  %v1399_v9 = vmul.f32 %v3009_v38, %v1363_v63  ;;  %vm1405_vm6 = vweird.f32 %v3009_v38  ;;  %v2891_v45 = vld [vmem:[%s4410_s18 + $0x14] sm:$0xf]  ;;  %v2797_v32 = vld [vmem:[%s4410_s18 + $0x18] sm:$0xf0]  ;;  %v2789_v7 = vld [vmem:[%s4410_s18 + $0x8] sm:$0xf0] }
 0x6db   :  { %3010 = vrsqrt.f32 %v1364_v50  ;;  %vm1406_vm8 = vmor %vm1404_vm7, %vm1405_vm6  ;;  %vm1414_vm10 = vweird.f32 %v1364_v50  ;;  %v4028_v21 = vor.u32 %v2891_v45, %v2797_v32 }
 0x6dc   :  { %2777 = vmatmul.msk.bf16.vlgmr.msra.gmra.mxu0 %vm101_vm0, %v1474_v17  ;;  %2781 = vmatmul.msk.bf16.vlgmr.msra.gmra.mxu1 %vm101_vm0, %v1474_v17  ;;  %v1400_v22 = vmul.f32 %v3009_v38, %v1399_v9  ;;  %v1397_v5 = vsel %vm1396_vm5, %v3007_v36, %v1393_v6  ;;  %v2889_v17 = vld [vmem:[%s4410_s18 + $0x4] sm:$0xf] }
 0x6dd   :  { %2323 = vmatpush.bf16.msra.mxu1 %v3879_v13  ;;  %v1450_v43 = vmul.f32 %v1397_v5, %v3850_v23 }
 0x6de   :  { %v1401_v51 = vmul.f32 0.5, %v1400_v22  ;;  %v1345_v53 = vpop.xlane.xlu0 %1344 }
 0x6df   :  { %v1357_v25 = vmul.f32 %v1345_v53, %v3490_v49  ;;  %v1459_v28 = vmul.f32 %v3965_v34, %v1450_v43 }
 0x6e0   :  { %v1402_v61 = vsub.f32 1.5, %v1401_v51 }
 0x6e1   :  { %2324 = vmatpush.bf16.msra.mxu1 %v3889_v1  ;;  %v3011_v54 = vpop.eup %3010  ;;  %v1365_v12 = vadd.f32 1e-12, %v1357_v25  ;;  %v1468_v57 = vadd.f32 %v3972_v48, %v1459_v28 }
 0x6e2   :  { %v1403_v59 = vmul.f32 %v3009_v38, %v1402_v61  ;;  %v1409_v3 = vmul.f32 %v3011_v54, %v1364_v50  ;;  %vm1415_vm9 = vweird.f32 %v3011_v54  ;;  %v4039_v50 = vor.u32 %v2889_v17, %v2789_v7 }
 0x6e3   :  { %3012 = vrsqrt.f32 %v1365_v12  ;;  %vm1416_vm11 = vmor %vm1414_vm10, %vm1415_vm9  ;;  %vm1424_vm13 = vweird.f32 %v1365_v12 }
 0x6e4   :  { %v1407_v47 = vsel %vm1406_vm8, %v3009_v38, %v1403_v59  ;;  %v1410_v15 = vmul.f32 %v3011_v54, %v1409_v3 }
 0x6e5   :  { %2325 = vmatpush.bf16.msra.mxu1 %v3901_v8  ;;  %v1451_v26 = vmul.f32 %v1407_v47, %v3856_v33 }
 0x6e6   :  { %v1411_v30 = vmul.f32 0.5, %v1410_v15 }
 0x6e7   :  { %v1460_v31 = vmul.f32 %v3965_v34, %v1451_v26 }
 0x6e8   :  { %v1412_v23 = vsub.f32 1.5, %v1411_v30 }
 0x6e9   :  { %2326 = vmatpush.bf16.msra.mxu1 %v3928_v18  ;;  %v3013_v0 = vpop.eup %3012  ;;  %v1469_v35 = vadd.f32 %v3972_v48, %v1460_v31 }
 0x6ea   :  { %v1413_v29 = vmul.f32 %v3011_v54, %v1412_v23  ;;  %v1419_v37 = vmul.f32 %v3013_v0, %v1365_v12  ;;  %vm1425_vm12 = vweird.f32 %v3013_v0  ;;  %v1638_v12 = vpop.f32.mrf.mxu2 }
 0x6eb   :  { %v1475_v55 = vpack.c.bf16 %v1469_v35, %v1468_v57  ;;  %vm1426_vm14 = vmor %vm1424_vm13, %vm1425_vm12 }
 0x6ec   :  { %v1420_v42 = vmul.f32 %v3013_v0, %v1419_v37  ;;  %v1417_v33 = vsel %vm1416_vm11, %v3011_v54, %v1413_v29 }
 0x6ed   :  { %2778 = vmatmul.msk.bf16.gmra.mxu0 %vm101_vm0, %v1475_v55  ;;  %2782 = vmatmul.msk.bf16.gmra.mxu1 %vm101_vm0, %v1475_v55  ;;  %v1452_v4 = vmul.f32 %v1417_v33, %v3862_v40  ;;  %v2895_v40 = vld [vmem:[%s4410_s18 + $0x34] sm:$0xf] }
 0x6ee   :  { %v1421_v44 = vmul.f32 0.5, %v1420_v42 }
 0x6ef   :  { %v1461_v39 = vmul.f32 %v3965_v34, %v1452_v4 }
 0x6f0   :  { %v1422_v2 = vsub.f32 1.5, %v1421_v44 }
 0x6f1   :  { %v1470_v36 = vadd.f32 %v3972_v48, %v1461_v39 }
 0x6f2   :  { %v1423_v60 = vmul.f32 %v3013_v0, %v1422_v2  ;;  %v1640_v28 = vpop.f32.mrf.mxu2 }
 0x6f4   :  { %v1427_v52 = vsel %vm1426_vm14, %v3013_v0, %v1423_v60 }
 0x6f5   :  { %v1453_v56 = vmul.f32 %v1427_v52, %v3868_v20  ;;  %v2813_v20 = vld [vmem:[%s4410_s18 + $0x38] sm:$0xf0] }
 0x6f6   :  { %v4009_v63 = vor.u32 %v2895_v40, %v2813_v20 }
 0x6f7   :  { %v1462_v10 = vmul.f32 %v3965_v34, %v1453_v56 }
 0x6f8   :  { %1646 = vmatpush.bf16.msra.mxu2 %v4009_v63  ;;  %1991 = vmatpush.bf16.msrb.mxu0 %v4009_v63 }
 0x6f9   :  { %v1471_v62 = vadd.f32 %v3972_v48, %v1462_v10 }
 0x6fb   :  { %v1476_v24 = vpack.c.bf16 %v1471_v62, %v1470_v36 }
 0x6fc   :  { %1647 = vmatpush.bf16.msra.mxu2 %v4019_v19  ;;  %1992 = vmatpush.bf16.msrb.mxu0 %v4019_v19 }
 0x6fd   :  { %2779 = vmatmul.msk.bf16.gmra.mxu0 %vm101_vm0, %v1476_v24  ;;  %2783 = vmatmul.msk.bf16.gmra.mxu1 %vm101_vm0, %v1476_v24 }
 0x700   :  { %1648 = vmatpush.bf16.msra.mxu2 %v4028_v21  ;;  %1993 = vmatpush.bf16.msrb.mxu0 %v4028_v21 }
 0x704   :  { %1649 = vmatpush.bf16.msra.mxu2 %v4039_v50  ;;  %1994 = vmatpush.bf16.msrb.mxu0 %v4039_v50 }
 0x707   :  { %1650 = vmatmul.bf16.vlgmr.msra.gmra.mxu2 %v3147_v58 }
 0x708   :  { %1761 = vmatpush.bf16.msrb.mxu2 %v4009_v63  ;;  %2221 = vmatpush.bf16.msra.mxu0 %v4009_v63 }
 0x70c   :  { %1762 = vmatpush.bf16.msrb.mxu2 %v4019_v19  ;;  %2222 = vmatpush.bf16.msra.mxu0 %v4019_v19 }
 0x710   :  { %1763 = vmatpush.bf16.msrb.mxu2 %v4028_v21  ;;  %2223 = vmatpush.bf16.msra.mxu0 %v4028_v21 }
 0x714   :  { %1764 = vmatpush.bf16.msrb.mxu2 %v4039_v50  ;;  %2224 = vmatpush.bf16.msra.mxu0 %v4039_v50 }
 0x718   :  { %1876 = vmatpush.bf16.msra.mxu2 %v4009_v63 }
 0x71c   :  { %1877 = vmatpush.bf16.msra.mxu2 %v4019_v19 }
 0x720   :  { %1878 = vmatpush.bf16.msra.mxu2 %v4028_v21 }
 0x724   :  { %1879 = vmatpush.bf16.msra.mxu2 %v4039_v50 }
 0x730   :  { %v1348_v11 = vpop.xlane.xlu1 %1347 }
 0x731   :  { %v1358_v16 = vmul.f32 %v1348_v11, %v3490_v49 }
 0x733   :  { %v1366_v38 = vadd.f32 1e-12, %v1358_v16 }
 0x735   :  { %3014 = vrsqrt.f32 %v1366_v38  ;;  %vm1434_vm2 = vweird.f32 %v1366_v38 }
 0x738   :  { %v1351_v6 = vpop.xlane.xlu2 %1350 }
 0x739   :  { %v1359_v9 = vmul.f32 %v1351_v6, %v3490_v49 }
 0x73b   :  { %v3015_v22 = vpop.eup %3014  ;;  %v1367_v5 = vadd.f32 1e-12, %v1359_v9 }
 0x73c   :  { %v1429_v51 = vmul.f32 %v3015_v22, %v1366_v38  ;;  %vm1435_vm15 = vweird.f32 %v3015_v22 }
 0x73d   :  { %3016 = vrsqrt.f32 %v1367_v5  ;;  %vm1436_vm3 = vmor %vm1434_vm2, %vm1435_vm15  ;;  %vm1444_vm5 = vweird.f32 %v1367_v5 }
 0x73e   :  { %v1430_v53 = vmul.f32 %v3015_v22, %v1429_v51 }
 0x740   :  { %v1431_v25 = vmul.f32 0.5, %v1430_v53 }
 0x742   :  { %v1432_v49 = vsub.f32 1.5, %v1431_v25 }
 0x743   :  { %v3017_v61 = vpop.eup %3016 }
 0x744   :  { %v1433_v54 = vmul.f32 %v3015_v22, %v1432_v49  ;;  %v1439_v43 = vmul.f32 %v3017_v61, %v1367_v5  ;;  %vm1445_vm4 = vweird.f32 %v3017_v61 }
 0x745   :  { %vm1446_vm6 = vmor %vm1444_vm5, %vm1445_vm4 }
 0x746   :  { %v1440_v58 = vmul.f32 %v3017_v61, %v1439_v43  ;;  %v1437_v59 = vsel %vm1436_vm3, %v3015_v22, %v1433_v54 }
 0x747   :  { %v1454_v15 = vmul.f32 %v1437_v59, %v3903_v46  ;;  %v1482_v46 = vld [vmem:[%s4412_s17] sm:$0x3]  ;;  %s3149_s17 = smov 32  }
 0x748   :  { %v1441_v3 = vmul.f32 0.5, %v1440_v58  ;;  %v4067_v37 = vperm.slane %v1482_v46, 0  ;;  %v4088_v6 = vperm.slane %v1482_v46, 1 }
 0x749   :  { %v1463_v23 = vmul.f32 %v3965_v34, %v1454_v15 }
 0x74a   :  { %v1442_v47 = vsub.f32 1.5, %v1441_v3 }
 0x74b   :  { %v1472_v57 = vadd.f32 %v3972_v48, %v1463_v23 }
 0x74c   :  { %v1443_v26 = vmul.f32 %v3017_v61, %v1442_v47 }
 0x74e   :  { %v1447_v30 = vsel %vm1446_vm6, %v3017_v61, %v1443_v26 }
 0x74f   :  { %v1455_v31 = vmul.f32 %v1447_v30, %v3947_v27 }
 0x751   :  { %v1464_v0 = vmul.f32 %v3965_v34, %v1455_v31 }
 0x753   :  { %v1473_v35 = vadd.f32 %v3972_v48, %v1464_v0 }
 0x755   :  { %v1477_v29 = vpack.c.bf16 %v1473_v35, %v1472_v57 }
 0x757   :  { %2780 = vmatmul.msk.bf16.gmra.mxu0 %vm101_vm0, %v1477_v29  ;;  %2784 = vmatmul.msk.bf16.gmra.mxu1 %vm101_vm0, %v1477_v29 }
 0x759   :  { %v1529_v27 = vpop.f32.mrf.mxu0  ;;  %v4073_v48 = vpop.f32.mrf.mxu1 }
 0x75a   :  { %v1530_v34 = vadd.f32 %v1529_v27, %v4067_v37 }
 0x75c   :  { %v1655_v55 = vadd.f32 %v1638_v12, %v1530_v34 }
 0x75e   :  { %3018 = vtanh.f32 %v1655_v55  ;;  %v2817_v44 = vmul.f32 -1.442695, %v1655_v55 }
 0x760   :  { %3020 = vpow2.f32 %v2817_v44 }
 0x761   :  { %v4075_v33 = vpop.f32.mrf.mxu1 }
 0x764   :  { %v3019_v42 = vpop.eup %3018 }
 0x765   :  { %1679 = vrot.lane.b32.xlu0 %v3019_v42, %s3148_s5 }
 0x766   :  { %v3021_v4 = vpop.eup %3020 }
 0x767   :  { %v1660_v60 = vadd.f32 1.0, %v3021_v4 }
 0x769   :  { %3022 = vrcp.f32 %v1660_v60  ;;  %v1672_v41 = vand.u32 2147483648, %v1660_v60  ;;  %vm1666_vm8 = vweird.f32 %v1660_v60  ;;  %v1670_v45 = vand.u32 2147483647, %v1660_v60 }
 0x76a   :  { %v4077_v2 = vpop.f32.mrf.mxu1 }
 0x76b   :  { %v1673_v16 = vor.u32 1.1754944e-38, %v1672_v41  ;;  %vm1671_vm10 = vcmp.eq.f32.partialorder %v1670_v45, 8.507059e+37 }
 0x76f   :  { %v3023_v39 = vpop.eup %3022 }
 0x770   :  { %v1662_v36 = vmul.f32 %v3023_v39, %v1660_v60  ;;  %vm1667_vm7 = vweird.f32 %v3023_v39 }
 0x771   :  { %vm1668_vm9 = vmor %vm1666_vm8, %vm1667_vm7 }
 0x772   :  { %v4079_v52 = vpop.f32.mrf.mxu1  ;;  %v1663_v24 = vsub.f32 1.0, %v1662_v36  ;;  %v1531_v36 = vpop.f32.mrf.mxu0 }
 0x774   :  { %v1664_v20 = vmul.f32 %v3023_v39, %v1663_v24 }
 0x776   :  { %v1665_v14 = vadd.f32 %v3023_v39, %v1664_v20 }
 0x778   :  { %v1669_v11 = vsel %vm1668_vm9, %v3023_v39, %v1665_v14 }
 0x779   :  { %v1674_v7 = vsel %vm1671_vm10, %v1673_v16, %v1669_v11 }
 0x77a   :  { %v4081_v10 = vpop.f32.mrf.mxu1  ;;  %v1677_v25 = vmul.f32 0.0, %v1674_v7 }
 0x782   :  { %v4083_v40 = vpop.f32.mrf.mxu1 }
 0x78a   :  { %v1651_v56 = vpop.f32.mrf.mxu2 }
 0x792   :  { %v1653_v62 = vpop.f32.mrf.mxu2 }
 0x793   :  { %v1532_v62 = vadd.f32 %v1531_v36, %v4067_v37 }
 0x7d4   :  { %v4085_v32 = vpop.f32.mrf.mxu1 }
 0x7d5   :  { %v1574_v24 = vadd.f32 %v4085_v32, %v4088_v6 }
 0x7d7   :  { %v1680_v17 = vpop.permute.xlu0 %1679 }
 0x7d8   :  { %v1682_v38 = vmul.f32 %v1680_v17, %v1674_v7 }
 0x7da   :  { %1684 = vrot.lane.b32.xlu2 %v1682_v38, %s3149_s17 }
 0x7dc   :  { %v1575_v9 = vpop.f32.mrf.mxu1 }
 0x7dd   :  { %v1576_v22 = vadd.f32 %v1575_v9, %v4088_v6 }
 0x7df   :  { %v1656_v5 = vadd.f32 %v1651_v56, %v1576_v22 }
 0x7e1   :  { %3024 = vtanh.f32 %v1656_v5  ;;  %v2818_v53 = vmul.f32 -1.442695, %v1656_v5 }
 0x7e3   :  { %3026 = vpow2.f32 %v2818_v53 }
 0x7e7   :  { %v3025_v51 = vpop.eup %3024 }
 0x7e8   :  { %1716 = vrot.lane.b32.xlu1 %v3025_v51, %s3148_s5 }
 0x7e9   :  { %v3027_v54 = vpop.eup %3026 }
 0x7ea   :  { %v1697_v43 = vadd.f32 1.0, %v3027_v54 }
 0x7ec   :  { %v1709_v26 = vand.u32 2147483648, %v1697_v43  ;;  %vm1703_vm12 = vweird.f32 %v1697_v43  ;;  %v1707_v28 = vand.u32 2147483647, %v1697_v43 }
 0x7ee   :  { %v1710_v31 = vor.u32 1.1754944e-38, %v1709_v26  ;;  %vm1708_vm14 = vcmp.eq.f32.partialorder %v1707_v28, 8.507059e+37 }
 0x834   :  { %v1685_v49 = vpop.permute.xlu2 %1684 }
 0x835   :  { %v4092_v61 = vadd.f32 %v1685_v49, %v1677_v25 }
 0x837   :  { %3028 = vtanh.f32 %v4092_v61 }
 0x838   :  { %3030 = vrcp.f32 %v1697_v43 }
 0x83d   :  { %v3029_v12 = vpop.eup %3028 }
 0x83e   :  { %1690 = vrot.lane.b32.xlu2 %v3029_v12, %s3148_s5  ;;  %v3031_v58 = vpop.eup %3030 }
 0x83f   :  { %v1699_v59 = vmul.f32 %v3031_v58, %v1697_v43  ;;  %vm1704_vm11 = vweird.f32 %v3031_v58 }
 0x840   :  { %vm1705_vm13 = vmor %vm1703_vm12, %vm1704_vm11 }
 0x841   :  { %v1700_v3 = vsub.f32 1.0, %v1699_v59 }
 0x843   :  { %v1701_v47 = vmul.f32 %v3031_v58, %v1700_v3 }
 0x845   :  { %v1702_v15 = vadd.f32 %v3031_v58, %v1701_v47 }
 0x847   :  { %v1706_v30 = vsel %vm1705_vm13, %v3031_v58, %v1702_v15 }
 0x848   :  { %v1711_v0 = vsel %vm1708_vm14, %v1710_v31, %v1706_v30 }
 0x849   :  { %v1714_v29 = vmul.f32 0.0, %v1711_v0 }
 0x85a   :  { %v1717_v23 = vpop.permute.xlu1 %1716 }
 0x85b   :  { %v1719_v57 = vmul.f32 %v1717_v23, %v1711_v0 }
 0x85d   :  { %1721 = vrot.lane.b32.xlu0 %v1719_v57, %s3149_s17 }
 0x898   :  { %v1691_v35 = vpop.permute.xlu2 %1690 }
 0x899   :  { %v1693_v46 = vmul.f32 %v1691_v35, %v1674_v7 }
 0x89b   :  { %1732 = vrot.lane.b32.xlu0 %v1693_v46, %s3149_s17 }
 0x8cf   :  { %v1722_v27 = vpop.permute.xlu0 %1721 }
 0x8d0   :  { %v4098_v34 = vadd.f32 %v1722_v27, %v1714_v29 }
 0x8d2   :  { %3032 = vtanh.f32 %v4098_v34 }
 0x8d8   :  { %v3033_v55 = vpop.eup %3032 }
 0x8d9   :  { %1727 = vrot.lane.b32.xlu1 %v3033_v55, %s3148_s5 }
 0x90d   :  { %v4103_v4 = vpop.permute.xlu0 %1732 }
 0x94b   :  { %v1728_v42 = vpop.permute.xlu1 %1727 }
 0x94c   :  { %v1730_v44 = vmul.f32 %v1728_v42, %v1711_v0 }
 0x94e   :  { %1736 = vrot.lane.b32.xlu2 %v1730_v44, %s3148_s5 }
 0x9a8   :  { %v4105_v60 = vpop.permute.xlu2 %1736 }
 0x9a9   :  { %v1739_v56 = vsel %vm101_vm0, %v4103_v4, %v4105_v60 }
 0x9aa   :  { %v1740_v39 = vpack.c.bf16 %v1739_v56, %v1739_v56 }
 0x9ac   :  { %2819 = vmatmul.msk.bf16.vlgmr.msrb.gmra.mxu3 %vm354_vm1, %v1740_v39  ;;  %2820 = vmatmul.msk.bf16.vlgmr.msrb.gmra.mxu2 %vm354_vm1, %v1740_v39 }
 0x9ad   :  { %1978 = vmatpush.bf16.msrb.mxu3 %v3879_v13  ;;  %2106 = vmatpush.bf16.msrb.mxu2 %v4009_v63 }
 0x9b1   :  { %1979 = vmatpush.bf16.msrb.mxu3 %v3889_v1  ;;  %2107 = vmatpush.bf16.msrb.mxu2 %v4019_v19 }
 0x9b5   :  { %1980 = vmatpush.bf16.msrb.mxu3 %v3901_v8  ;;  %2108 = vmatpush.bf16.msrb.mxu2 %v4028_v21 }
 0x9b9   :  { %1981 = vmatpush.bf16.msrb.mxu3 %v3928_v18  ;;  %2109 = vmatpush.bf16.msrb.mxu2 %v4039_v50 }
 0xa2f   :  { %v1753_v20 = vpop.f32.mrf.mxu3  ;;  %v1766_v14 = vpop.f32.mrf.mxu2 }
 0xa30   :  { %v1770_v41 = vadd.f32 %v1753_v20, %v1532_v62  ;;  %v1771_v45 = vadd.f32 %v1766_v14, %v1574_v24 }
 0xa32   :  { %3034 = vtanh.f32 %v1770_v41  ;;  %v2821_v38 = vmul.f32 -1.442695, %v1770_v41  ;;  %v2822_v9 = vmul.f32 -1.442695, %v1771_v45 }
 0xa33   :  { %3036 = vtanh.f32 %v1771_v45 }
 0xa34   :  { %3038 = vpow2.f32 %v2821_v38  ;;  %v1534_v38 = vpop.f32.mrf.mxu0 }
 0xa35   :  { %3040 = vpow2.f32 %v2822_v9  ;;  %v1535_v9 = vadd.f32 %v1534_v38, %v4067_v37 }
 0xa37   :  { %v1755_v11 = vpop.f32.mrf.mxu3  ;;  %v1768_v16 = vpop.f32.mrf.mxu2 }
 0xa38   :  { %v3035_v17 = vpop.eup %3034 }
 0xa39   :  { %v3037_v7 = vpop.eup %3036  ;;  %1794 = vrot.lane.b32.xlu1 %v3035_v17, %s3148_s5 }
 0xa3a   :  { %1831 = vrot.lane.b32.xlu0 %v3037_v7, %s3148_s5  ;;  %v3039_v22 = vpop.eup %3038 }
 0xa3b   :  { %v3041_v32 = vpop.eup %3040  ;;  %v1775_v5 = vadd.f32 1.0, %v3039_v22  ;;  %v1571_v22 = vadd.f32 %v4083_v40, %v4088_v6 }
 0xa3c   :  { %v1812_v51 = vadd.f32 1.0, %v3041_v32 }
 0xa3d   :  { %3042 = vrcp.f32 %v1775_v5  ;;  %v1787_v15 = vand.u32 2147483648, %v1775_v5  ;;  %vm1781_vm3 = vweird.f32 %v1775_v5  ;;  %v1785_v28 = vand.u32 2147483647, %v1775_v5 }
 0xa3e   :  { %3044 = vrcp.f32 %v1812_v51  ;;  %v1824_v26 = vand.u32 2147483648, %v1812_v51  ;;  %vm1818_vm4 = vweird.f32 %v1812_v51  ;;  %v1822_v30 = vand.u32 2147483647, %v1812_v51 }
 0xa3f   :  { %v1788_v0 = vor.u32 1.1754944e-38, %v1787_v15  ;;  %vm1786_vm7 = vcmp.eq.f32.partialorder %v1785_v28, 8.507059e+37 }
 0xa40   :  { %v1825_v57 = vor.u32 1.1754944e-38, %v1824_v26  ;;  %vm1823_vm8 = vcmp.eq.f32.partialorder %v1822_v30, 8.507059e+37 }
 0xa43   :  { %v3043_v53 = vpop.eup %3042 }
 0xa44   :  { %v3045_v25 = vpop.eup %3044  ;;  %v1777_v49 = vmul.f32 %v3043_v53, %v1775_v5  ;;  %vm1782_vm15 = vweird.f32 %v3043_v53 }
 0xa45   :  { %v1814_v54 = vmul.f32 %v3045_v25, %v1812_v51  ;;  %vm1819_vm2 = vweird.f32 %v3045_v25  ;;  %vm1783_vm5 = vmor %vm1781_vm3, %vm1782_vm15 }
 0xa46   :  { %v1778_v43 = vsub.f32 1.0, %v1777_v49  ;;  %vm1820_vm6 = vmor %vm1818_vm4, %vm1819_vm2 }
 0xa47   :  { %v1815_v12 = vsub.f32 1.0, %v1814_v54 }
 0xa48   :  { %v1779_v58 = vmul.f32 %v3043_v53, %v1778_v43 }
 0xa49   :  { %v1816_v59 = vmul.f32 %v3045_v25, %v1815_v12 }
 0xa4a   :  { %v1780_v3 = vadd.f32 %v3043_v53, %v1779_v58 }
 0xa4b   :  { %v1817_v47 = vadd.f32 %v3045_v25, %v1816_v59 }
 0xa4c   :  { %v1784_v31 = vsel %vm1783_vm5, %v3043_v53, %v1780_v3 }
 0xa4d   :  { %v1821_v23 = vsel %vm1820_vm6, %v3045_v25, %v1817_v47  ;;  %v1789_v46 = vsel %vm1786_vm7, %v1788_v0, %v1784_v31 }
 0xa4e   :  { %v1826_v27 = vsel %vm1823_vm8, %v1825_v57, %v1821_v23  ;;  %v1792_v44 = vmul.f32 %v1789_v46, %v4092_v61 }
 0xa4f   :  { %v1829_v62 = vmul.f32 %v1826_v27, %v4098_v34 }
 0xaab   :  { %v1795_v35 = vpop.permute.xlu1 %1794 }
 0xaac   :  { %v1832_v29 = vpop.permute.xlu0 %1831  ;;  %v1797_v55 = vmul.f32 %v1795_v35, %v1789_v46 }
 0xaad   :  { %v1834_v42 = vmul.f32 %v1832_v29, %v1826_v27 }
 0xaae   :  { %1799 = vrot.lane.b32.xlu2 %v1797_v55, %s3149_s17 }
 0xaaf   :  { %1836 = vrot.lane.b32.xlu1 %v1834_v42, %s3149_s17 }
 0xb08   :  { %v1800_v56 = vpop.permute.xlu2 %1799 }
 0xb09   :  { %v4128_v39 = vadd.f32 %v1800_v56, %v1792_v44 }
 0xb0b   :  { %3046 = vtanh.f32 %v4128_v39 }
 0xb11   :  { %v3047_v36 = vpop.eup %3046 }
 0xb12   :  { %1805 = vrot.lane.b32.xlu0 %v3047_v36, %s3148_s5 }
 0xb21   :  { %v1837_v24 = vpop.permute.xlu1 %1836 }
 0xb22   :  { %v4133_v20 = vadd.f32 %v1837_v24, %v1829_v62 }
 0xb24   :  { %3048 = vtanh.f32 %v4133_v20 }
 0xb2a   :  { %v3049_v14 = vpop.eup %3048 }
 0xb2b   :  { %1842 = vrot.lane.b32.xlu2 %v3049_v14, %s3148_s5 }
 0xb84   :  { %v1806_v41 = vpop.permute.xlu0 %1805 }
 0xb85   :  { %v1843_v61 = vpop.permute.xlu2 %1842  ;;  %v1808_v45 = vmul.f32 %v1806_v41, %v1789_v46 }
 0xb86   :  { %v1845_v11 = vmul.f32 %v1843_v61, %v1826_v27 }
 0xb87   :  { %1847 = vrot.lane.b32.xlu1 %v1808_v45, %s3149_s17 }
 0xb88   :  { %1851 = vrot.lane.b32.xlu0 %v1845_v11, %s3148_s5 }
 0xbf9   :  { %v4139_v16 = vpop.permute.xlu1 %1847 }
 0xbfa   :  { %v4141_v17 = vpop.permute.xlu0 %1851 }
 0xbfb   :  { %v1854_v34 = vsel %vm101_vm0, %v4139_v16, %v4141_v17 }
 0xbfc   :  { %v1855_v7 = vpack.c.bf16 %v1854_v34, %v1854_v34 }
 0xbfe   :  { %2823 = vmatmul.msk.bf16.vlgmr.msra.gmra.mxu3 %vm354_vm1, %v1855_v7  ;;  %2824 = vmatmul.msk.bf16.vlgmr.msra.gmra.mxu2 %vm354_vm1, %v1855_v7 }
 0xbff   :  { %2208 = vmatpush.bf16.msra.mxu3 %v3879_v13  ;;  %2336 = vmatpush.bf16.msra.mxu2 %v4009_v63 }
 0xc03   :  { %2209 = vmatpush.bf16.msra.mxu3 %v3889_v1  ;;  %2337 = vmatpush.bf16.msra.mxu2 %v4019_v19 }
 0xc07   :  { %2210 = vmatpush.bf16.msra.mxu3 %v3901_v8  ;;  %2338 = vmatpush.bf16.msra.mxu2 %v4028_v21 }
 0xc0b   :  { %2211 = vmatpush.bf16.msra.mxu3 %v3928_v18  ;;  %2339 = vmatpush.bf16.msra.mxu2 %v4039_v50 }
 0xc81   :  { %v1868_v32 = vpop.f32.mrf.mxu3  ;;  %v1881_v5 = vpop.f32.mrf.mxu2 }
 0xc82   :  { %v1885_v51 = vadd.f32 %v1868_v32, %v1535_v9  ;;  %v1886_v53 = vadd.f32 %v1881_v5, %v1571_v22 }
 0xc84   :  { %3050 = vtanh.f32 %v1885_v51  ;;  %v2825_v12 = vmul.f32 -1.442695, %v1885_v51  ;;  %v2826_v3 = vmul.f32 -1.442695, %v1886_v53 }
 0xc85   :  { %3052 = vtanh.f32 %v1886_v53 }
 0xc86   :  { %3054 = vpow2.f32 %v2825_v12 }
 0xc89   :  { %v1870_v25 = vpop.f32.mrf.mxu3  ;;  %v1883_v49 = vpop.f32.mrf.mxu2 }
 0xc8a   :  { %v3051_v54 = vpop.eup %3050 }
 0xc8b   :  { %v3053_v43 = vpop.eup %3052  ;;  %1909 = vrot.lane.b32.xlu2 %v3051_v54, %s3148_s5 }
 0xc8c   :  { %1946 = vrot.lane.b32.xlu1 %v3053_v43, %s3148_s5  ;;  %v3055_v58 = vpop.eup %3054 }
 0xc8d   :  { %v1890_v59 = vadd.f32 1.0, %v3055_v58  ;;  %v1536_v58 = vpop.f32.mrf.mxu0 }
 0xc8f   :  { %3056 = vrcp.f32 %v1890_v59  ;;  %v1902_v23 = vand.u32 2147483648, %v1890_v59  ;;  %vm1896_vm10 = vweird.f32 %v1890_v59  ;;  %v1900_v0 = vand.u32 2147483647, %v1890_v59 }
 0xc90   :  { %3058 = vpow2.f32 %v2826_v3 }
 0xc91   :  { %v1903_v35 = vor.u32 1.1754944e-38, %v1902_v23  ;;  %vm1901_vm12 = vcmp.eq.f32.partialorder %v1900_v0, 8.507059e+37 }
 0xc95   :  { %v3057_v40 = vpop.eup %3056 }
 0xc96   :  { %v1892_v47 = vmul.f32 %v3057_v40, %v1890_v59  ;;  %v3059_v28 = vpop.eup %3058  ;;  %vm1897_vm9 = vweird.f32 %v3057_v40  ;;  %v4192_v59 = vpop.f32.mrf.mxu0 }
 0xc97   :  { %v1927_v30 = vadd.f32 1.0, %v3059_v28  ;;  %vm1898_vm11 = vmor %vm1896_vm10, %vm1897_vm9 }
 0xc98   :  { %v1893_v15 = vsub.f32 1.0, %v1892_v47 }
 0xc99   :  { %3060 = vrcp.f32 %v1927_v30  ;;  %v1939_v62 = vand.u32 2147483648, %v1927_v30  ;;  %vm1933_vm14 = vweird.f32 %v1927_v30  ;;  %v1937_v24 = vand.u32 2147483647, %v1927_v30 }
 0xc9a   :  { %v1894_v26 = vmul.f32 %v3057_v40, %v1893_v15 }
 0xc9b   :  { %v1940_v41 = vor.u32 1.1754944e-38, %v1939_v62  ;;  %vm1938_vm2 = vcmp.eq.f32.partialorder %v1937_v24, 8.507059e+37 }
 0xc9c   :  { %v1895_v31 = vadd.f32 %v3057_v40, %v1894_v26 }
 0xc9e   :  { %v1899_v57 = vsel %vm1898_vm11, %v3057_v40, %v1895_v31  ;;  %v4194_v40 = vpop.f32.mrf.mxu0 }
 0xc9f   :  { %v1904_v29 = vsel %vm1901_vm12, %v1903_v35, %v1899_v57  ;;  %v3061_v55 = vpop.eup %3060 }
 0xca0   :  { %v1929_v42 = vmul.f32 %v3061_v55, %v1927_v30  ;;  %vm1934_vm13 = vweird.f32 %v3061_v55  ;;  %v1907_v34 = vmul.f32 %v1904_v29, %v4128_v39 }
 0xca1   :  { %vm1935_vm15 = vmor %vm1933_vm14, %vm1934_vm13 }
 0xca2   :  { %v1930_v44 = vsub.f32 1.0, %v1929_v42 }
 0xca4   :  { %v1931_v56 = vmul.f32 %v3061_v55, %v1930_v44 }
 0xca6   :  { %v1932_v36 = vadd.f32 %v3061_v55, %v1931_v56 }
 0xca8   :  { %v1936_v14 = vsel %vm1935_vm15, %v3061_v55, %v1932_v36 }
 0xca9   :  { %v1941_v45 = vsel %vm1938_vm2, %v1940_v41, %v1936_v14 }
 0xcaa   :  { %v1944_v7 = vmul.f32 %v1941_v45, %v4133_v20 }
 0xce5   :  { %v1910_v46 = vpop.permute.xlu2 %1909 }
 0xce6   :  { %v1912_v27 = vmul.f32 %v1910_v46, %v1904_v29 }
 0xce8   :  { %1914 = vrot.lane.b32.xlu0 %v1912_v27, %s3149_s17 }
 0xcfe   :  { %v1947_v61 = vpop.permute.xlu1 %1946 }
 0xcff   :  { %v1949_v11 = vmul.f32 %v1947_v61, %v1941_v45 }
 0xd01   :  { %1951 = vrot.lane.b32.xlu2 %v1949_v11, %s3149_s17 }
 0xd5a   :  { %v1915_v38 = vpop.permute.xlu0 %1914 }
 0xd5b   :  { %v1952_v9 = vpop.permute.xlu2 %1951  ;;  %v4165_v22 = vadd.f32 %v1915_v38, %v1907_v34 }
 0xd5c   :  { %v4167_v32 = vadd.f32 %v1952_v9, %v1944_v7 }
 0xd5d   :  { %3062 = vtanh.f32 %v4165_v22 }
 0xd5e   :  { %3064 = vtanh.f32 %v4167_v32 }
 0xd63   :  { %v3063_v5 = vpop.eup %3062 }
 0xd64   :  { %v3065_v51 = vpop.eup %3064  ;;  %1920 = vrot.lane.b32.xlu1 %v3063_v5, %s3148_s5 }
 0xd65   :  { %1957 = vrot.lane.b32.xlu0 %v3065_v51, %s3148_s5 }
 0xdd6   :  { %v1921_v53 = vpop.permute.xlu1 %1920 }
 0xdd7   :  { %v1958_v39 = vpop.permute.xlu0 %1957  ;;  %v1923_v25 = vmul.f32 %v1921_v53, %v1904_v29 }
 0xdd8   :  { %v1960_v20 = vmul.f32 %v1958_v39, %v1941_v45 }
 0xdd9   :  { %1962 = vrot.lane.b32.xlu2 %v1923_v25, %s3149_s17 }
 0xdda   :  { %1966 = vrot.lane.b32.xlu1 %v1960_v20, %s3148_s5 }
 0xe33   :  { %v4175_v49 = vpop.permute.xlu2 %1962 }
 0xe4c   :  { %v4177_v54 = vpop.permute.xlu1 %1966 }
 0xe4d   :  { %v1969_v43 = vsel %vm101_vm0, %v4175_v49, %v4177_v54 }
 0xe4e   :  { %v1970_v12 = vpack.c.bf16 %v1969_v43, %v1969_v43 }
 0xe50   :  { %2827 = vmatmul.msk.bf16.vlgmr.msrb.gmra.mxu3 %vm354_vm1, %v1970_v12  ;;  %2828 = vmatmul.msk.bf16.vlgmr.msrb.gmra.mxu0 %vm354_vm1, %v1970_v12 }
 0xe51   :  { %2438 = vmatpush.bf16.msrb.mxu3 %v3879_v13  ;;  %2451 = vmatpush.bf16.msrb.mxu0 %v4009_v63  ;;  %v4196_v13 = vpop.f32.mrf.mxu0 }
 0xe55   :  { %2439 = vmatpush.bf16.msrb.mxu3 %v3889_v1  ;;  %2452 = vmatpush.bf16.msrb.mxu0 %v4019_v19  ;;  %v1569_v1 = vadd.f32 %v4081_v10, %v4088_v6 }
 0xe59   :  { %2440 = vmatpush.bf16.msrb.mxu3 %v3901_v8  ;;  %2453 = vmatpush.bf16.msrb.mxu0 %v4028_v21  ;;  %v4198_v63 = vpop.f32.mrf.mxu0  ;;  %v1537_v21 = vadd.f32 %v1536_v58, %v4067_v37 }
 0xe5d   :  { %2441 = vmatpush.bf16.msrb.mxu3 %v3928_v18  ;;  %2454 = vmatpush.bf16.msrb.mxu0 %v4039_v50 }
 0xecd   :  { %v1996_v19 = vpop.f32.mrf.mxu0 }
 0xece   :  { %v2001_v8 = vadd.f32 %v1996_v19, %v1569_v1 }
 0xed0   :  { %3066 = vtanh.f32 %v2001_v8  ;;  %v2830_v28 = vmul.f32 -1.442695, %v2001_v8 }
 0xed3   :  { %v1983_v18 = vpop.f32.mrf.mxu3 }
 0xed4   :  { %v2000_v3 = vadd.f32 %v1983_v18, %v1537_v21 }
 0xed5   :  { %v1998_v50 = vpop.f32.mrf.mxu0 }
 0xed6   :  { %v3067_v47 = vpop.eup %3066  ;;  %3068 = vtanh.f32 %v2000_v3  ;;  %v2829_v0 = vmul.f32 -1.442695, %v2000_v3 }
 0xed7   :  { %2061 = vrot.lane.b32.xlu2 %v3067_v47, %s3148_s5  ;;  %3070 = vpow2.f32 %v2830_v28 }
 0xedb   :  { %v1985_v15 = vpop.f32.mrf.mxu3 }
 0xedc   :  { %v3069_v26 = vpop.eup %3068  ;;  %v1540_v15 = vadd.f32 %v4192_v59, %v4067_v37 }
 0xedd   :  { %2024 = vrot.lane.b32.xlu0 %v3069_v26, %s3148_s5  ;;  %v3071_v30 = vpop.eup %3070 }
 0xede   :  { %v2042_v10 = vadd.f32 1.0, %v3071_v30  ;;  %v1566_v30 = vadd.f32 %v4079_v52, %v4088_v6 }
 0xee0   :  { %3072 = vrcp.f32 %v2042_v10  ;;  %v2054_v29 = vand.u32 2147483648, %v2042_v10  ;;  %vm2048_vm4 = vweird.f32 %v2042_v10  ;;  %v2052_v55 = vand.u32 2147483647, %v2042_v10 }
 0xee1   :  { %3074 = vpow2.f32 %v2829_v0 }
 0xee2   :  { %v2055_v56 = vor.u32 1.1754944e-38, %v2054_v29  ;;  %vm2053_vm6 = vcmp.eq.f32.partialorder %v2052_v55, 8.507059e+37 }
 0xee6   :  { %v3073_v31 = vpop.eup %3072 }
 0xee7   :  { %v2044_v23 = vmul.f32 %v3073_v31, %v2042_v10  ;;  %vm2049_vm3 = vweird.f32 %v3073_v31  ;;  %v3075_v27 = vpop.eup %3074 }
 0xee8   :  { %vm2050_vm5 = vmor %vm2048_vm4, %vm2049_vm3  ;;  %v2005_v44 = vadd.f32 1.0, %v3075_v27 }
 0xee9   :  { %v2045_v57 = vsub.f32 1.0, %v2044_v23 }
 0xeea   :  { %3076 = vrcp.f32 %v2005_v44  ;;  %v2017_v34 = vand.u32 2147483648, %v2005_v44  ;;  %vm2011_vm8 = vweird.f32 %v2005_v44  ;;  %v2015_v7 = vand.u32 2147483647, %v2005_v44 }
 0xeeb   :  { %v2046_v35 = vmul.f32 %v3073_v31, %v2045_v57 }
 0xeec   :  { %v2018_v9 = vor.u32 1.1754944e-38, %v2017_v34  ;;  %vm2016_vm10 = vcmp.eq.f32.partialorder %v2015_v7, 8.507059e+37 }
 0xeed   :  { %v2047_v46 = vadd.f32 %v3073_v31, %v2046_v35 }
 0xeef   :  { %v2051_v42 = vsel %vm2050_vm5, %v3073_v31, %v2047_v46 }
 0xef0   :  { %v2056_v62 = vsel %vm2053_vm6, %v2055_v56, %v2051_v42  ;;  %v3077_v14 = vpop.eup %3076 }
 0xef1   :  { %v2007_v41 = vmul.f32 %v3077_v14, %v2005_v44  ;;  %vm2012_vm7 = vweird.f32 %v3077_v14  ;;  %v2059_v39 = vmul.f32 %v2056_v62, %v4167_v32 }
 0xef2   :  { %vm2013_vm9 = vmor %vm2011_vm8, %vm2012_vm7 }
 0xef3   :  { %v2008_v61 = vsub.f32 1.0, %v2007_v41 }
 0xef5   :  { %v2009_v45 = vmul.f32 %v3077_v14, %v2008_v61 }
 0xef7   :  { %v2010_v11 = vadd.f32 %v3077_v14, %v2009_v45 }
 0xef9   :  { %v2014_v38 = vsel %vm2013_vm9, %v3077_v14, %v2010_v11 }
 0xefa   :  { %v2019_v51 = vsel %vm2016_vm10, %v2018_v9, %v2014_v38 }
 0xefb   :  { %v2022_v12 = vmul.f32 %v2019_v51, %v4165_v22 }
 0xf31   :  { %v2062_v36 = vpop.permute.xlu2 %2061 }
 0xf32   :  { %v2064_v24 = vmul.f32 %v2062_v36, %v2056_v62 }
 0xf34   :  { %2066 = vrot.lane.b32.xlu0 %v2064_v24, %s3149_s17 }
 0xf4f   :  { %v2025_v5 = vpop.permute.xlu0 %2024 }
 0xf50   :  { %v2027_v53 = vmul.f32 %v2025_v5, %v2019_v51 }
 0xf52   :  { %2029 = vrot.lane.b32.xlu1 %v2027_v53, %s3149_s17 }
 0xfa6   :  { %v2067_v25 = vpop.permute.xlu0 %2066 }
 0xfa7   :  { %v4208_v20 = vadd.f32 %v2067_v25, %v2059_v39 }
 0xfa9   :  { %3078 = vtanh.f32 %v4208_v20 }
 0xfaf   :  { %v3079_v43 = vpop.eup %3078 }
 0xfb0   :  { %2072 = vrot.lane.b32.xlu1 %v3079_v43, %s3148_s5 }
 0xfc4   :  { %v2030_v58 = vpop.permute.xlu1 %2029 }
 0xfc5   :  { %v4213_v1 = vadd.f32 %v2030_v58, %v2022_v12 }
 0xfc7   :  { %3080 = vtanh.f32 %v4213_v1 }
 0xfcd   :  { %v3081_v19 = vpop.eup %3080 }
 0xfce   :  { %2035 = vrot.lane.b32.xlu2 %v3081_v19, %s3148_s5 }
0x1022   :  { %v2073_v8 = vpop.permute.xlu1 %2072 }
0x1023   :  { %v2075_v32 = vmul.f32 %v2073_v8, %v2056_v62 }
0x1025   :  { %2081 = vrot.lane.b32.xlu2 %v2075_v32, %s3148_s5 }
0x1028   :  { %v2036_v21 = vpop.permute.xlu2 %2035 }
0x1029   :  { %v2038_v18 = vmul.f32 %v2036_v21, %v2019_v51 }
0x102b   :  { %2077 = vrot.lane.b32.xlu0 %v2038_v18, %s3149_s17 }
0x107f   :  { %v4219_v3 = vpop.permute.xlu2 %2081 }
0x109d   :  { %v4221_v50 = vpop.permute.xlu0 %2077 }
0x109e   :  { %v2084_v22 = vsel %vm101_vm0, %v4221_v50, %v4219_v3 }
0x109f   :  { %v2085_v47 = vpack.c.bf16 %v2084_v22, %v2084_v22 }
0x10a1   :  { %2831 = vmatmul.msk.bf16.vlgmr.msrb.gmra.mxu1 %vm354_vm1, %v2085_v47  ;;  %2832 = vmatmul.msk.bf16.vlgmr.msrb.gmra.mxu2 %vm354_vm1, %v2085_v47 }
0x111e   :  { %v2098_v26 = vpop.f32.mrf.mxu1 }
0x111f   :  { %v2115_v28 = vadd.f32 %v2098_v26, %v1540_v15 }
0x1121   :  { %3082 = vtanh.f32 %v2115_v28  ;;  %v2833_v46 = vmul.f32 -1.442695, %v2115_v28 }
0x1124   :  { %v2111_v10 = vpop.f32.mrf.mxu2 }
0x1125   :  { %v2116_v31 = vadd.f32 %v2111_v10, %v1566_v30 }
0x1126   :  { %v2100_v23 = vpop.f32.mrf.mxu1 }
0x1127   :  { %v3083_v0 = vpop.eup %3082  ;;  %3084 = vtanh.f32 %v2116_v31  ;;  %v2834_v59 = vmul.f32 -1.442695, %v2116_v31 }
0x1128   :  { %2139 = vrot.lane.b32.xlu1 %v3083_v0, %s3148_s5  ;;  %3086 = vpow2.f32 %v2833_v46 }
0x1129   :  { %3088 = vpow2.f32 %v2834_v59  ;;  %v1542_v59 = vadd.f32 %v4194_v40, %v4067_v37 }
0x112c   :  { %v2113_v57 = vpop.f32.mrf.mxu2 }
0x112d   :  { %v3085_v35 = vpop.eup %3084  ;;  %v1564_v57 = vadd.f32 %v4077_v2, %v4088_v6 }
0x112e   :  { %2176 = vrot.lane.b32.xlu0 %v3085_v35, %s3148_s5  ;;  %v3087_v29 = vpop.eup %3086 }
0x112f   :  { %v2120_v27 = vadd.f32 1.0, %v3087_v29  ;;  %v3089_v55 = vpop.eup %3088 }
0x1130   :  { %v2157_v52 = vadd.f32 1.0, %v3089_v55 }
0x1131   :  { %3090 = vrcp.f32 %v2120_v27  ;;  %v2132_v61 = vand.u32 2147483648, %v2120_v27  ;;  %vm2126_vm12 = vweird.f32 %v2120_v27  ;;  %v2130_v45 = vand.u32 2147483647, %v2120_v27 }
0x1132   :  { %3092 = vrcp.f32 %v2157_v52  ;;  %v2169_v51 = vand.u32 2147483648, %v2157_v52  ;;  %vm2163_vm2 = vweird.f32 %v2157_v52  ;;  %v2167_v39 = vand.u32 2147483647, %v2157_v52 }
0x1133   :  { %v2133_v7 = vor.u32 1.1754944e-38, %v2132_v61  ;;  %vm2131_vm14 = vcmp.eq.f32.partialorder %v2130_v45, 8.507059e+37 }
0x1134   :  { %v2170_v43 = vor.u32 1.1754944e-38, %v2169_v51  ;;  %vm2168_vm4 = vcmp.eq.f32.partialorder %v2167_v39, 8.507059e+37 }
0x1137   :  { %v3091_v42 = vpop.eup %3090 }
0x1138   :  { %v2122_v44 = vmul.f32 %v3091_v42, %v2120_v27  ;;  %v3093_v56 = vpop.eup %3092  ;;  %vm2127_vm11 = vweird.f32 %v3091_v42 }
0x1139   :  { %v2159_v62 = vmul.f32 %v3093_v56, %v2157_v52  ;;  %vm2128_vm13 = vmor %vm2126_vm12, %vm2127_vm11  ;;  %vm2164_vm15 = vweird.f32 %v3093_v56 }
0x113a   :  { %v2123_v36 = vsub.f32 1.0, %v2122_v44  ;;  %vm2165_vm3 = vmor %vm2163_vm2, %vm2164_vm15 }
0x113b   :  { %v2160_v14 = vsub.f32 1.0, %v2159_v62 }
0x113c   :  { %v2124_v24 = vmul.f32 %v3091_v42, %v2123_v36 }
0x113d   :  { %v2161_v11 = vmul.f32 %v3093_v56, %v2160_v14 }
0x113e   :  { %v2125_v41 = vadd.f32 %v3091_v42, %v2124_v24 }
0x113f   :  { %v2162_v38 = vadd.f32 %v3093_v56, %v2161_v11 }
0x1140   :  { %v2129_v34 = vsel %vm2128_vm13, %v3091_v42, %v2125_v41 }
0x1141   :  { %v2134_v5 = vsel %vm2131_vm14, %v2133_v7, %v2129_v34  ;;  %v2166_v25 = vsel %vm2165_vm3, %v3093_v56, %v2162_v38 }
0x1142   :  { %v2171_v58 = vsel %vm2168_vm4, %v2170_v43, %v2166_v25  ;;  %v2137_v8 = vmul.f32 %v2134_v5, %v4213_v1 }
0x1143   :  { %v2174_v22 = vmul.f32 %v2171_v58, %v4208_v20 }
0x119a   :  { %v2140_v9 = vpop.permute.xlu1 %2139 }
0x119b   :  { %v2142_v53 = vmul.f32 %v2140_v9, %v2134_v5 }
0x119d   :  { %2144 = vrot.lane.b32.xlu2 %v2142_v53, %s3149_s17 }
0x11a0   :  { %v2177_v12 = vpop.permute.xlu0 %2176 }
0x11a1   :  { %v2179_v19 = vmul.f32 %v2177_v12, %v2171_v58 }
0x11a3   :  { %2181 = vrot.lane.b32.xlu1 %v2179_v19, %s3149_s17 }
0x11f7   :  { %v2145_v32 = vpop.permute.xlu2 %2144 }
0x11f8   :  { %v4237_v21 = vadd.f32 %v2145_v32, %v2137_v8 }
0x11fa   :  { %3094 = vtanh.f32 %v4237_v21 }
0x1200   :  { %v3095_v18 = vpop.eup %3094 }
0x1201   :  { %2150 = vrot.lane.b32.xlu0 %v3095_v18, %s3148_s5 }
0x1215   :  { %v2182_v47 = vpop.permute.xlu1 %2181 }
0x1216   :  { %v4242_v15 = vadd.f32 %v2182_v47, %v2174_v22 }
0x1218   :  { %3096 = vtanh.f32 %v4242_v15 }
0x121e   :  { %v3097_v26 = vpop.eup %3096 }
0x121f   :  { %2187 = vrot.lane.b32.xlu2 %v3097_v26, %s3148_s5 }
0x1273   :  { %v2151_v28 = vpop.permute.xlu0 %2150 }
0x1274   :  { %v2153_v1 = vmul.f32 %v2151_v28, %v2134_v5 }
0x1276   :  { %2192 = vrot.lane.b32.xlu1 %v2153_v1, %s3149_s17 }
0x1279   :  { %v2188_v30 = vpop.permute.xlu2 %2187 }
0x127a   :  { %v2190_v10 = vmul.f32 %v2188_v30, %v2171_v58 }
0x127c   :  { %2196 = vrot.lane.b32.xlu0 %v2190_v10, %s3148_s5 }
0x12e8   :  { %v4248_v31 = vpop.permute.xlu1 %2192 }
0x12ee   :  { %v4250_v23 = vpop.permute.xlu0 %2196 }
0x12ef   :  { %v2199_v20 = vsel %vm101_vm0, %v4248_v31, %v4250_v23 }
0x12f0   :  { %v2200_v0 = vpack.c.bf16 %v2199_v20, %v2199_v20 }
0x12f2   :  { %2835 = vmatmul.msk.bf16.vlgmr.msra.gmra.mxu3 %vm354_vm1, %v2200_v0  ;;  %2836 = vmatmul.msk.bf16.vlgmr.msra.gmra.mxu0 %vm354_vm1, %v2200_v0 }
0x136f   :  { %v2226_v35 = vpop.f32.mrf.mxu0 }
0x1370   :  { %v2231_v46 = vadd.f32 %v2226_v35, %v1564_v57 }
0x1372   :  { %3098 = vtanh.f32 %v2231_v46  ;;  %v2838_v62 = vmul.f32 -1.442695, %v2231_v46 }
0x1375   :  { %v2213_v29 = vpop.f32.mrf.mxu3 }
0x1376   :  { %v2230_v27 = vadd.f32 %v2213_v29, %v1542_v59 }
0x1377   :  { %v2228_v55 = vpop.f32.mrf.mxu0 }
0x1378   :  { %v3099_v52 = vpop.eup %3098  ;;  %3100 = vtanh.f32 %v2230_v27  ;;  %v2837_v56 = vmul.f32 -1.442695, %v2230_v27 }
0x1379   :  { %2291 = vrot.lane.b32.xlu1 %v3099_v52, %s3148_s5 }
0x137a   :  { %3102 = vpow2.f32 %v2837_v56 }
0x137d   :  { %v2215_v42 = vpop.f32.mrf.mxu3 }
0x137e   :  { %v3101_v44 = vpop.eup %3100  ;;  %v1545_v42 = vadd.f32 %v4196_v13, %v4067_v37 }
0x137f   :  { %2254 = vrot.lane.b32.xlu2 %v3101_v44, %s3148_s5 }
0x1380   :  { %v3103_v2 = vpop.eup %3102 }
0x1381   :  { %v2235_v36 = vadd.f32 1.0, %v3103_v2  ;;  %v1561_v2 = vadd.f32 %v4075_v33, %v4088_v6 }
0x1383   :  { %3104 = vrcp.f32 %v2235_v36  ;;  %v2247_v34 = vand.u32 2147483648, %v2235_v36  ;;  %vm2241_vm6 = vweird.f32 %v2235_v36  ;;  %v2245_v7 = vand.u32 2147483647, %v2235_v36 }
0x1384   :  { %3106 = vpow2.f32 %v2838_v62 }
0x1385   :  { %v2248_v5 = vor.u32 1.1754944e-38, %v2247_v34  ;;  %vm2246_vm8 = vcmp.eq.f32.partialorder %v2245_v7, 8.507059e+37 }
0x1389   :  { %v3105_v24 = vpop.eup %3104 }
0x138a   :  { %v2237_v40 = vmul.f32 %v3105_v24, %v2235_v36  ;;  %v3107_v14 = vpop.eup %3106  ;;  %vm2242_vm5 = vweird.f32 %v3105_v24 }
0x138b   :  { %v2272_v61 = vadd.f32 1.0, %v3107_v14  ;;  %vm2243_vm7 = vmor %vm2241_vm6, %vm2242_vm5 }
0x138c   :  { %v2238_v41 = vsub.f32 1.0, %v2237_v40 }
0x138d   :  { %3108 = vrcp.f32 %v2272_v61  ;;  %v2284_v19 = vand.u32 2147483648, %v2272_v61  ;;  %vm2278_vm10 = vweird.f32 %v2272_v61  ;;  %v2282_v8 = vand.u32 2147483647, %v2272_v61 }
0x138e   :  { %v2239_v45 = vmul.f32 %v3105_v24, %v2238_v41 }
0x138f   :  { %v2285_v18 = vor.u32 1.1754944e-38, %v2284_v19  ;;  %vm2283_vm12 = vcmp.eq.f32.partialorder %v2282_v8, 8.507059e+37 }
0x1390   :  { %v2240_v11 = vadd.f32 %v3105_v24, %v2239_v45 }
0x1392   :  { %v2244_v9 = vsel %vm2243_vm7, %v3105_v24, %v2240_v11 }
0x1393   :  { %v3109_v38 = vpop.eup %3108  ;;  %v2249_v39 = vsel %vm2246_vm8, %v2248_v5, %v2244_v9 }
0x1394   :  { %v2274_v51 = vmul.f32 %v3109_v38, %v2272_v61  ;;  %vm2279_vm9 = vweird.f32 %v3109_v38  ;;  %v2252_v10 = vmul.f32 %v2249_v39, %v4237_v21 }
0x1395   :  { %vm2280_vm11 = vmor %vm2278_vm10, %vm2279_vm9 }
0x1396   :  { %v2275_v43 = vsub.f32 1.0, %v2274_v51 }
0x1398   :  { %v2276_v12 = vmul.f32 %v3109_v38, %v2275_v43 }
0x139a   :  { %v2277_v58 = vadd.f32 %v3109_v38, %v2276_v12 }
0x139c   :  { %v2281_v32 = vsel %vm2280_vm11, %v3109_v38, %v2277_v58 }
0x139d   :  { %v2286_v47 = vsel %vm2283_vm12, %v2285_v18, %v2281_v32 }
0x139e   :  { %v2289_v28 = vmul.f32 %v2286_v47, %v4242_v15 }
0x13d9   :  { %v2255_v53 = vpop.permute.xlu2 %2254 }
0x13da   :  { %v2257_v25 = vmul.f32 %v2255_v53, %v2249_v39 }
0x13dc   :  { %2259 = vrot.lane.b32.xlu0 %v2257_v25, %s3149_s17 }
0x13eb   :  { %v2292_v22 = vpop.permute.xlu1 %2291 }
0x13ec   :  { %v2294_v26 = vmul.f32 %v2292_v22, %v2286_v47 }
0x13ee   :  { %2296 = vrot.lane.b32.xlu2 %v2294_v26, %s3149_s17 }
0x1448   :  { %v2297_v1 = vpop.permute.xlu2 %2296 }
0x1449   :  { %v4266_v30 = vadd.f32 %v2297_v1, %v2289_v28 }
0x144b   :  { %3110 = vtanh.f32 %v4266_v30 }
0x144e   :  { %v2260_v20 = vpop.permute.xlu0 %2259 }
0x144f   :  { %v4270_v0 = vadd.f32 %v2260_v20, %v2252_v10 }
0x1451   :  { %v3111_v57 = vpop.eup %3110  ;;  %3112 = vtanh.f32 %v4270_v0 }
0x1452   :  { %2302 = vrot.lane.b32.xlu0 %v3111_v57, %s3148_s5 }
0x1457   :  { %v3113_v35 = vpop.eup %3112 }
0x1458   :  { %2265 = vrot.lane.b32.xlu1 %v3113_v35, %s3148_s5 }
0x14c4   :  { %v2303_v46 = vpop.permute.xlu0 %2302 }
0x14c5   :  { %v2305_v15 = vmul.f32 %v2303_v46, %v2286_v47 }
0x14c7   :  { %2311 = vrot.lane.b32.xlu1 %v2305_v15, %s3148_s5 }
0x14ca   :  { %v2266_v59 = vpop.permute.xlu1 %2265 }
0x14cb   :  { %v2268_v29 = vmul.f32 %v2266_v59, %v2249_v39 }
0x14cd   :  { %2307 = vrot.lane.b32.xlu2 %v2268_v29, %s3149_s17 }
0x1527   :  { %v4277_v21 = vpop.permute.xlu2 %2307 }
0x1539   :  { %v4279_v27 = vpop.permute.xlu1 %2311 }
0x153a   :  { %v2314_v55 = vsel %vm101_vm0, %v4277_v21, %v4279_v27 }
0x153b   :  { %v2315_v52 = vpack.c.bf16 %v2314_v55, %v2314_v55 }
0x153d   :  { %2839 = vmatmul.msk.bf16.vlgmr.msra.gmra.mxu1 %vm354_vm1, %v2315_v52  ;;  %2840 = vmatmul.msk.bf16.vlgmr.msra.gmra.mxu2 %vm354_vm1, %v2315_v52 }
0x15ba   :  { %v2328_v44 = vpop.f32.mrf.mxu1 }
0x15bb   :  { %v2345_v56 = vadd.f32 %v2328_v44, %v1545_v42 }
0x15bd   :  { %3114 = vtanh.f32 %v2345_v56  ;;  %v2841_v11 = vmul.f32 -1.442695, %v2345_v56 }
0x15c0   :  { %v2341_v36 = vpop.f32.mrf.mxu2 }
0x15c1   :  { %v2346_v62 = vadd.f32 %v2341_v36, %v1561_v2 }
0x15c2   :  { %v2330_v24 = vpop.f32.mrf.mxu1 }
0x15c3   :  { %v3115_v40 = vpop.eup %3114  ;;  %3116 = vtanh.f32 %v2346_v62  ;;  %v2842_v61 = vmul.f32 -1.442695, %v2346_v62 }
0x15c4   :  { %2369 = vrot.lane.b32.xlu0 %v3115_v40, %s3148_s5 }
0x15c5   :  { %3118 = vpow2.f32 %v2842_v61 }
0x15c8   :  { %v2343_v14 = vpop.f32.mrf.mxu2 }
0x15c9   :  { %v3117_v41 = vpop.eup %3116  ;;  %v1559_v14 = vadd.f32 %v4073_v48, %v4088_v6 }
0x15ca   :  { %2406 = vrot.lane.b32.xlu2 %v3117_v41, %s3148_s5 }
0x15cb   :  { %v3119_v13 = vpop.eup %3118 }
0x15cc   :  { %v2387_v45 = vadd.f32 1.0, %v3119_v13  ;;  %v1547_v13 = vadd.f32 %v4198_v63, %v4067_v37 }
0x15ce   :  { %3120 = vrcp.f32 %v2387_v45  ;;  %v2399_v53 = vand.u32 2147483648, %v2387_v45  ;;  %vm2393_vm14 = vweird.f32 %v2387_v45  ;;  %v2397_v39 = vand.u32 2147483647, %v2387_v45 }
0x15cf   :  { %3122 = vpow2.f32 %v2841_v11 }
0x15d0   :  { %v2400_v12 = vor.u32 1.1754944e-38, %v2399_v53  ;;  %vm2398_vm2 = vcmp.eq.f32.partialorder %v2397_v39, 8.507059e+37 }
0x15d4   :  { %v3121_v34 = vpop.eup %3120 }
0x15d5   :  { %v2389_v33 = vmul.f32 %v3121_v34, %v2387_v45  ;;  %v3123_v7 = vpop.eup %3122  ;;  %vm2394_vm13 = vweird.f32 %v3121_v34 }
0x15d6   :  { %v2350_v9 = vadd.f32 1.0, %v3123_v7  ;;  %vm2395_vm15 = vmor %vm2393_vm14, %vm2394_vm13 }
0x15d7   :  { %v2390_v38 = vsub.f32 1.0, %v2389_v33 }
0x15d8   :  { %3124 = vrcp.f32 %v2350_v9  ;;  %v2362_v26 = vand.u32 2147483648, %v2350_v9  ;;  %vm2356_vm4 = vweird.f32 %v2350_v9  ;;  %v2360_v28 = vand.u32 2147483647, %v2350_v9 }
0x15d9   :  { %v2391_v5 = vmul.f32 %v3121_v34, %v2390_v38 }
0x15da   :  { %v2363_v10 = vor.u32 1.1754944e-38, %v2362_v26  ;;  %vm2361_vm6 = vcmp.eq.f32.partialorder %v2360_v28, 8.507059e+37 }
0x15db   :  { %v2392_v51 = vadd.f32 %v3121_v34, %v2391_v5 }
0x15dd   :  { %v2396_v43 = vsel %vm2395_vm15, %v3121_v34, %v2392_v51 }
0x15de   :  { %v3125_v25 = vpop.eup %3124  ;;  %v2401_v8 = vsel %vm2398_vm2, %v2400_v12, %v2396_v43 }
0x15df   :  { %v2352_v58 = vmul.f32 %v3125_v25, %v2350_v9  ;;  %vm2357_vm3 = vweird.f32 %v3125_v25  ;;  %v2404_v46 = vmul.f32 %v2401_v8, %v4266_v30 }
0x15e0   :  { %vm2358_vm5 = vmor %vm2356_vm4, %vm2357_vm3 }
0x15e1   :  { %v2353_v18 = vsub.f32 1.0, %v2352_v58 }
0x15e3   :  { %v2354_v22 = vmul.f32 %v3125_v25, %v2353_v18 }
0x15e5   :  { %v2355_v47 = vadd.f32 %v3125_v25, %v2354_v22 }
0x15e7   :  { %v2359_v1 = vsel %vm2358_vm5, %v3125_v25, %v2355_v47 }
0x15e8   :  { %v2364_v57 = vsel %vm2361_vm6, %v2363_v10, %v2359_v1 }
0x15e9   :  { %v2367_v55 = vmul.f32 %v2364_v57, %v4270_v0 }
0x1624   :  { %v2407_v19 = vpop.permute.xlu2 %2406 }
0x1625   :  { %v2409_v32 = vmul.f32 %v2407_v19, %v2401_v8 }
0x1627   :  { %2411 = vrot.lane.b32.xlu0 %v2409_v32, %s3149_s17 }
0x1636   :  { %v2370_v20 = vpop.permute.xlu0 %2369 }
0x1637   :  { %v2372_v35 = vmul.f32 %v2370_v20, %v2364_v57 }
0x1639   :  { %2374 = vrot.lane.b32.xlu1 %v2372_v35, %s3149_s17 }
0x1699   :  { %v2412_v15 = vpop.permute.xlu0 %2411 }
0x169a   :  { %v4295_v59 = vadd.f32 %v2412_v15, %v2404_v46 }
0x169c   :  { %3126 = vtanh.f32 %v4295_v59 }
0x16a2   :  { %v3127_v29 = vpop.eup %3126 }
0x16a3   :  { %2417 = vrot.lane.b32.xlu1 %v3127_v29, %s3148_s5 }
0x16ab   :  { %v2375_v52 = vpop.permute.xlu1 %2374 }
0x16ac   :  { %v4300_v42 = vadd.f32 %v2375_v52, %v2367_v55 }
0x16ae   :  { %3128 = vtanh.f32 %v4300_v42 }
0x16b4   :  { %v3129_v44 = vpop.eup %3128 }
0x16b5   :  { %2380 = vrot.lane.b32.xlu2 %v3129_v44, %s3148_s5 }
0x170f   :  { %v2381_v56 = vpop.permute.xlu2 %2380 }
0x1710   :  { %v2383_v30 = vmul.f32 %v2381_v56, %v2364_v57 }
0x1712   :  { %2422 = vrot.lane.b32.xlu0 %v2383_v30, %s3149_s17 }
0x1715   :  { %v2418_v2 = vpop.permute.xlu1 %2417 }
0x1716   :  { %v2420_v36 = vmul.f32 %v2418_v2, %v2401_v8 }
0x1718   :  { %2426 = vrot.lane.b32.xlu2 %v2420_v36, %s3148_s5 }
0x1772   :  { %v4306_v62 = vpop.permute.xlu2 %2426 }
0x1784   :  { %v4308_v24 = vpop.permute.xlu0 %2422 }
0x1785   :  { %v2429_v0 = vsel %vm101_vm0, %v4308_v24, %v4306_v62 }
0x1786   :  { %v2430_v40 = vpack.c.bf16 %v2429_v0, %v2429_v0 }
0x1788   :  { %2843 = vmatmul.msk.bf16.vlgmr.msrb.gmra.mxu3 %vm354_vm1, %v2430_v40  ;;  %2844 = vmatmul.msk.bf16.vlgmr.msrb.gmra.mxu0 %vm354_vm1, %v2430_v40 }
0x1805   :  { %v2456_v41 = vpop.f32.mrf.mxu0 }
0x1806   :  { %v2461_v61 = vadd.f32 %v2456_v41, %v1559_v14  ;;  %v2900_v14 = vld [vmem:[%s4413_s19 + $0x18] sm:$0xff] }
0x1807   :  { %2608 = vmatpush.bf16.msrb.mxu1 %v2900_v14 }
0x1808   :  { %3130 = vtanh.f32 %v2461_v61  ;;  %v2846_v5 = vmul.f32 -1.442695, %v2461_v61 }
0x180b   :  { %v2443_v45 = vpop.f32.mrf.mxu3 }
0x180c   :  { %v2460_v11 = vadd.f32 %v2443_v45, %v1547_v13 }
0x180d   :  { %v2458_v34 = vpop.f32.mrf.mxu0 }
0x180e   :  { %v3131_v33 = vpop.eup %3130  ;;  %3132 = vtanh.f32 %v2460_v11  ;;  %v2845_v9 = vmul.f32 -1.442695, %v2460_v11  ;;  %v2897_v11 = vld [vmem:[%s4413_s19] sm:$0xff] }
0x180f   :  { %2521 = vrot.lane.b32.xlu1 %v3131_v33, %s3148_s5  ;;  %v2545_v33 = vsel %vm101_vm0, %v4139_v16, %v4306_v62  ;;  %v2549_v16 = vsel %vm101_vm0, %v4277_v21, %v4177_v54  ;;  %v2919_v54 = vld [vmem:[%s4414_s20] ss:$0 sm:$0xff] }
0x1810   :  { %3134 = vpow2.f32 %v2845_v9  ;;  %v2546_v9 = vsel %vm101_vm0, %v4175_v49, %v4279_v27 }
0x1813   :  { %v2445_v7 = vpop.f32.mrf.mxu3 }
0x1814   :  { %v3133_v38 = vpop.eup %3132 }
0x1815   :  { %2484 = vrot.lane.b32.xlu2 %v3133_v38, %s3148_s5 }
0x1816   :  { %v3135_v48 = vpop.eup %3134 }
0x1817   :  { %v2465_v6 = vadd.f32 1.0, %v3135_v48  ;;  %v2547_v48 = vsel %vm101_vm0, %v4221_v50, %v4250_v23  ;;  %v2550_v50 = vsel %vm101_vm0, %v4308_v24, %v4141_v17 }
0x1819   :  { %3136 = vrcp.f32 %v2465_v6  ;;  %v2477_v12 = vand.u32 2147483648, %v2465_v6  ;;  %vm2471_vm8 = vweird.f32 %v2465_v6  ;;  %v2475_v58 = vand.u32 2147483647, %v2465_v6 }
0x181a   :  { %3138 = vpow2.f32 %v2846_v5 }
0x181b   :  { %v2478_v32 = vor.u32 1.1754944e-38, %v2477_v12  ;;  %vm2476_vm10 = vcmp.eq.f32.partialorder %v2475_v58, 8.507059e+37 }
0x181f   :  { %v3137_v51 = vpop.eup %3136 }
0x1820   :  { %v2467_v37 = vmul.f32 %v3137_v51, %v2465_v6  ;;  %v3139_v63 = vpop.eup %3138  ;;  %vm2472_vm7 = vweird.f32 %v3137_v51  ;;  %v2553_v6 = vpack.c.bf16 %v2547_v48, %v2546_v9 }
0x1821   :  { %v2502_v39 = vadd.f32 1.0, %v3139_v63  ;;  %vm2473_vm9 = vmor %vm2471_vm8, %vm2472_vm7 }
0x1822   :  { %v2468_v53 = vsub.f32 1.0, %v2467_v37 }
0x1823   :  { %3140 = vrcp.f32 %v2502_v39  ;;  %v2514_v20 = vand.u32 2147483648, %v2502_v39  ;;  %vm2508_vm12 = vweird.f32 %v2502_v39  ;;  %v2512_v57 = vand.u32 2147483647, %v2502_v39 }
0x1824   :  { %v2469_v25 = vmul.f32 %v3137_v51, %v2468_v53 }
0x1825   :  { %v2515_v46 = vor.u32 1.1754944e-38, %v2514_v20  ;;  %vm2513_vm14 = vcmp.eq.f32.partialorder %v2512_v57, 8.507059e+37 }
0x1826   :  { %v2470_v43 = vadd.f32 %v3137_v51, %v2469_v25 }
0x1828   :  { %v2474_v8 = vsel %vm2473_vm9, %v3137_v51, %v2470_v43 }
0x1829   :  { %v3141_v19 = vpop.eup %3140  ;;  %v2479_v47 = vsel %vm2476_vm10, %v2478_v32, %v2474_v8 }
0x182a   :  { %v2504_v18 = vmul.f32 %v3141_v19, %v2502_v39  ;;  %vm2509_vm11 = vweird.f32 %v3141_v19  ;;  %v2482_v52 = vmul.f32 %v2479_v47, %v4300_v42  ;;  %v2899_v42 = vld [vmem:[%s4413_s19 + $0x10] sm:$0xff] }
0x182b   :  { %vm2510_vm13 = vmor %vm2508_vm12, %vm2509_vm11  ;;  %2609 = vmatpush.bf16.msrb.mxu1 %v2899_v42 }
0x182c   :  { %v2505_v28 = vsub.f32 1.0, %v2504_v18 }
0x182e   :  { %v2506_v1 = vmul.f32 %v3141_v19, %v2505_v28 }
0x1830   :  { %v2507_v10 = vadd.f32 %v3141_v19, %v2506_v1 }
0x1832   :  { %v2511_v35 = vsel %vm2510_vm13, %v3141_v19, %v2507_v10 }
0x1833   :  { %v2516_v29 = vsel %vm2513_vm14, %v2515_v46, %v2511_v35 }
0x1834   :  { %v2519_v2 = vmul.f32 %v2516_v29, %v4295_v59  ;;  %v2898_v59 = vld [vmem:[%s4413_s19 + $0x8] sm:$0xff] }
0x1835   :  { %2610 = vmatpush.bf16.msrb.mxu1 %v2898_v59 }
0x1839   :  { %2611 = vmatpush.bf16.msrb.mxu1 %v2897_v11 }
0x186f   :  { %v2485_v22 = vpop.permute.xlu2 %2484 }
0x1870   :  { %v2487_v26 = vmul.f32 %v2485_v22, %v2479_v47 }
0x1872   :  { %2489 = vrot.lane.b32.xlu1 %v2487_v26, %s3149_s17 }
0x1881   :  { %v2522_v15 = vpop.permute.xlu1 %2521 }
0x1882   :  { %v2524_v55 = vmul.f32 %v2522_v15, %v2516_v29 }
0x1884   :  { %2526 = vrot.lane.b32.xlu0 %v2524_v55, %s3149_s17 }
0x18e4   :  { %v2490_v44 = vpop.permute.xlu1 %2489 }
0x18e5   :  { %v2492_v56 = vadd.f32 %v2490_v44, %v2482_v52 }
0x18e7   :  { %3142 = vtanh.f32 %v2492_v56 }
0x18ed   :  { %v3143_v30 = vpop.eup %3142 }
0x18ee   :  { %2495 = vrot.lane.b32.xlu1 %v3143_v30, %s3148_s5 }
0x18f6   :  { %v2527_v36 = vpop.permute.xlu0 %2526 }
0x18f7   :  { %v2529_v0 = vadd.f32 %v2527_v36, %v2519_v2 }
0x18f9   :  { %3144 = vtanh.f32 %v2529_v0 }
0x18ff   :  { %v3145_v40 = vpop.eup %3144 }
0x1900   :  { %2532 = vrot.lane.b32.xlu0 %v3145_v40, %s3148_s5 }
0x1960   :  { %v2496_v41 = vpop.permute.xlu1 %2495 }
0x1961   :  { %v2498_v61 = vmul.f32 %v2496_v41, %v2479_v47 }
0x1963   :  { %2537 = vrot.lane.b32.xlu0 %v2498_v61, %s3149_s17 }
0x1972   :  { %v2533_v13 = vpop.permute.xlu0 %2532 }
0x1973   :  { %v2535_v45 = vmul.f32 %v2533_v13, %v2516_v29 }
0x1975   :  { %2541 = vrot.lane.b32.xlu2 %v2535_v45, %s3148_s5 }
0x19cf   :  { %v2542_v34 = vpop.permute.xlu2 %2541 }
0x19d0   :  { %v2544_v7 = vsel %vm101_vm0, %v4103_v4, %v2542_v34  ;;  %v2548_v4 = vsel %vm101_vm0, %v4248_v31, %v4219_v3 }
0x19d1   :  { %v2552_v38 = vpack.c.bf16 %v2545_v33, %v2544_v7  ;;  %v2554_v62 = vpack.c.bf16 %v2549_v16, %v2548_v4 }
0x19d3   :  { %2863 = vmatmul.msk.bf16.vlgmr.msrb.gmra.mxu1 %vm354_vm1, %v2552_v38 }
0x19d5   :  { %v2538_v5 = vpop.permute.xlu0 %2537 }
0x19d6   :  { %v2551_v49 = vsel %vm101_vm0, %v2538_v5, %v4105_v60 }
0x19d7   :  { %v2555_v23 = vpack.c.bf16 %v2551_v49, %v2550_v50 }
0x19e3   :  { %2864 = vmatmul.msk.bf16.gmra.mxu1 %vm354_vm1, %v2553_v6 }
0x19f3   :  { %2865 = vmatmul.msk.bf16.gmra.mxu1 %vm354_vm1, %v2554_v62 }
0x1a03   :  { %2866 = vmatmul.msk.bf16.gmra.mxu1 %vm354_vm1, %v2555_v23 }
0x1a50   :  { %v2613_v21 = vpop.f32.mrf.mxu1 }
0x1a51   :  { %v2614_v3 = vadd.f32 %v2919_v54, %v2613_v21 }
0x1a53   :  { %2633 = vst [vmem:[%s4415_s21] sm:$0xff] %v2614_v3 }
0x1a58   :  { %v2615_v31 = vpop.f32.mrf.mxu1 }
0x1a59   :  { %v2616_v27 = vadd.f32 %v2919_v54, %v2615_v31 }
0x1a5b   :  { %2634 = vst [vmem:[%s4415_s21 + $0x8] sm:$0xff] %v2616_v27 }
0x1a60   :  { %v2618_v60 = vpop.f32.mrf.mxu1 }
0x1a61   :  { %v2619_v17 = vadd.f32 %v2919_v54, %v2618_v60 }
0x1a63   :  { %2635 = vst [vmem:[%s4415_s21 + $0x10] sm:$0xff] %v2619_v17 }
0x1a68   :  { %v2620_v24 = vpop.f32.mrf.mxu1 }
0x1a69   :  { %v2621_v51 = vadd.f32 %v2919_v54, %v2620_v24 }
0x1a6b   :  { %2636 = vst [vmem:[%s4415_s21 + $0x18] sm:$0xff] %v2621_v51 }
0x1a70   :  { %v2623_v37 = vpop.f32.mrf.mxu1 }
0x1a71   :  { %v2624_v63 = vadd.f32 %v2919_v54, %v2623_v37 }
0x1a73   :  { %2637 = vst [vmem:[%s4415_s21 + $0x20] sm:$0xff] %v2624_v63 }
0x1a78   :  { %v2625_v53 = vpop.f32.mrf.mxu1 }
0x1a79   :  { %v2626_v39 = vadd.f32 %v2919_v54, %v2625_v53 }
0x1a7b   :  { %2638 = vst [vmem:[%s4415_s21 + $0x28] sm:$0xff] %v2626_v39 }
0x1a80   :  { %v2628_v25 = vpop.f32.mrf.mxu1 }
0x1a81   :  { %v2629_v43 = vadd.f32 %v2919_v54, %v2628_v25 }
0x1a83   :  { %2639 = vst [vmem:[%s4415_s21 + $0x30] sm:$0xff] %v2629_v43 }
0x1a88   :  { %v2630_v12 = vpop.f32.mrf.mxu1 }
0x1a89   :  { %v2631_v58 = vadd.f32 %v2919_v54, %v2630_v12 }
0x1a8b   :  { %2640 = vst [vmem:[%s4415_s21 + $0x38] sm:$0xff] %v2631_v58 }

</bundles_post_ra>
